<compile_context>
chip_gen: v6e
topology: v6e:2x2x1
jax: 0.10.0
libtpu: 0.0.40
codegen_flags: <defaults>
</compile_context>

<pallas_src>
import jax
import jax.numpy as jnp
import numpy as np
from jax import lax
from jax.experimental import pallas as pl
from jax.experimental.pallas import tpu as pltpu


# ---------------------------------------------------------------------------
# Fused whole-decoder kernel (single program, everything VMEM resident)
# ---------------------------------------------------------------------------

def _make_decoder_kernel(n_layers, compute_dtype):
    """fc + n_layers dense 'lowered conv' matmuls, activations flat (B, C*H*W)."""

    def kernel(*refs):
        z_ref, fcw_ref, fcb_ref = refs[:3]
        layer_refs = refs[3:3 + 2 * n_layers]
        out_ref = refs[3 + 2 * n_layers]

        # fc: (B, L) @ (L, C0*H0*W0) + b  -- output already in NCHW-flat order.
        x = jnp.dot(z_ref[...].astype(compute_dtype), fcw_ref[...],
                    preferred_element_type=jnp.float32) + fcb_ref[...]

        # [ReLU -> lowered-conv matmul -> +bias] per (de)conv layer.
        for li in range(n_layers):
            m_ref = layer_refs[2 * li]       # (Din, Dout) lowered conv matrix
            b_ref = layer_refs[2 * li + 1]   # (1, Dout)   bias, NCHW-flat
            x = jnp.maximum(x, 0.0).astype(compute_dtype)   # fused nn.ReLU
            x = jnp.dot(x, m_ref[...],
                        preferred_element_type=jnp.float32) + b_ref[...]

        out_ref[...] = x                     # (B, Cimg*H*W), lane-dense store

    return kernel


# ---------------------------------------------------------------------------
# Parameter init: raw PyTorch-layout weights + prepacked kernel-ready forms
# ---------------------------------------------------------------------------

def _lowered_conv_matrix(w_oihw, pad, lhs_dilation, in_chw):
    """Dense (Cin*Hin*Win, Cout*Hout*Wout) matrix of a (possibly input-dilated)
    stride-1 cross-correlation, built by convolving the identity basis."""
    Cin, Hin, Win = in_chw
    d_in = Cin * Hin * Win
    basis = jnp.eye(d_in, dtype=jnp.float32).reshape(d_in, Cin, Hin, Win)
    dn = ('NCHW', 'OIHW', 'NCHW')
    out = lax.conv_general_dilated(
        basis, w_oihw, window_strides=(1, 1),
        padding=[(pad, pad), (pad, pad)],
        lhs_dilation=(lhs_dilation, lhs_dilation),
        dimension_numbers=dn, precision=lax.Precision.HIGHEST)
    _, Co, Ho, Wo = out.shape
    return out.reshape(d_in, Co * Ho * Wo), (Co, Ho, Wo)


def init_decoder_params(key, output_size, base_channel, conv_config, latent_dim,
                        compute_dtype=jnp.bfloat16):
    H, W, img_channels = output_size
    factor = int(np.prod([d['stride'] for d in conv_config]))
    base_size = (base_channel, H // factor, W // factor)     # (C0, H0, W0)
    C0, H0, W0 = base_size
    base_flat = C0 * H0 * W0
    in_channels = [base_channel] + [d['channel'] for d in conv_config[:-1]]

    params = {'base_size': base_size, 'out_hw': (H, W),
              'img_channels': img_channels, 'compute_dtype': compute_dtype}

    key, k1, k2 = jax.random.split(key, 3)
    fc_w = 0.1 * jax.random.normal(k1, (base_flat, latent_dim), jnp.float32)
    fc_b = 0.1 * jax.random.normal(k2, (base_flat,), jnp.float32)
    params['fc_w'], params['fc_b'] = fc_w, fc_b               # PyTorch (out,in)

    deconvs = []
    for indim, d in zip(in_channels, conv_config):
        key, kw, kb = jax.random.split(key, 3)
        # PyTorch ConvTranspose2d weight layout: (in, out, kH, kW)
        w = 0.1 * jax.random.normal(
            kw, (indim, d['channel'], d['kernel'], d['kernel']), jnp.float32)
        bias = 0.1 * jax.random.normal(kb, (d['channel'],), jnp.float32)
        deconvs.append({'w': w, 'b': bias,
                        'stride': d['stride'], 'kernel': d['kernel']})
    params['deconvs'] = deconvs

    key, kw, kb = jax.random.split(key, 3)
    final_w = 0.1 * jax.random.normal(
        kw, (img_channels, conv_config[-1]['channel'], 3, 3), jnp.float32)
    final_b = 0.1 * jax.random.normal(kb, (img_channels,), jnp.float32)
    params['final_w'], params['final_b'] = final_w, final_b

    # ---- prepacked, kernel-ready forms (hoisted out of every forward) ------
    params['fc_wT'] = fc_w.T.astype(compute_dtype)            # (L, base_flat)
    params['fc_brow'] = fc_b.reshape(1, base_flat)             # f32

    layer_mats = []
    cur_chw = (C0, H0, W0)
    for layer in deconvs:
        k, s = layer['kernel'], layer['stride']
        # ConvTranspose2d(k, s, padding=1, output_padding=0) == zero-insert(s)
        # + pad(k-1-1) + stride-1 cross-corr with flipped, in/out-swapped W.
        w_oihw = jnp.flip(layer['w'], axis=(2, 3)).transpose(1, 0, 2, 3)
        mat, out_chw = _lowered_conv_matrix(w_oihw, pad=k - 1 - 1,
                                            lhs_dilation=s, in_chw=cur_chw)
        co, ho, wo = out_chw
        bflat = jnp.broadcast_to(layer['b'][:, None, None],
                                 (co, ho, wo)).reshape(1, co * ho * wo)
        layer_mats += [mat.astype(compute_dtype), bflat]
        cur_chw = out_chw
    # final Conv2d(channel_last -> img_channels, 3, 1, 1)
    mat, out_chw = _lowered_conv_matrix(final_w, pad=1, lhs_dilation=1,
                                        in_chw=cur_chw)
    co, ho, wo = out_chw
    bflat = jnp.broadcast_to(final_b[:, None, None],
                             (co, ho, wo)).reshape(1, co * ho * wo)
    layer_mats += [mat.astype(compute_dtype), bflat]
    params['layer_mats'] = layer_mats
    return params


# ---------------------------------------------------------------------------
# Fused forward pass (single pallas_call, no grid)
# ---------------------------------------------------------------------------

def decoder_forward(z, params):
    B, L = z.shape
    Hout, Wout = params['out_hw']
    Cimg = params['img_channels']
    d_out = Cimg * Hout * Wout

    layer_mats = list(params['layer_mats'])
    n_layers = len(layer_mats) // 2
    kernel = _make_decoder_kernel(n_layers, params['compute_dtype'])

    inputs = [z, params['fc_wT'], params['fc_brow']] + layer_mats

    flops = 2 * B * (L * params['fc_wT'].shape[1]
                     + sum(int(m.shape[0]) * int(m.shape[1])
                           for m in layer_mats[0::2]))
    bytes_accessed = (sum(int(np.prod(a.shape)) * a.dtype.itemsize
                          for a in inputs) + B * d_out * 4)

    vmem_spec = pl.BlockSpec(memory_space=pltpu.MemorySpace.VMEM)
    out = pl.pallas_call(
        kernel,
        out_shape=jax.ShapeDtypeStruct((B, d_out), jnp.float32),
        in_specs=[vmem_spec] * len(inputs),
        out_specs=vmem_spec,
        cost_estimate=pl.CostEstimate(flops=flops, transcendentals=0,
                                      bytes_accessed=bytes_accessed),
    )(*inputs)

    # Kernel output is NCHW-flat (C-major), so this is a pure reshape.
    x_recon = out.reshape(B, Cimg, Hout, Wout)
    logstd_noise = jnp.zeros_like(x_recon)
    return x_recon, logstd_noise


# ---------------------------------------------------------------------------
# Pure-JAX reference (for correctness check only)
# ---------------------------------------------------------------------------

def decoder_forward_reference(z, params):
    C0, H0, W0 = params['base_size']
    h = z @ params['fc_w'].T + params['fc_b']
    x = h.reshape(-1, C0, H0, W0)
    dn = ('NCHW', 'OIHW', 'NCHW')
    for layer in params['deconvs']:
        k, s = layer['kernel'], layer['stride']
        x = jnp.maximum(x, 0.0)
        w_oihw = jnp.flip(layer['w'], axis=(2, 3)).transpose(1, 0, 2, 3)
        pad = k - 1 - 1
        x = lax.conv_general_dilated(x, w_oihw, window_strides=(1, 1),
                                     padding=[(pad, pad), (pad, pad)],
                                     lhs_dilation=(s, s), dimension_numbers=dn)
        x = x + layer['b'].reshape(1, -1, 1, 1)
    x = jnp.maximum(x, 0.0)
    x = lax.conv_general_dilated(x, params['final_w'], window_strides=(1, 1),
                                 padding=[(1, 1), (1, 1)], dimension_numbers=dn)
    x = x + params['final_b'].reshape(1, -1, 1, 1)
    return x, jnp.zeros_like(x)


# ---------------------------------------------------------------------------
if __name__ == "__main__":
    output_size = (16, 16, 3)      # (H, W, image channels)
    base_channel = 8
    conv_config = [{'channel': 8, 'kernel': 4, 'stride': 2},
                   {'channel': 4, 'kernel': 4, 'stride': 2}]
    latent_dim = 8
    batch = 2

    key = jax.random.PRNGKey(0)
    kp, kz = jax.random.split(key)
    params = init_decoder_params(kp, output_size, base_channel, conv_config,
                                 latent_dim)
    z = jax.random.normal(kz, (batch, latent_dim), jnp.float32)

    x_recon, logstd = decoder_forward(z, params)
    jax.block_until_ready((x_recon, logstd))

    # shape / value checks against a pure-JAX reference
    assert x_recon.shape == (batch, output_size[2], output_size[0], output_size[1])
    assert logstd.shape == x_recon.shape and float(jnp.abs(logstd).max()) == 0.0
    x_ref, _ = decoder_forward_reference(z, params)
    max_err = float(jnp.max(jnp.abs(x_recon - x_ref)))
    assert max_err < 1e-2, f"mismatch vs reference: {max_err}"

    print("KERNEL_OK")
</pallas_src>

<mosaic_0001>
module attributes {stable_mosaic.version = 11 : i64} {
  func.func @kernel(%arg0: memref<2x8xf32, #tpu.memory_space<vmem>>, %arg1: memref<8x128xbf16, #tpu.memory_space<vmem>>, %arg2: memref<1x128xf32, #tpu.memory_space<vmem>>, %arg3: memref<128x512xbf16, #tpu.memory_space<vmem>>, %arg4: memref<1x512xf32, #tpu.memory_space<vmem>>, %arg5: memref<512x1024xbf16, #tpu.memory_space<vmem>>, %arg6: memref<1x1024xf32, #tpu.memory_space<vmem>>, %arg7: memref<1024x768xbf16, #tpu.memory_space<vmem>>, %arg8: memref<1x768xf32, #tpu.memory_space<vmem>>, %arg9: memref<2x768xf32, #tpu.memory_space<vmem>>) attributes {dimension_semantics = [], scalar_prefetch = 0 : i64, scratch_operands = 0 : i64, tpu.core_type = #tpu.core_type<tc>} {
    %c0 = arith.constant 0 : index
    %c0_0 = arith.constant 0 : index
    %0 = vector.load %arg0[%c0, %c0_0] : memref<2x8xf32, #tpu.memory_space<vmem>>, vector<2x8xf32>
    %1 = arith.truncf %0 : vector<2x8xf32> to vector<2x8xbf16>
    %c0_1 = arith.constant 0 : index
    %c0_2 = arith.constant 0 : index
    %2 = vector.load %arg1[%c0_1, %c0_2] : memref<8x128xbf16, #tpu.memory_space<vmem>>, vector<8x128xbf16>
    %cst = arith.constant dense<0.000000e+00> : vector<2x128xf32>
    %3 = tpu.matmul %1, %2, %cst {dimension_numbers = #tpu.dot_dimension_numbers<[1], [0], [0], [1], [0, 0, 1, 1], [], []>} : vector<2x8xbf16>, vector<8x128xbf16>, vector<2x128xf32> -> vector<2x128xf32>
    %c0_3 = arith.constant 0 : index
    %c0_4 = arith.constant 0 : index
    %4 = vector.load %arg2[%c0_3, %c0_4] : memref<1x128xf32, #tpu.memory_space<vmem>>, vector<1x128xf32>
    %5 = vector.broadcast %4 : vector<1x128xf32> to vector<2x128xf32>
    %6 = arith.addf %3, %5 : vector<2x128xf32>
    %cst_5 = arith.constant 0.000000e+00 : f32
    %7 = vector.broadcast %cst_5 : f32 to vector<2x128xf32>
    %8 = arith.maximumf %6, %7 : vector<2x128xf32>
    %9 = arith.truncf %8 : vector<2x128xf32> to vector<2x128xbf16>
    %c0_6 = arith.constant 0 : index
    %c0_7 = arith.constant 0 : index
    %10 = vector.load %arg3[%c0_6, %c0_7] : memref<128x512xbf16, #tpu.memory_space<vmem>>, vector<128x512xbf16>
    %cst_8 = arith.constant dense<0.000000e+00> : vector<2x512xf32>
    %11 = tpu.matmul %9, %10, %cst_8 {dimension_numbers = #tpu.dot_dimension_numbers<[1], [0], [0], [1], [0, 0, 1, 1], [], []>} : vector<2x128xbf16>, vector<128x512xbf16>, vector<2x512xf32> -> vector<2x512xf32>
    %c0_9 = arith.constant 0 : index
    %c0_10 = arith.constant 0 : index
    %12 = vector.load %arg4[%c0_9, %c0_10] : memref<1x512xf32, #tpu.memory_space<vmem>>, vector<1x512xf32>
    %13 = vector.broadcast %12 : vector<1x512xf32> to vector<2x512xf32>
    %14 = arith.addf %11, %13 : vector<2x512xf32>
    %cst_11 = arith.constant 0.000000e+00 : f32
    %15 = vector.broadcast %cst_11 : f32 to vector<2x512xf32>
    %16 = arith.maximumf %14, %15 : vector<2x512xf32>
    %17 = arith.truncf %16 : vector<2x512xf32> to vector<2x512xbf16>
    %c0_12 = arith.constant 0 : index
    %c0_13 = arith.constant 0 : index
    %18 = vector.load %arg5[%c0_12, %c0_13] : memref<512x1024xbf16, #tpu.memory_space<vmem>>, vector<512x1024xbf16>
    %cst_14 = arith.constant dense<0.000000e+00> : vector<2x1024xf32>
    %19 = tpu.matmul %17, %18, %cst_14 {dimension_numbers = #tpu.dot_dimension_numbers<[1], [0], [0], [1], [0, 0, 1, 1], [], []>} : vector<2x512xbf16>, vector<512x1024xbf16>, vector<2x1024xf32> -> vector<2x1024xf32>
    %c0_15 = arith.constant 0 : index
    %c0_16 = arith.constant 0 : index
    %20 = vector.load %arg6[%c0_15, %c0_16] : memref<1x1024xf32, #tpu.memory_space<vmem>>, vector<1x1024xf32>
    %21 = vector.broadcast %20 : vector<1x1024xf32> to vector<2x1024xf32>
    %22 = arith.addf %19, %21 : vector<2x1024xf32>
    %cst_17 = arith.constant 0.000000e+00 : f32
    %23 = vector.broadcast %cst_17 : f32 to vector<2x1024xf32>
    %24 = arith.maximumf %22, %23 : vector<2x1024xf32>
    %25 = arith.truncf %24 : vector<2x1024xf32> to vector<2x1024xbf16>
    %c0_18 = arith.constant 0 : index
    %c0_19 = arith.constant 0 : index
    %26 = vector.load %arg7[%c0_18, %c0_19] : memref<1024x768xbf16, #tpu.memory_space<vmem>>, vector<1024x768xbf16>
    %cst_20 = arith.constant dense<0.000000e+00> : vector<2x768xf32>
    %27 = tpu.matmul %25, %26, %cst_20 {dimension_numbers = #tpu.dot_dimension_numbers<[1], [0], [0], [1], [0, 0, 1, 1], [], []>} : vector<2x1024xbf16>, vector<1024x768xbf16>, vector<2x768xf32> -> vector<2x768xf32>
    %c0_21 = arith.constant 0 : index
    %c0_22 = arith.constant 0 : index
    %28 = vector.load %arg8[%c0_21, %c0_22] : memref<1x768xf32, #tpu.memory_space<vmem>>, vector<1x768xf32>
    %29 = vector.broadcast %28 : vector<1x768xf32> to vector<2x768xf32>
    %30 = arith.addf %27, %29 : vector<2x768xf32>
    %c0_23 = arith.constant 0 : index
    %c0_24 = arith.constant 0 : index
    %31 = vector.load %arg9[%c0_23, %c0_24] : memref<2x768xf32, #tpu.memory_space<vmem>>, vector<2x768xf32>
    tpu.vector_store %arg9[%c0_23, %c0_24], %30 {strides = array<i32>} : memref<2x768xf32, #tpu.memory_space<vmem>>, vector<2x768xf32>,
    return
  }
}

</mosaic_0001>

<bundles_post_ra>
// kernel: tpu_custom_call.1
= control target key start
LH: loop header
LB: loop body
LE: loop exit
PB: predicated region body
PF: predicated region fallthrough
CT: control target
= control target key end

     0   :  { %14 = vsyncpa [#allocation3], 0  ;;  %s7105_s0 = inlined_call_operand.hbm [shape: f32[2,8], index: 0, kind: input, shape index: {}]   ;;  %s7106_s1 = inlined_call_operand.hbm [shape: bf16[8,128], index: 1, kind: input, shape index: {}]   ;;  %s7107_s2 = inlined_call_operand.hbm [shape: f32[1,128], index: 2, kind: input, shape index: {}]   ;;  %s7108_s3 = inlined_call_operand.hbm [shape: bf16[128,512], index: 3, kind: input, shape index: {}]   ;;  %s7109_s4 = inlined_call_operand.hbm [shape: f32[1,512], index: 4, kind: input, shape index: {}]   ;;  %s7110_s5 = inlined_call_operand.hbm [shape: bf16[512,1024], index: 5, kind: input, shape index: {}]   ;;  %s7111_s6 = inlined_call_operand.hbm [shape: f32[1,1024], index: 6, kind: input, shape index: {}]   ;;  %s7112_s7 = inlined_call_operand.hbm [shape: bf16[1024,768], index: 7, kind: input, shape index: {}]   ;;  %s7113_s8 = inlined_call_operand.hbm [shape: f32[1,768], index: 8, kind: input, shape index: {}]   ;;  %s7114_s9 = inlined_call_operand.hbm [shape: f32[2,768], index: 9, kind: output, shape index: {}]  }
   0x1   :  { %15 = vsyncpa [#allocation6], 0 }
   0x2   :  { %16 = vsyncpa [#allocation9], 0 }
   0x3   :  { %17 = vsyncpa [#allocation12], 0 }
   0x4   :  { %18 = vsyncpa [#allocation15], 0 }
   0x5   :  { %19 = vsyncpa [#allocation4], 0  ;;  %s6851_s30 = smov [#allocation5]   ;;  %s6852_s11 = smov [#allocation8]  }
   0x6   :  { %s36_s10 = sshll.u32 %s6851_s30, 4  ;;  %s55_s12 = sshll.u32 %s6852_s11, 4  ;;  %s37_s10 = int_to_ptr.vmem [resolvable:$true] %s36_s10  ;;  %s56_s12 = int_to_ptr.vmem [resolvable:$true] %s55_s12 }
   0x7   :  { %s6647_s13 = scalar_lea.vmem %s37_s10, 64  ;;  %p6652_p1 = scmp.lt.s32.totalorder %s37_s10, %s37_s10 }
   0x8   :  { %p6648_p0 = scmp.ne.s32.totalorder %s37_s10, %s6647_s13  ;;  %p6653_p2 = scmp.lt.s32.totalorder %s6647_s13, %s6647_s13 }
   0xa   :  { %p6654_p3 = por %p6653_p2, %p6652_p1 }
   0xc   :  { %p6655_p4 = pnand %p6654_p3, %p6648_p0 }
   0xe   :  { %6658 = shalt.err (!%p6655_p4)
}
   0xf   :  { %39 = dma.hbm_to_vmem [thread:$0]  %s7106_s1, 64, %s37_s10, [#allocation6]  }
  0x10   :  { %s6667_s16 = scalar_lea.vmem %s56_s12, 4096  ;;  %p6672_p6 = scmp.lt.s32.totalorder %s56_s12, %s56_s12 }
  0x11   :  { %p6668_p5 = scmp.ne.s32.totalorder %s56_s12, %s6667_s16  ;;  %p6673_p7 = scmp.lt.s32.totalorder %s6667_s16, %s6667_s16 }
  0x13   :  { %p6674_p8 = por %p6673_p7, %p6672_p6 }
  0x15   :  { %p6675_p9 = pnand %p6674_p8, %p6668_p5 }
  0x17   :  { %6678 = shalt.err (!%p6675_p9)
}
  0x18   :  { %s6853_s17 = smov 256   ;;  %s6854_s18 = smov 16  }
  0x19   :  { %61 = dma.hbm_to_vmem [thread:$0]  %s7108_s3, 4096, %s56_s12, [#allocation9], %s6853_s17, %s6853_s17, %s6854_s18  }
  0x1a   :  { %s6855_s21 = smov [#allocation11]  }
  0x1b   :  { %s77_s22 = sshll.u32 %s6855_s21, 4  ;;  %s78_s22 = int_to_ptr.vmem [resolvable:$true] %s77_s22 }
  0x1c   :  { %s6687_s23 = scalar_lea.vmem %s78_s22, 32768  ;;  %p6692_p11 = scmp.lt.s32.totalorder %s78_s22, %s78_s22 }
  0x1d   :  { %p6688_p10 = scmp.ne.s32.totalorder %s78_s22, %s6687_s23  ;;  %p6693_p12 = scmp.lt.s32.totalorder %s6687_s23, %s6687_s23 }
  0x1f   :  { %p6694_p13 = por %p6693_p12, %p6692_p11 }
  0x21   :  { %p6695_p0 = pnand %p6694_p13, %p6688_p10 }
  0x23   :  { %6698 = shalt.err (!%p6695_p0)
}
  0x24   :  { %s6856_s1 = smov 512   ;;  %s6857_s24 = smov 32  }
  0x25   :  { %83 = dma.hbm_to_vmem [thread:$0]  %s7110_s5, 32768, %s78_s22, [#allocation12], %s6856_s1, %s6856_s1, %s6857_s24  }
  0x26   :  { %s6858_s27 = smov [#allocation14]  }
  0x27   :  { %s99_s28 = sshll.u32 %s6858_s27, 4  ;;  %s100_s28 = int_to_ptr.vmem [resolvable:$true] %s99_s28 }
  0x28   :  { %s6707_s3 = scalar_lea.vmem %s100_s28, 49152  ;;  %p6712_p2 = scmp.lt.s32.totalorder %s100_s28, %s100_s28 }
  0x29   :  { %p6708_p1 = scmp.ne.s32.totalorder %s100_s28, %s6707_s3  ;;  %p6713_p3 = scmp.lt.s32.totalorder %s6707_s3, %s6707_s3 }
  0x2b   :  { %p6714_p4 = por %p6713_p3, %p6712_p2 }
  0x2d   :  { %p6715_p5 = pnand %p6714_p4, %p6708_p1 }
  0x2f   :  { %6718 = shalt.err (!%p6715_p5)
}
  0x30   :  { %s6859_s29 = smov 384   ;;  %s6860_s30 = smov 24  }
  0x31   :  { %105 = dma.hbm_to_vmem [thread:$0]  %s7112_s7, 49152, %s100_s28, [#allocation15], %s6859_s29, %s6859_s29, %s6860_s30  }
  0x32   :  { %s6861_s12 = smov [#allocation2]   ;;  %s6862_s14 = smov [#allocation7]  }
  0x33   :  { %s26_s13 = sshll.u32 %s6861_s12, 4  ;;  %s46_s5 = sshll.u32 %s6862_s14, 4  ;;  %s27_s13 = int_to_ptr.vmem [resolvable:$true] %s26_s13  ;;  %s47_s5 = int_to_ptr.vmem [resolvable:$true] %s46_s5 }
  0x34   :  { %s6727_s15 = scalar_lea.vmem %s27_s13, 32  ;;  %p6732_p7 = scmp.lt.s32.totalorder %s27_s13, %s27_s13 }
  0x35   :  { %p6728_p6 = scmp.ne.s32.totalorder %s27_s13, %s6727_s15  ;;  %p6733_p8 = scmp.lt.s32.totalorder %s6727_s15, %s6727_s15 }
  0x37   :  { %p6734_p9 = por %p6733_p8, %p6732_p7 }
  0x39   :  { %p6735_p10 = pnand %p6734_p9, %p6728_p6 }
  0x3b   :  { %6738 = shalt.err (!%p6735_p10)
}
  0x3c   :  { %29 = dma.hbm_to_vmem [thread:$0]  %s7105_s0, 32, %s27_s13, [#allocation3]  }
  0x3d   :  { %s6747_s18 = scalar_lea.vmem %s47_s5, 16  ;;  %s6751_s7 = scalar_lea.vmem %s47_s5, 32 }
  0x3e   :  { %p6748_p11 = scmp.ne.s32.totalorder %s47_s5, %s6747_s18  ;;  %p6752_p12 = scmp.lt.s32.totalorder %s47_s5, %s47_s5 }
  0x3f   :  { %p6753_p13 = scmp.lt.s32.totalorder %s6751_s7, %s6747_s18 }
  0x41   :  { %p6754_p0 = por %p6753_p13, %p6752_p12 }
  0x43   :  { %p6755_p1 = pnand %p6754_p0, %p6748_p11 }
  0x45   :  { %6758 = shalt.err (!%p6755_p1)
}
  0x46   :  { %49 = dma.hbm_to_vmem [thread:$0]  %s7107_s2, 16, %s47_s5, [#allocation6]  }
  0x47   :  { %s6863_s21 = smov [#allocation10]   ;;  %s6864_s23 = smov [#allocation13]  }
  0x48   :  { %s68_s22 = sshll.u32 %s6863_s21, 4  ;;  %s90_s1 = sshll.u32 %s6864_s23, 4  ;;  %s69_s22 = int_to_ptr.vmem [resolvable:$true] %s68_s22  ;;  %s91_s1 = int_to_ptr.vmem [resolvable:$true] %s90_s1 }
  0x49   :  { %s6767_s24 = scalar_lea.vmem %s69_s22, 64  ;;  %p6772_p3 = scmp.lt.s32.totalorder %s69_s22, %s69_s22 }
  0x4a   :  { %p6768_p2 = scmp.ne.s32.totalorder %s69_s22, %s6767_s24  ;;  %p6773_p4 = scmp.lt.s32.totalorder %s6767_s24, %s6767_s24 }
  0x4c   :  { %p6774_p5 = por %p6773_p4, %p6772_p3 }
  0x4e   :  { %p6775_p6 = pnand %p6774_p5, %p6768_p2 }
  0x50   :  { %6778 = shalt.err (!%p6775_p6)
}
  0x51   :  { %71 = dma.hbm_to_vmem [thread:$0]  %s7109_s4, 64, %s69_s22, [#allocation9]  }
  0x52   :  { %s6787_s26 = scalar_lea.vmem %s91_s1, 128  ;;  %p6792_p8 = scmp.lt.s32.totalorder %s91_s1, %s91_s1 }
  0x53   :  { %p6788_p7 = scmp.ne.s32.totalorder %s91_s1, %s6787_s26  ;;  %p6793_p9 = scmp.lt.s32.totalorder %s6787_s26, %s6787_s26 }
  0x55   :  { %p6794_p10 = por %p6793_p9, %p6792_p8 }
  0x57   :  { %p6795_p11 = pnand %p6794_p10, %p6788_p7 }
  0x59   :  { %6798 = shalt.err (!%p6795_p11)
}
  0x5a   :  { %93 = dma.hbm_to_vmem [thread:$0]  %s7111_s6, 128, %s91_s1, [#allocation12]  }
  0x5b   :  { %s6865_s28 = smov [#allocation16]  }
  0x5c   :  { %s112_s3 = sshll.u32 %s6865_s28, 4  ;;  %s113_s3 = int_to_ptr.vmem [resolvable:$true] %s112_s3 }
  0x5d   :  { %s6807_s29 = scalar_lea.vmem %s113_s3, 96  ;;  %p6812_p13 = scmp.lt.s32.totalorder %s113_s3, %s113_s3 }
  0x5e   :  { %p6808_p12 = scmp.ne.s32.totalorder %s113_s3, %s6807_s29  ;;  %p6813_p0 = scmp.lt.s32.totalorder %s6807_s29, %s6807_s29 }
  0x60   :  { %p6814_p1 = por %p6813_p0, %p6812_p13 }
  0x62   :  { %p6815_p2 = pnand %p6814_p1, %p6808_p12 }
  0x64   :  { %6818 = shalt.err (!%p6815_p2)
}
  0x65   :  { %115 = dma.hbm_to_vmem [thread:$0]  %s7113_s8, 96, %s113_s3, [#allocation15]  }
  0x66   :  { %6839 = dma.done.wait [#allocation3], 32  }
  0x67   :  { %6840 = vsyncadd [#allocation3], 4294967264 }
  0x68   :  { %6841 = dma.done.wait [#allocation6], 80  }
  0x69   :  { %6842 = vsyncadd [#allocation6], 4294967216 }
  0x6a   :  { %6843 = dma.done.wait [#allocation9], 4160  }
  0x6b   :  { %6844 = vsyncadd [#allocation9], 4294963136 }
  0x6c   :  { %6845 = dma.done.wait [#allocation12], 32896  }
  0x6d   :  { %6846 = vsyncadd [#allocation12], 4294934400 }
  0x6e   :  { %6847 = dma.done.wait [#allocation15], 49248  }
  0x6f   :  { %6848 = vsyncadd [#allocation15], 4294918048  ;;  %v6866_v0 = vmov 0.0   ;;  %vm6867_vm0 = vmmov 0   ;;  %vm158_vm1 = vcmask 1043456   ;;  %vm154_vm2 = vcmask 64512  }
  0x70   :  { %5989 = vmatprep.subr.bf16.mxu0 %v6866_v0  ;;  %5991 = vmatprep.mubr.msk.bf16.mxu0 %vm6867_vm0, %v6866_v0  ;;  %v146_v1 = vld [vmem:[#allocation5] sm:$0xf]  ;;  %v144_v2 = vld [vmem:[#allocation2] sm:$0x3]  ;;  %v6015_v5 = vld [vmem:[#allocation8 + $0xe4] ss:$16 sps:$4 sm:$0xff]  }
  0x71   :  { %v160_v3 = vsel %vm158_vm1, %v146_v1, 0  ;;  %v145_v4 = vpack.c.bf16 %v144_v2, %v144_v2  ;;  %v6017_v6 = vld [vmem:[#allocation8 + $0xe8] ss:$16 sps:$4 sm:$0xff]   ;;  %v6019_v7 = vld [vmem:[#allocation8 + $0xec] ss:$16 sps:$4 sm:$0xff]   ;;  %418 = vmatprep.subr.bf16.mxu1 %v6015_v5  ;;  %v6868_v37 = vmov 0  }
  0x72   :  { %5990 = vmatpush3.bf16.msra.mxu0 %v160_v3  ;;  %v6020_v8 = vld [vmem:[#allocation8 + $0xe0] ss:$16 sps:$4 sm:$0xff]   ;;  %v6021_v9 = vld [vmem:[#allocation8 + $0xc4] ss:$16 sps:$4 sm:$0xff]   ;;  %v6023_v10 = vld [vmem:[#allocation8 + $0xc8] ss:$16 sps:$4 sm:$0xff]   ;;  %450 = vmatprep.mubr.bf16.mxu1 %v6868_v37 }
  0x73   :  { %459 = vmatprep.subr.bf16.mxu0 %v6019_v7  ;;  %419 = vmatpush1.bf16.msra.mxu1 %v6020_v8  ;;  %v6025_v11 = vld [vmem:[#allocation8 + $0xcc] ss:$16 sps:$4 sm:$0xff]   ;;  %v6026_v12 = vld [vmem:[#allocation8 + $0xc0] ss:$16 sps:$4 sm:$0xff]   ;;  %v6027_v13 = vld [vmem:[#allocation8 + $0xa4] ss:$16 sps:$4 sm:$0xff]  }
  0x74   :  { %420 = vmatprep.subr.bf16.mxu1 %v6021_v9  ;;  %v6031_v14 = vld [vmem:[#allocation8 + $0xac] ss:$16 sps:$4 sm:$0xff]   ;;  %v6032_v15 = vld [vmem:[#allocation8 + $0xa0] ss:$16 sps:$4 sm:$0xff]   ;;  %v6029_v16 = vld [vmem:[#allocation8 + $0xa8] ss:$16 sps:$4 sm:$0xff]  }
  0x75   :  { %5992 = vmatmul.mubr.msk.bf16.vlgmr.msra.gmra.mxu0 %vm154_vm2, %v145_v4  ;;  %v6033_v17 = vld [vmem:[#allocation8 + $0x84] ss:$16 sps:$4 sm:$0xff]   ;;  %v6037_v18 = vld [vmem:[#allocation8 + $0x8c] ss:$16 sps:$4 sm:$0xff]   ;;  %v6035_v19 = vld [vmem:[#allocation8 + $0x88] ss:$16 sps:$4 sm:$0xff]  }
  0x76   :  { %460 = vmatpush1.bf16.msra.mxu0 %v6017_v6  ;;  %v6038_v20 = vld [vmem:[#allocation8 + $0x80] ss:$16 sps:$4 sm:$0xff]   ;;  %v6039_v21 = vld [vmem:[#allocation8 + $0x64] ss:$16 sps:$4 sm:$0xff]   ;;  %v6043_v22 = vld [vmem:[#allocation8 + $0x6c] ss:$16 sps:$4 sm:$0xff]   ;;  %491 = vmatprep.mubr.bf16.mxu0 %v6868_v37 }
  0x77   :  { %461 = vmatprep.subr.bf16.mxu0 %v6025_v11  ;;  %421 = vmatpush1.bf16.msra.mxu1 %v6026_v12  ;;  %v6041_v23 = vld [vmem:[#allocation8 + $0x68] ss:$16 sps:$4 sm:$0xff]   ;;  %v6044_v24 = vld [vmem:[#allocation8 + $0x60] ss:$16 sps:$4 sm:$0xff]   ;;  %v6045_v25 = vld [vmem:[#allocation8 + $0x44] ss:$16 sps:$4 sm:$0xff]  }
  0x78   :  { %422 = vmatprep.subr.bf16.mxu1 %v6027_v13  ;;  %v6049_v26 = vld [vmem:[#allocation8 + $0x4c] ss:$16 sps:$4 sm:$0xff]   ;;  %v6050_v27 = vld [vmem:[#allocation8 + $0x40] ss:$16 sps:$4 sm:$0xff]   ;;  %v6047_v28 = vld [vmem:[#allocation8 + $0x48] ss:$16 sps:$4 sm:$0xff]  }
  0x79   :  { %v6051_v29 = vld [vmem:[#allocation8 + $0x24] ss:$16 sps:$4 sm:$0xff]   ;;  %v6055_v30 = vld [vmem:[#allocation8 + $0x2c] ss:$16 sps:$4 sm:$0xff]   ;;  %v6053_v31 = vld [vmem:[#allocation8 + $0x28] ss:$16 sps:$4 sm:$0xff]  }
  0x7a   :  { %462 = vmatpush1.bf16.msra.mxu0 %v6023_v10  ;;  %v6056_v32 = vld [vmem:[#allocation8 + $0x20] ss:$16 sps:$4 sm:$0xff]   ;;  %v6057_v33 = vld [vmem:[#allocation8 + $0x4] ss:$16 sps:$4 sm:$0xff]   ;;  %v6061_v34 = vld [vmem:[#allocation8 + $0xc] ss:$16 sps:$4 sm:$0xff]  }
  0x7b   :  { %463 = vmatprep.subr.bf16.mxu0 %v6031_v14  ;;  %423 = vmatpush1.bf16.msra.mxu1 %v6032_v15  ;;  %v6059_v35 = vld [vmem:[#allocation8 + $0x8] ss:$16 sps:$4 sm:$0xff]   ;;  %v6062_v36 = vld [vmem:[#allocation8] ss:$16 sps:$4 sm:$0xff]   ;;  %v5312_v46 = vld [vmem:[#allocation7] ss:$0 sm:$0xff] }
  0x7c   :  { %424 = vmatprep.subr.bf16.mxu1 %v6033_v17  ;;  %v564_v38 = vld [vmem:[#allocation11 + $0x1c0] sm:$0xff]  ;;  %s6870_s6 = smov [#allocation17]  }
  0x7d   :  { %v568_v39 = vld [vmem:[#allocation11 + $0x1e0] sm:$0xff]  ;;  %s5299_s8 = sshll.u32 %s6870_s6, 4  ;;  %s5300_s8 = int_to_ptr.vmem [resolvable:$true] %s5299_s8 }
  0x7e   :  { %464 = vmatpush1.bf16.msra.mxu0 %v6029_v16  ;;  %v692_v40 = vld [vmem:[#allocation11 + $0x5c0] sm:$0xff]  ;;  %v5402_v41 = vcombine.low %v564_v38, %v568_v39  ;;  %v5403_v42 = vcombine.high %v564_v38, %v568_v39  ;;  %s6819_s10 = scalar_lea.vmem %s5300_s8, 192  ;;  %p6824_p4 = scmp.lt.s32.totalorder %s5300_s8, %s5300_s8 }
  0x7f   :  { %465 = vmatprep.subr.bf16.mxu0 %v6037_v18  ;;  %425 = vmatpush1.bf16.msra.mxu1 %v6038_v20  ;;  %v696_v43 = vld [vmem:[#allocation11 + $0x5e0] sm:$0xff]  ;;  %p6820_p3 = scmp.ne.s32.totalorder %s5300_s8, %s6819_s10  ;;  %p6825_p5 = scmp.lt.s32.totalorder %s6819_s10, %s6819_s10 }
  0x80   :  { %426 = vmatprep.subr.bf16.mxu1 %v6039_v21  ;;  %v5530_v44 = vcombine.low %v692_v40, %v696_v43  ;;  %v5531_v45 = vcombine.high %v692_v40, %v696_v43  ;;  %v556_v49 = vld [vmem:[#allocation11 + $0x180] sm:$0xff] }
  0x81   :  { %v560_v51 = vld [vmem:[#allocation11 + $0x1a0] sm:$0xff]  ;;  %p6826_p6 = por %p6825_p5, %p6824_p4 }
  0x82   :  { %466 = vmatpush1.bf16.msra.mxu0 %v6035_v19  ;;  %v684_v52 = vld [vmem:[#allocation11 + $0x580] sm:$0xff]  ;;  %v5395_v57 = vcombine.high %v556_v49, %v560_v51  ;;  %v5394_v0 = vcombine.low %v556_v49, %v560_v51 }
  0x83   :  { %467 = vmatprep.subr.bf16.mxu0 %v6043_v22  ;;  %427 = vmatpush1.bf16.msra.mxu1 %v6044_v24  ;;  %v688_v53 = vld [vmem:[#allocation11 + $0x5a0] sm:$0xff]  ;;  %p6827_p7 = pnand %p6826_p6, %p6820_p3 }
  0x84   :  { %428 = vmatprep.subr.bf16.mxu1 %v6045_v25  ;;  %v5523_v58 = vcombine.high %v684_v52, %v688_v53  ;;  %v548_v59 = vld [vmem:[#allocation11 + $0x140] sm:$0xff]  ;;  %v5522_v1 = vcombine.low %v684_v52, %v688_v53 }
  0x85   :  { %v552_v61 = vld [vmem:[#allocation11 + $0x160] sm:$0xff] }
  0x86   :  { %468 = vmatpush1.bf16.msra.mxu0 %v6041_v23  ;;  %v676_v62 = vld [vmem:[#allocation11 + $0x540] sm:$0xff]  ;;  %v5387_v2 = vcombine.high %v548_v59, %v552_v61  ;;  %v5386_v8 = vcombine.low %v548_v59, %v552_v61 }
  0x87   :  { %469 = vmatprep.subr.bf16.mxu0 %v6049_v26  ;;  %429 = vmatpush1.bf16.msra.mxu1 %v6050_v27  ;;  %v680_v63 = vld [vmem:[#allocation11 + $0x560] sm:$0xff] }
  0x88   :  { %430 = vmatprep.subr.bf16.mxu1 %v6051_v29  ;;  %v5515_v3 = vcombine.high %v676_v62, %v680_v63  ;;  %v540_v4 = vld [vmem:[#allocation11 + $0x100] sm:$0xff]  ;;  %v5514_v9 = vcombine.low %v676_v62, %v680_v63 }
  0x89   :  { %v544_v5 = vld [vmem:[#allocation11 + $0x120] sm:$0xff] }
  0x8a   :  { %470 = vmatpush1.bf16.msra.mxu0 %v6047_v28  ;;  %v668_v6 = vld [vmem:[#allocation11 + $0x500] sm:$0xff]  ;;  %v5379_v10 = vcombine.high %v540_v4, %v544_v5  ;;  %v5378_v16 = vcombine.low %v540_v4, %v544_v5 }
  0x8b   :  { %471 = vmatprep.subr.bf16.mxu0 %v6055_v30  ;;  %431 = vmatpush1.bf16.msra.mxu1 %v6056_v32  ;;  %v672_v7 = vld [vmem:[#allocation11 + $0x520] sm:$0xff] }
  0x8c   :  { %432 = vmatprep.subr.bf16.mxu1 %v6057_v33  ;;  %v5507_v11 = vcombine.high %v668_v6, %v672_v7  ;;  %v532_v12 = vld [vmem:[#allocation11 + $0xc0] sm:$0xff]  ;;  %v5506_v17 = vcombine.low %v668_v6, %v672_v7 }
  0x8d   :  { %v536_v13 = vld [vmem:[#allocation11 + $0xe0] sm:$0xff] }
  0x8e   :  { %472 = vmatpush1.bf16.msra.mxu0 %v6053_v31  ;;  %v660_v14 = vld [vmem:[#allocation11 + $0x4c0] sm:$0xff]  ;;  %v5371_v18 = vcombine.high %v532_v12, %v536_v13  ;;  %v5370_v24 = vcombine.low %v532_v12, %v536_v13 }
  0x8f   :  { %473 = vmatprep.subr.bf16.mxu0 %v6061_v34  ;;  %433 = vmatpush1.bf16.msra.mxu1 %v6062_v36  ;;  %v664_v15 = vld [vmem:[#allocation11 + $0x4e0] sm:$0xff] }
  0x90   :  { %2086 = vmatprep.subr.bf16.mxu1 %v5403_v42  ;;  %v5499_v19 = vcombine.high %v660_v14, %v664_v15  ;;  %v524_v20 = vld [vmem:[#allocation11 + $0x80] sm:$0xff]  ;;  %v5498_v25 = vcombine.low %v660_v14, %v664_v15 }
  0x91   :  { %v528_v21 = vld [vmem:[#allocation11 + $0xa0] sm:$0xff] }
  0x92   :  { %474 = vmatpush1.bf16.msra.mxu0 %v6059_v35  ;;  %v652_v22 = vld [vmem:[#allocation11 + $0x480] sm:$0xff]  ;;  %v5363_v26 = vcombine.high %v524_v20, %v528_v21  ;;  %v5362_v32 = vcombine.low %v524_v20, %v528_v21 }
  0x93   :  { %2127 = vmatprep.subr.bf16.mxu0 %v5531_v45  ;;  %v656_v23 = vld [vmem:[#allocation11 + $0x4a0] sm:$0xff] }
  0x94   :  { %v5491_v27 = vcombine.high %v652_v22, %v656_v23  ;;  %v516_v28 = vld [vmem:[#allocation11 + $0x40] sm:$0xff]  ;;  %v5490_v33 = vcombine.low %v652_v22, %v656_v23 }
  0x95   :  { %v520_v29 = vld [vmem:[#allocation11 + $0x60] sm:$0xff] }
  0x96   :  { %v644_v30 = vld [vmem:[#allocation11 + $0x440] sm:$0xff]  ;;  %v5355_v34 = vcombine.high %v516_v28, %v520_v29  ;;  %v5354_v40 = vcombine.low %v516_v28, %v520_v29 }
  0x97   :  { %v648_v31 = vld [vmem:[#allocation11 + $0x460] sm:$0xff] }
  0x98   :  { %v5483_v35 = vcombine.high %v644_v30, %v648_v31  ;;  %v508_v36 = vld [vmem:[#allocation11] sm:$0xff] }
  0x99   :  { %v512_v37 = vld [vmem:[#allocation11 + $0x20] sm:$0xff] }
  0x9a   :  { %v636_v38 = vld [vmem:[#allocation11 + $0x400] sm:$0xff]  ;;  %v5347_v42 = vcombine.high %v508_v36, %v512_v37 }
  0x9b   :  { %v640_v39 = vld [vmem:[#allocation11 + $0x420] sm:$0xff] }
  0x9c   :  { %v5475_v43 = vcombine.high %v636_v38, %v640_v39  ;;  %v632_v45 = vld [vmem:[#allocation11 + $0x3e0] sm:$0xff]  ;;  %v5474_v49 = vcombine.low %v636_v38, %v640_v39 }
  0x9d   :  { %v620_v52 = vld [vmem:[#allocation11 + $0x380] sm:$0xff] }
  0x9e   :  { %v624_v53 = vld [vmem:[#allocation11 + $0x3a0] sm:$0xff] }
  0x9f   :  { %v616_v61 = vld [vmem:[#allocation11 + $0x360] sm:$0xff] }
  0xa0   :  { %v740_v62 = vld [vmem:[#allocation11 + $0x740] sm:$0xff] }
  0xa1   :  { %v744_v63 = vld [vmem:[#allocation11 + $0x760] sm:$0xff] }
  0xa2   :  { %v604_v4 = vld [vmem:[#allocation11 + $0x300] sm:$0xff] }
  0xa3   :  { %v608_v5 = vld [vmem:[#allocation11 + $0x320] sm:$0xff] }
  0xa4   :  { %v732_v6 = vld [vmem:[#allocation11 + $0x700] sm:$0xff] }
  0xa5   :  { %v736_v7 = vld [vmem:[#allocation11 + $0x720] sm:$0xff] }
  0xa6   :  { %v596_v12 = vld [vmem:[#allocation11 + $0x2c0] sm:$0xff] }
  0xa7   :  { %v600_v13 = vld [vmem:[#allocation11 + $0x2e0] sm:$0xff] }
  0xa8   :  { %v724_v14 = vld [vmem:[#allocation11 + $0x6c0] sm:$0xff] }
  0xa9   :  { %v728_v15 = vld [vmem:[#allocation11 + $0x6e0] sm:$0xff] }
  0xaa   :  { %v588_v20 = vld [vmem:[#allocation11 + $0x280] sm:$0xff] }
  0xab   :  { %v592_v21 = vld [vmem:[#allocation11 + $0x2a0] sm:$0xff] }
  0xac   :  { %v716_v22 = vld [vmem:[#allocation11 + $0x680] sm:$0xff]  ;;  %v5426_v28 = vcombine.low %v588_v20, %v592_v21 }
  0xad   :  { %v720_v23 = vld [vmem:[#allocation11 + $0x6a0] sm:$0xff] }
  0xae   :  { %v5554_v29 = vcombine.low %v716_v22, %v720_v23  ;;  %v572_v38 = vld [vmem:[#allocation11 + $0x200] sm:$0xff] }
  0xaf   :  { %v576_v39 = vld [vmem:[#allocation11 + $0x220] sm:$0xff] }
 0x135   :  { %v196_v47 = vpop.f32.mrf.mxu0 }
 0x136   :  { %v197_v48 = vadd.f32 %v5312_v46, %v196_v47  ;;  %v756_v46 = vld [vmem:[#allocation11 + $0x7c0] sm:$0xff] }
 0x137   :  { %v5993_v50 = vpop.f32.mrf.mxu0  ;;  %v760_v47 = vld [vmem:[#allocation11 + $0x7e0] sm:$0xff] }
 0x138   :  { %v202_v54 = vmax.f32 %v197_v48, 0.0  ;;  %v5346_v48 = vcombine.low %v508_v36, %v512_v37  ;;  %v5595_v51 = vcombine.high %v756_v46, %v760_v47 }
 0x139   :  { %v199_v55 = vpop.f32.mrf.mxu0 }
 0x13a   :  { %v203_v56 = vpack.c.bf16 %v202_v54, %v202_v54  ;;  %v748_v54 = vld [vmem:[#allocation11 + $0x780] sm:$0xff] }
 0x13b   :  { %v5994_v60 = vpop.f32.mrf.mxu0  ;;  %v752_v55 = vld [vmem:[#allocation11 + $0x7a0] sm:$0xff] }
 0x13c   :  { %451 = vmatmul.mubr.bf16.vlgmr.msra.gmra.mxu1 %v203_v56  ;;  %492 = vmatmul.mubr.bf16.vlgmr.msra.gmra.mxu0 %v203_v56  ;;  %v5587_v59 = vcombine.high %v748_v54, %v752_v55  ;;  %v612_v60 = vld [vmem:[#allocation11 + $0x340] sm:$0xff] }
 0x13d   :  { %2087 = vmatpush1.bf16.msra.mxu1 %v5402_v41  ;;  %2128 = vmatpush1.bf16.msra.mxu0 %v5530_v44  ;;  %v5482_v41 = vcombine.low %v644_v30, %v648_v31  ;;  %v628_v44 = vld [vmem:[#allocation11 + $0x3c0] sm:$0xff] }
 0x13e   :  { %2088 = vmatprep.subr.bf16.mxu1 %v5395_v57  ;;  %2129 = vmatprep.subr.bf16.mxu0 %v5523_v58  ;;  %v5467_v50 = vcombine.high %v628_v44, %v632_v45  ;;  %v5466_v56 = vcombine.low %v628_v44, %v632_v45  ;;  %v5594_v57 = vcombine.low %v756_v46, %v760_v47  ;;  %v580_v30 = vld [vmem:[#allocation11 + $0x240] sm:$0xff]  ;;  %v565_v46 = vld [vmem:[#allocation11 + $0x1c8] sm:$0xff] }
 0x13f   :  { %v5459_v58 = vcombine.high %v620_v52, %v624_v53  ;;  %v584_v31 = vld [vmem:[#allocation11 + $0x260] sm:$0xff]  ;;  %v569_v47 = vld [vmem:[#allocation11 + $0x1e8] sm:$0xff] }
 0x141   :  { %2089 = vmatpush1.bf16.msra.mxu1 %v5394_v0  ;;  %2130 = vmatpush1.bf16.msra.mxu0 %v5522_v1  ;;  %v5458_v0 = vcombine.low %v620_v52, %v624_v53  ;;  %v5586_v1 = vcombine.low %v748_v54, %v752_v55  ;;  %v238_v54 = vlaneseq }
 0x142   :  { %2090 = vmatprep.subr.bf16.mxu1 %v5387_v2  ;;  %2131 = vmatprep.subr.bf16.mxu0 %v5515_v3  ;;  %v5451_v2 = vcombine.high %v612_v60, %v616_v61  ;;  %v5579_v3 = vcombine.high %v740_v62, %v744_v63 }
 0x143   :  { %v6948_v55 = vshrl.u32 %v238_v54, 7  ;;  %v657_v54 = vld [vmem:[#allocation11 + $0x4a8] sm:$0xff] }
 0x145   :  { %2091 = vmatpush1.bf16.msra.mxu1 %v5386_v8  ;;  %2132 = vmatpush1.bf16.msra.mxu0 %v5514_v9  ;;  %v5450_v8 = vcombine.low %v612_v60, %v616_v61  ;;  %v5578_v9 = vcombine.low %v740_v62, %v744_v63  ;;  %v6960_v60 = vsub.s32 3, %v6948_v55 }
 0x146   :  { %2092 = vmatprep.subr.bf16.mxu1 %v5379_v10  ;;  %2133 = vmatprep.subr.bf16.mxu0 %v5507_v11  ;;  %v5443_v10 = vcombine.high %v604_v4, %v608_v5  ;;  %v5571_v11 = vcombine.high %v732_v6, %v736_v7 }
 0x149   :  { %2093 = vmatpush1.bf16.msra.mxu1 %v5378_v16  ;;  %2134 = vmatpush1.bf16.msra.mxu0 %v5506_v17  ;;  %v5442_v16 = vcombine.low %v604_v4, %v608_v5  ;;  %v5570_v17 = vcombine.low %v732_v6, %v736_v7 }
 0x14a   :  { %2094 = vmatprep.subr.bf16.mxu1 %v5371_v18  ;;  %2135 = vmatprep.subr.bf16.mxu0 %v5499_v19  ;;  %v5435_v18 = vcombine.high %v596_v12, %v600_v13  ;;  %v5563_v19 = vcombine.high %v724_v14, %v728_v15 }
 0x14d   :  { %2095 = vmatpush1.bf16.msra.mxu1 %v5370_v24  ;;  %2136 = vmatpush1.bf16.msra.mxu0 %v5498_v25  ;;  %v5434_v24 = vcombine.low %v596_v12, %v600_v13  ;;  %v5562_v25 = vcombine.low %v724_v14, %v728_v15  ;;  %v557_v15 = vld [vmem:[#allocation11 + $0x188] sm:$0xff] }
 0x14e   :  { %2096 = vmatprep.subr.bf16.mxu1 %v5363_v26  ;;  %2137 = vmatprep.subr.bf16.mxu0 %v5491_v27  ;;  %v5427_v26 = vcombine.high %v588_v20, %v592_v21  ;;  %v5555_v27 = vcombine.high %v716_v22, %v720_v23  ;;  %v689_v20 = vld [vmem:[#allocation11 + $0x5a8] sm:$0xff] }
 0x151   :  { %2097 = vmatpush1.bf16.msra.mxu1 %v5362_v32  ;;  %2138 = vmatpush1.bf16.msra.mxu0 %v5490_v33  ;;  %v708_v32 = vld [vmem:[#allocation11 + $0x640] sm:$0xff]  ;;  %v5419_v33 = vcombine.high %v580_v30, %v584_v31 }
 0x152   :  { %2098 = vmatprep.subr.bf16.mxu1 %v5355_v34  ;;  %2139 = vmatprep.subr.bf16.mxu0 %v5483_v35  ;;  %v712_v34 = vld [vmem:[#allocation11 + $0x660] sm:$0xff]  ;;  %v5418_v35 = vcombine.low %v580_v30, %v584_v31  ;;  %v681_v30 = vld [vmem:[#allocation11 + $0x568] sm:$0xff] }
 0x153   :  { %v5546_v36 = vcombine.low %v708_v32, %v712_v34  ;;  %v5547_v37 = vcombine.high %v708_v32, %v712_v34 }
 0x155   :  { %2099 = vmatpush1.bf16.msra.mxu1 %v5354_v40  ;;  %2140 = vmatpush1.bf16.msra.mxu0 %v5482_v41  ;;  %v700_v40 = vld [vmem:[#allocation11 + $0x600] sm:$0xff]  ;;  %v5411_v41 = vcombine.high %v572_v38, %v576_v39 }
 0x156   :  { %2100 = vmatprep.subr.bf16.mxu1 %v5347_v42  ;;  %2141 = vmatprep.subr.bf16.mxu0 %v5475_v43  ;;  %v704_v42 = vld [vmem:[#allocation11 + $0x620] sm:$0xff]  ;;  %v5410_v43 = vcombine.low %v572_v38, %v576_v39  ;;  %v673_v38 = vld [vmem:[#allocation11 + $0x528] sm:$0xff] }
 0x157   :  { %v5538_v44 = vcombine.low %v700_v40, %v704_v42  ;;  %v5539_v45 = vcombine.high %v700_v40, %v704_v42 }
 0x159   :  { %2101 = vmatpush1.bf16.msra.mxu1 %v5346_v48  ;;  %2142 = vmatpush1.bf16.msra.mxu0 %v5474_v49  ;;  %v693_v48 = vld [vmem:[#allocation11 + $0x5c8] sm:$0xff]  ;;  %v5405_v49 = vcombine.high %v565_v46, %v569_v47 }
 0x15a   :  { %2102 = vmatprep.subr.bf16.mxu1 %v5467_v50  ;;  %2143 = vmatprep.subr.bf16.mxu0 %v5595_v51  ;;  %v697_v50 = vld [vmem:[#allocation11 + $0x5e8] sm:$0xff]  ;;  %v5404_v51 = vcombine.low %v565_v46, %v569_v47 }
 0x15b   :  { %v5532_v52 = vcombine.low %v693_v48, %v697_v50  ;;  %v5533_v53 = vcombine.high %v693_v48, %v697_v50  ;;  %v665_v46 = vld [vmem:[#allocation11 + $0x4e8] sm:$0xff] }
 0x15d   :  { %2103 = vmatpush2.bf16.msra.mxu1 %v5466_v56  ;;  %2144 = vmatpush2.bf16.msra.mxu0 %v5594_v57  ;;  %v6951_v56 = vsub.s32 0, %v6948_v55  ;;  %v6954_v57 = vsub.s32 2, %v6948_v55 }
 0x15e   :  { %2104 = vmatprep.subr.bf16.mxu1 %v5459_v58  ;;  %2145 = vmatprep.subr.bf16.mxu0 %v5587_v59  ;;  %v236_v58 = vld [vmem:[#allocation10] sm:$0xf]  ;;  %v6957_v59 = vsub.s32 1, %v6948_v55 }
 0x15f   :  { %v241_v61 = vrot.slane %v236_v58, %v6951_v56  ;;  %v249_v62 = vrot.slane %v236_v58, %v6954_v57 }
 0x160   :  { %v245_v63 = vrot.slane %v236_v58, %v6957_v59 }
 0x161   :  { %2105 = vmatpush2.bf16.msra.mxu1 %v5458_v0  ;;  %2146 = vmatpush2.bf16.msra.mxu0 %v5586_v1  ;;  %v253_v0 = vrot.slane %v236_v58, %v6960_v60 }
 0x162   :  { %2106 = vmatprep.subr.bf16.mxu1 %v5451_v2  ;;  %2147 = vmatprep.subr.bf16.mxu0 %v5579_v3 }
 0x165   :  { %2107 = vmatpush2.bf16.msra.mxu1 %v5450_v8  ;;  %2148 = vmatpush2.bf16.msra.mxu0 %v5578_v9 }
 0x166   :  { %2108 = vmatprep.subr.bf16.mxu1 %v5443_v10  ;;  %2149 = vmatprep.subr.bf16.mxu0 %v5571_v11 }
 0x169   :  { %2109 = vmatpush2.bf16.msra.mxu1 %v5442_v16  ;;  %2150 = vmatpush2.bf16.msra.mxu0 %v5570_v17 }
 0x16a   :  { %2110 = vmatprep.subr.bf16.mxu1 %v5435_v18  ;;  %2151 = vmatprep.subr.bf16.mxu0 %v5563_v19  ;;  %v561_v18 = vld [vmem:[#allocation11 + $0x1a8] sm:$0xff] }
 0x16b   :  { %v685_v19 = vld [vmem:[#allocation11 + $0x588] sm:$0xff]  ;;  %v5396_v31 = vcombine.low %v557_v15, %v561_v18 }
 0x16c   :  { %v5524_v32 = vcombine.low %v685_v19, %v689_v20 }
 0x16d   :  { %2111 = vmatpush2.bf16.msra.mxu1 %v5434_v24  ;;  %2152 = vmatpush2.bf16.msra.mxu0 %v5562_v25  ;;  %v549_v25 = vld [vmem:[#allocation11 + $0x148] sm:$0xff] }
 0x16e   :  { %2112 = vmatprep.subr.bf16.mxu1 %v5427_v26  ;;  %2153 = vmatprep.subr.bf16.mxu0 %v5555_v27  ;;  %v5397_v26 = vcombine.high %v557_v15, %v561_v18  ;;  %v5525_v27 = vcombine.high %v685_v19, %v689_v20  ;;  %v757_v18 = vld [vmem:[#allocation11 + $0x7c8] sm:$0xff] }
 0x16f   :  { %v761_v19 = vld [vmem:[#allocation11 + $0x7e8] sm:$0xff] }
 0x171   :  { %2113 = vmatpush2.bf16.msra.mxu1 %v5426_v28  ;;  %2154 = vmatpush2.bf16.msra.mxu0 %v5554_v29  ;;  %v553_v28 = vld [vmem:[#allocation11 + $0x168] sm:$0xff] }
 0x172   :  { %2114 = vmatprep.subr.bf16.mxu1 %v5419_v33  ;;  %2155 = vmatprep.subr.bf16.mxu0 %v5547_v37  ;;  %v677_v29 = vld [vmem:[#allocation11 + $0x548] sm:$0xff]  ;;  %v5389_v33 = vcombine.high %v549_v25, %v553_v28  ;;  %v5388_v39 = vcombine.low %v549_v25, %v553_v28 }
 0x173   :  { %v5517_v34 = vcombine.high %v677_v29, %v681_v30  ;;  %v669_v37 = vld [vmem:[#allocation11 + $0x508] sm:$0xff]  ;;  %v5516_v40 = vcombine.low %v677_v29, %v681_v30 }
 0x174   :  { %v5509_v42 = vcombine.high %v669_v37, %v673_v38  ;;  %v5508_v48 = vcombine.low %v669_v37, %v673_v38  ;;  %v621_v28 = vld [vmem:[#allocation11 + $0x388] sm:$0xff] }
 0x175   :  { %2115 = vmatpush2.bf16.msra.mxu1 %v5418_v35  ;;  %2156 = vmatpush2.bf16.msra.mxu0 %v5546_v36  ;;  %v541_v35 = vld [vmem:[#allocation11 + $0x108] sm:$0xff] }
 0x176   :  { %2116 = vmatprep.subr.bf16.mxu1 %v5411_v41  ;;  %2157 = vmatprep.subr.bf16.mxu0 %v5539_v45  ;;  %v545_v36 = vld [vmem:[#allocation11 + $0x128] sm:$0xff] }
 0x177   :  { %v5381_v41 = vcombine.high %v541_v35, %v545_v36  ;;  %v661_v45 = vld [vmem:[#allocation11 + $0x4c8] sm:$0xff]  ;;  %v5380_v47 = vcombine.low %v541_v35, %v545_v36 }
 0x178   :  { %v5501_v50 = vcombine.high %v661_v45, %v665_v46  ;;  %v625_v29 = vld [vmem:[#allocation11 + $0x3a8] sm:$0xff] }
 0x179   :  { %2117 = vmatpush2.bf16.msra.mxu1 %v5410_v43  ;;  %2158 = vmatpush2.bf16.msra.mxu0 %v5538_v44  ;;  %v533_v43 = vld [vmem:[#allocation11 + $0xc8] sm:$0xff] }
 0x17a   :  { %2168 = vmatprep.subr.bf16.mxu1 %v5405_v49  ;;  %2209 = vmatprep.subr.bf16.mxu0 %v5533_v53  ;;  %v537_v44 = vld [vmem:[#allocation11 + $0xe8] sm:$0xff] }
 0x17b   :  { %v5373_v49 = vcombine.high %v533_v43, %v537_v44  ;;  %v653_v53 = vld [vmem:[#allocation11 + $0x488] sm:$0xff]  ;;  %v5372_v58 = vcombine.low %v533_v43, %v537_v44 }
 0x17c   :  { %v749_v30 = vld [vmem:[#allocation11 + $0x788] sm:$0xff] }
 0x17d   :  { %v613_v36 = vld [vmem:[#allocation11 + $0x348] sm:$0xff] }
 0x17e   :  { %v617_v37 = vld [vmem:[#allocation11 + $0x368] sm:$0xff] }
 0x17f   :  { %v741_v38 = vld [vmem:[#allocation11 + $0x748] sm:$0xff] }
 0x180   :  { %v605_v44 = vld [vmem:[#allocation11 + $0x308] sm:$0xff] }
 0x1fc   :  { %v452_v1 = vpop.f32.mrf.mxu1  ;;  %v493_v2 = vpop.f32.mrf.mxu0 }
 0x1fd   :  { %v453_v3 = vadd.f32 %v452_v1, %v241_v61  ;;  %v494_v4 = vadd.f32 %v493_v2, %v249_v62  ;;  %v5500_v61 = vcombine.low %v661_v45, %v665_v46  ;;  %v521_v1 = vld [vmem:[#allocation11 + $0x68] sm:$0xff] }
 0x1fe   :  { %v454_v5 = vpop.f32.mrf.mxu1  ;;  %v495_v6 = vpop.f32.mrf.mxu0  ;;  %v645_v2 = vld [vmem:[#allocation11 + $0x448] sm:$0xff] }
 0x1ff   :  { %v455_v7 = vadd.f32 %v454_v5, %v245_v63  ;;  %v496_v8 = vadd.f32 %v495_v6, %v253_v0  ;;  %v500_v9 = vmax.f32 %v453_v3, 0.0  ;;  %v502_v10 = vmax.f32 %v494_v4, 0.0  ;;  %v517_v0 = vld [vmem:[#allocation11 + $0x48] sm:$0xff] }
 0x200   :  { %v456_v11 = vpop.f32.mrf.mxu1  ;;  %v497_v12 = vpop.f32.mrf.mxu0  ;;  %v5493_v63 = vcombine.high %v653_v53, %v657_v54  ;;  %v649_v3 = vld [vmem:[#allocation11 + $0x468] sm:$0xff]  ;;  %v5492_v5 = vcombine.low %v653_v53, %v657_v54  ;;  %v5357_v6 = vcombine.high %v517_v0, %v521_v1 }
 0x201   :  { %v501_v13 = vmax.f32 %v455_v7, 0.0  ;;  %v503_v14 = vmax.f32 %v496_v8, 0.0  ;;  %v6970_v23 = vpack.c.bf16 %v500_v9, %v500_v9  ;;  %v6972_v24 = vpack.c.bf16 %v502_v10, %v502_v10  ;;  %v509_v8 = vld [vmem:[#allocation11 + $0x8] sm:$0xff] }
 0x202   :  { %v457_v16 = vpop.f32.mrf.mxu1  ;;  %v498_v17 = vpop.f32.mrf.mxu0  ;;  %v5485_v7 = vcombine.high %v645_v2, %v649_v3  ;;  %v513_v9 = vld [vmem:[#allocation11 + $0x28] sm:$0xff]  ;;  %v5356_v12 = vcombine.low %v517_v0, %v521_v1 }
 0x203   :  { %v6966_v21 = vpack.c.bf16 %v501_v13, %v501_v13  ;;  %v6968_v22 = vpack.c.bf16 %v503_v14, %v503_v14  ;;  %v637_v10 = vld [vmem:[#allocation11 + $0x408] sm:$0xff]  ;;  %v5484_v13 = vcombine.low %v645_v2, %v649_v3  ;;  %v5349_v14 = vcombine.high %v509_v8, %v513_v9 }
 0x204   :  { %v641_v11 = vld [vmem:[#allocation11 + $0x428] sm:$0xff]  ;;  %v5348_v20 = vcombine.low %v509_v8, %v513_v9 }
 0x205   :  { %2118 = vmatprep.mubr.bf16.mxu1 %v6966_v21  ;;  %2159 = vmatprep.mubr.bf16.mxu0 %v6968_v22  ;;  %v5477_v15 = vcombine.high %v637_v10, %v641_v11  ;;  %v629_v16 = vld [vmem:[#allocation11 + $0x3c8] sm:$0xff]  ;;  %v5476_v25 = vcombine.low %v637_v10, %v641_v11 }
 0x206   :  { %2119 = vmatmul.mubr.bf16.vlgmr.msra.gmra.mxu1 %v6970_v23  ;;  %2160 = vmatmul.mubr.bf16.vlgmr.msra.gmra.mxu0 %v6972_v24  ;;  %v633_v17 = vld [vmem:[#allocation11 + $0x3e8] sm:$0xff] }
 0x207   :  { %2169 = vmatpush1.bf16.msra.mxu1 %v5404_v51  ;;  %2210 = vmatpush1.bf16.msra.mxu0 %v5532_v52  ;;  %v525_v51 = vld [vmem:[#allocation11 + $0x88] sm:$0xff] }
 0x208   :  { %2200 = vmatprep.mubr.bf16.mxu1 %v6966_v21  ;;  %2241 = vmatprep.mubr.bf16.mxu0 %v6968_v22  ;;  %v529_v52 = vld [vmem:[#allocation11 + $0xa8] sm:$0xff] }
 0x209   :  { %2170 = vmatprep.subr.bf16.mxu1 %v5397_v26  ;;  %2211 = vmatprep.subr.bf16.mxu0 %v5525_v27  ;;  %v5365_v62 = vcombine.high %v525_v51, %v529_v52  ;;  %v5364_v4 = vcombine.low %v525_v51, %v529_v52  ;;  %v5469_v26 = vcombine.high %v629_v16, %v633_v17  ;;  %v609_v45 = vld [vmem:[#allocation11 + $0x328] sm:$0xff] }
 0x20a   :  { %v5597_v27 = vcombine.high %v757_v18, %v761_v19  ;;  %v733_v46 = vld [vmem:[#allocation11 + $0x708] sm:$0xff] }
 0x20b   :  { %2171 = vmatpush1.bf16.msra.mxu1 %v5396_v31  ;;  %2212 = vmatpush1.bf16.msra.mxu0 %v5524_v32  ;;  %v753_v31 = vld [vmem:[#allocation11 + $0x7a8] sm:$0xff]  ;;  %v5468_v32 = vcombine.low %v629_v16, %v633_v17 }
 0x20c   :  { %2172 = vmatprep.subr.bf16.mxu1 %v5389_v33  ;;  %2213 = vmatprep.subr.bf16.mxu0 %v5517_v34  ;;  %v5596_v33 = vcombine.low %v757_v18, %v761_v19  ;;  %v5461_v34 = vcombine.high %v621_v28, %v625_v29  ;;  %v5589_v35 = vcombine.high %v749_v30, %v753_v31  ;;  %v597_v52 = vld [vmem:[#allocation11 + $0x2c8] sm:$0xff] }
 0x20d   :  { %v601_v53 = vld [vmem:[#allocation11 + $0x2e8] sm:$0xff] }
 0x20e   :  { %v725_v54 = vld [vmem:[#allocation11 + $0x6c8] sm:$0xff] }
 0x20f   :  { %2173 = vmatpush1.bf16.msra.mxu1 %v5388_v39  ;;  %2214 = vmatpush1.bf16.msra.mxu0 %v5516_v40  ;;  %v745_v39 = vld [vmem:[#allocation11 + $0x768] sm:$0xff]  ;;  %v5460_v40 = vcombine.low %v621_v28, %v625_v29  ;;  %v566_v29 = vld [vmem:[#allocation11 + $0x1d0] sm:$0xff] }
 0x210   :  { %2174 = vmatprep.subr.bf16.mxu1 %v5381_v41  ;;  %2215 = vmatprep.subr.bf16.mxu0 %v5509_v42  ;;  %v5588_v41 = vcombine.low %v749_v30, %v753_v31  ;;  %v5453_v42 = vcombine.high %v613_v36, %v617_v37  ;;  %v5581_v43 = vcombine.high %v741_v38, %v745_v39  ;;  %v589_v1 = vld [vmem:[#allocation11 + $0x288] sm:$0xff]  ;;  %v570_v30 = vld [vmem:[#allocation11 + $0x1f0] sm:$0xff] }
 0x211   :  { %v593_v2 = vld [vmem:[#allocation11 + $0x2a8] sm:$0xff]  ;;  %v694_v31 = vld [vmem:[#allocation11 + $0x5d0] sm:$0xff] }
 0x212   :  { %v717_v3 = vld [vmem:[#allocation11 + $0x688] sm:$0xff] }
 0x213   :  { %2175 = vmatpush1.bf16.msra.mxu1 %v5380_v47  ;;  %2216 = vmatpush1.bf16.msra.mxu0 %v5508_v48  ;;  %v737_v47 = vld [vmem:[#allocation11 + $0x728] sm:$0xff]  ;;  %v5452_v48 = vcombine.low %v613_v36, %v617_v37  ;;  %v558_v37 = vld [vmem:[#allocation11 + $0x190] sm:$0xff] }
 0x214   :  { %2176 = vmatprep.subr.bf16.mxu1 %v5373_v49  ;;  %2217 = vmatprep.subr.bf16.mxu0 %v5501_v50  ;;  %v5580_v49 = vcombine.low %v741_v38, %v745_v39  ;;  %v5445_v50 = vcombine.high %v605_v44, %v609_v45  ;;  %v5573_v51 = vcombine.high %v733_v46, %v737_v47  ;;  %v581_v9 = vld [vmem:[#allocation11 + $0x248] sm:$0xff]  ;;  %v562_v38 = vld [vmem:[#allocation11 + $0x1b0] sm:$0xff] }
 0x215   :  { %v585_v10 = vld [vmem:[#allocation11 + $0x268] sm:$0xff]  ;;  %v686_v39 = vld [vmem:[#allocation11 + $0x590] sm:$0xff] }
 0x216   :  { %v709_v11 = vld [vmem:[#allocation11 + $0x648] sm:$0xff] }
 0x217   :  { %2177 = vmatpush1.bf16.msra.mxu1 %v5372_v58  ;;  %2218 = vmatpush1.bf16.msra.mxu0 %v5500_v61  ;;  %v729_v58 = vld [vmem:[#allocation11 + $0x6e8] sm:$0xff]  ;;  %v5444_v61 = vcombine.low %v605_v44, %v609_v45  ;;  %v550_v45 = vld [vmem:[#allocation11 + $0x150] sm:$0xff] }
 0x218   :  { %2178 = vmatprep.subr.bf16.mxu1 %v5365_v62  ;;  %2219 = vmatprep.subr.bf16.mxu0 %v5493_v63  ;;  %v5572_v62 = vcombine.low %v733_v46, %v737_v47  ;;  %v5437_v63 = vcombine.high %v597_v52, %v601_v53  ;;  %v5565_v0 = vcombine.high %v725_v54, %v729_v58  ;;  %v573_v17 = vld [vmem:[#allocation11 + $0x208] sm:$0xff]  ;;  %v554_v46 = vld [vmem:[#allocation11 + $0x170] sm:$0xff] }
 0x219   :  { %v577_v18 = vld [vmem:[#allocation11 + $0x228] sm:$0xff]  ;;  %v678_v47 = vld [vmem:[#allocation11 + $0x550] sm:$0xff] }
 0x21a   :  { %v701_v19 = vld [vmem:[#allocation11 + $0x608] sm:$0xff] }
 0x21b   :  { %2179 = vmatpush1.bf16.msra.mxu1 %v5364_v4  ;;  %2220 = vmatpush1.bf16.msra.mxu0 %v5492_v5  ;;  %v721_v4 = vld [vmem:[#allocation11 + $0x6a8] sm:$0xff]  ;;  %v5436_v5 = vcombine.low %v597_v52, %v601_v53  ;;  %v542_v53 = vld [vmem:[#allocation11 + $0x110] sm:$0xff] }
 0x21c   :  { %2180 = vmatprep.subr.bf16.mxu1 %v5357_v6  ;;  %2221 = vmatprep.subr.bf16.mxu0 %v5485_v7  ;;  %v5564_v6 = vcombine.low %v725_v54, %v729_v58  ;;  %v5429_v7 = vcombine.high %v589_v1, %v593_v2  ;;  %v5557_v8 = vcombine.high %v717_v3, %v721_v4  ;;  %v546_v54 = vld [vmem:[#allocation11 + $0x130] sm:$0xff] }
 0x21d   :  { %v670_v58 = vld [vmem:[#allocation11 + $0x510] sm:$0xff] }
 0x21f   :  { %2181 = vmatpush1.bf16.msra.mxu1 %v5356_v12  ;;  %2222 = vmatpush1.bf16.msra.mxu0 %v5484_v13  ;;  %v713_v12 = vld [vmem:[#allocation11 + $0x668] sm:$0xff]  ;;  %v5428_v13 = vcombine.low %v589_v1, %v593_v2  ;;  %v534_v2 = vld [vmem:[#allocation11 + $0xd0] sm:$0xff] }
 0x220   :  { %2182 = vmatprep.subr.bf16.mxu1 %v5349_v14  ;;  %2223 = vmatprep.subr.bf16.mxu0 %v5477_v15  ;;  %v5556_v14 = vcombine.low %v717_v3, %v721_v4  ;;  %v5421_v15 = vcombine.high %v581_v9, %v585_v10  ;;  %v5549_v16 = vcombine.high %v709_v11, %v713_v12  ;;  %v538_v3 = vld [vmem:[#allocation11 + $0xf0] sm:$0xff] }
 0x221   :  { %v662_v4 = vld [vmem:[#allocation11 + $0x4d0] sm:$0xff] }
 0x223   :  { %2183 = vmatpush1.bf16.msra.mxu1 %v5348_v20  ;;  %2224 = vmatpush1.bf16.msra.mxu0 %v5476_v25  ;;  %v705_v20 = vld [vmem:[#allocation11 + $0x628] sm:$0xff]  ;;  %v5420_v25 = vcombine.low %v581_v9, %v585_v10  ;;  %v526_v10 = vld [vmem:[#allocation11 + $0x90] sm:$0xff] }
 0x224   :  { %2184 = vmatprep.subr.bf16.mxu1 %v5469_v26  ;;  %2225 = vmatprep.subr.bf16.mxu0 %v5597_v27  ;;  %v5548_v26 = vcombine.low %v709_v11, %v713_v12  ;;  %v5413_v27 = vcombine.high %v573_v17, %v577_v18  ;;  %v5541_v28 = vcombine.high %v701_v19, %v705_v20  ;;  %v530_v11 = vld [vmem:[#allocation11 + $0xb0] sm:$0xff] }
 0x225   :  { %v654_v12 = vld [vmem:[#allocation11 + $0x490] sm:$0xff] }
 0x227   :  { %2185 = vmatpush2.bf16.msra.mxu1 %v5468_v32  ;;  %2226 = vmatpush2.bf16.msra.mxu0 %v5596_v33  ;;  %v698_v32 = vld [vmem:[#allocation11 + $0x5f0] sm:$0xff]  ;;  %v5412_v33 = vcombine.low %v573_v17, %v577_v18 }
 0x228   :  { %2186 = vmatprep.subr.bf16.mxu1 %v5461_v34  ;;  %2227 = vmatprep.subr.bf16.mxu0 %v5589_v35  ;;  %v5540_v34 = vcombine.low %v701_v19, %v705_v20  ;;  %v5407_v35 = vcombine.high %v566_v29, %v570_v30  ;;  %v5535_v36 = vcombine.high %v694_v31, %v698_v32  ;;  %v518_v18 = vld [vmem:[#allocation11 + $0x50] sm:$0xff] }
 0x229   :  { %v522_v19 = vld [vmem:[#allocation11 + $0x70] sm:$0xff] }
 0x22a   :  { %v646_v20 = vld [vmem:[#allocation11 + $0x450] sm:$0xff] }
 0x22b   :  { %2187 = vmatpush2.bf16.msra.mxu1 %v5460_v40  ;;  %2228 = vmatpush2.bf16.msra.mxu0 %v5588_v41  ;;  %v690_v40 = vld [vmem:[#allocation11 + $0x5b0] sm:$0xff]  ;;  %v5406_v41 = vcombine.low %v566_v29, %v570_v30 }
 0x22c   :  { %2188 = vmatprep.subr.bf16.mxu1 %v5453_v42  ;;  %2229 = vmatprep.subr.bf16.mxu0 %v5581_v43  ;;  %v5534_v42 = vcombine.low %v694_v31, %v698_v32  ;;  %v5399_v43 = vcombine.high %v558_v37, %v562_v38  ;;  %v5527_v44 = vcombine.high %v686_v39, %v690_v40  ;;  %v510_v30 = vld [vmem:[#allocation11 + $0x10] sm:$0xff] }
 0x22d   :  { %v514_v31 = vld [vmem:[#allocation11 + $0x30] sm:$0xff] }
 0x22e   :  { %v638_v32 = vld [vmem:[#allocation11 + $0x410] sm:$0xff] }
 0x22f   :  { %2189 = vmatpush2.bf16.msra.mxu1 %v5452_v48  ;;  %2230 = vmatpush2.bf16.msra.mxu0 %v5580_v49  ;;  %v682_v48 = vld [vmem:[#allocation11 + $0x570] sm:$0xff]  ;;  %v5398_v49 = vcombine.low %v558_v37, %v562_v38 }
 0x230   :  { %2190 = vmatprep.subr.bf16.mxu1 %v5445_v50  ;;  %2231 = vmatprep.subr.bf16.mxu0 %v5573_v51  ;;  %v5526_v50 = vcombine.low %v686_v39, %v690_v40  ;;  %v5391_v51 = vcombine.high %v550_v45, %v554_v46  ;;  %v5519_v52 = vcombine.high %v678_v47, %v682_v48  ;;  %v630_v38 = vld [vmem:[#allocation11 + $0x3d0] sm:$0xff] }
 0x231   :  { %v634_v39 = vld [vmem:[#allocation11 + $0x3f0] sm:$0xff] }
 0x232   :  { %v758_v40 = vld [vmem:[#allocation11 + $0x7d0] sm:$0xff] }
 0x233   :  { %2191 = vmatpush2.bf16.msra.mxu1 %v5444_v61  ;;  %2232 = vmatpush2.bf16.msra.mxu0 %v5572_v62  ;;  %v674_v61 = vld [vmem:[#allocation11 + $0x530] sm:$0xff]  ;;  %v5390_v62 = vcombine.low %v550_v45, %v554_v46 }
 0x234   :  { %2192 = vmatprep.subr.bf16.mxu1 %v5437_v63  ;;  %2233 = vmatprep.subr.bf16.mxu0 %v5565_v0  ;;  %v5518_v63 = vcombine.low %v678_v47, %v682_v48  ;;  %v5383_v0 = vcombine.high %v542_v53, %v546_v54  ;;  %v5511_v1 = vcombine.high %v670_v58, %v674_v61  ;;  %v622_v46 = vld [vmem:[#allocation11 + $0x390] sm:$0xff] }
 0x235   :  { %v626_v47 = vld [vmem:[#allocation11 + $0x3b0] sm:$0xff] }
 0x236   :  { %v750_v48 = vld [vmem:[#allocation11 + $0x790] sm:$0xff] }
 0x237   :  { %2193 = vmatpush2.bf16.msra.mxu1 %v5436_v5  ;;  %2234 = vmatpush2.bf16.msra.mxu0 %v5564_v6  ;;  %v666_v5 = vld [vmem:[#allocation11 + $0x4f0] sm:$0xff]  ;;  %v5382_v6 = vcombine.low %v542_v53, %v546_v54 }
 0x238   :  { %2194 = vmatprep.subr.bf16.mxu1 %v5429_v7  ;;  %2235 = vmatprep.subr.bf16.mxu0 %v5557_v8  ;;  %v5510_v7 = vcombine.low %v670_v58, %v674_v61  ;;  %v5375_v8 = vcombine.high %v534_v2, %v538_v3  ;;  %v5503_v9 = vcombine.high %v662_v4, %v666_v5  ;;  %v614_v54 = vld [vmem:[#allocation11 + $0x350] sm:$0xff] }
 0x239   :  { %v618_v58 = vld [vmem:[#allocation11 + $0x370] sm:$0xff] }
 0x23a   :  { %v742_v61 = vld [vmem:[#allocation11 + $0x750] sm:$0xff] }
 0x23b   :  { %2195 = vmatpush2.bf16.msra.mxu1 %v5428_v13  ;;  %2236 = vmatpush2.bf16.msra.mxu0 %v5556_v14  ;;  %v658_v13 = vld [vmem:[#allocation11 + $0x4b0] sm:$0xff]  ;;  %v5374_v14 = vcombine.low %v534_v2, %v538_v3 }
 0x23c   :  { %2196 = vmatprep.subr.bf16.mxu1 %v5421_v15  ;;  %2237 = vmatprep.subr.bf16.mxu0 %v5549_v16  ;;  %v5502_v15 = vcombine.low %v662_v4, %v666_v5  ;;  %v5367_v16 = vcombine.high %v526_v10, %v530_v11  ;;  %v5495_v17 = vcombine.high %v654_v12, %v658_v13  ;;  %v606_v3 = vld [vmem:[#allocation11 + $0x310] sm:$0xff] }
 0x23d   :  { %v610_v4 = vld [vmem:[#allocation11 + $0x330] sm:$0xff] }
 0x23e   :  { %v734_v5 = vld [vmem:[#allocation11 + $0x710] sm:$0xff] }
 0x23f   :  { %2197 = vmatpush2.bf16.msra.mxu1 %v5420_v25  ;;  %2238 = vmatpush2.bf16.msra.mxu0 %v5548_v26  ;;  %v650_v25 = vld [vmem:[#allocation11 + $0x470] sm:$0xff]  ;;  %v5366_v26 = vcombine.low %v526_v10, %v530_v11 }
 0x240   :  { %2198 = vmatprep.subr.bf16.mxu1 %v5413_v27  ;;  %2239 = vmatprep.subr.bf16.mxu0 %v5541_v28  ;;  %v5494_v27 = vcombine.low %v654_v12, %v658_v13  ;;  %v5359_v28 = vcombine.high %v518_v18, %v522_v19  ;;  %v5487_v29 = vcombine.high %v646_v20, %v650_v25  ;;  %v598_v11 = vld [vmem:[#allocation11 + $0x2d0] sm:$0xff] }
 0x241   :  { %v602_v12 = vld [vmem:[#allocation11 + $0x2f0] sm:$0xff] }
 0x242   :  { %v726_v13 = vld [vmem:[#allocation11 + $0x6d0] sm:$0xff] }
 0x243   :  { %2199 = vmatpush2.bf16.msra.mxu1 %v5412_v33  ;;  %2240 = vmatpush2.bf16.msra.mxu0 %v5540_v34  ;;  %v642_v33 = vld [vmem:[#allocation11 + $0x430] sm:$0xff]  ;;  %v5358_v34 = vcombine.low %v518_v18, %v522_v19 }
 0x244   :  { %2250 = vmatprep.subr.bf16.mxu1 %v5407_v35  ;;  %2291 = vmatprep.subr.bf16.mxu0 %v5535_v36  ;;  %v5486_v35 = vcombine.low %v646_v20, %v650_v25  ;;  %v5351_v36 = vcombine.high %v510_v30, %v514_v31  ;;  %v5479_v37 = vcombine.high %v638_v32, %v642_v33  ;;  %v590_v19 = vld [vmem:[#allocation11 + $0x290] sm:$0xff] }
 0x245   :  { %v594_v20 = vld [vmem:[#allocation11 + $0x2b0] sm:$0xff] }
 0x246   :  { %2201 = vmatmul.mubr.bf16.vlgmr.msra.gmra.mxu1 %v6970_v23  ;;  %2242 = vmatmul.mubr.bf16.vlgmr.msra.gmra.mxu0 %v6972_v24  ;;  %v718_v25 = vld [vmem:[#allocation11 + $0x690] sm:$0xff] }
 0x247   :  { %2251 = vmatpush1.bf16.msra.mxu1 %v5406_v41  ;;  %2282 = vmatprep.mubr.bf16.mxu1 %v6966_v21  ;;  %v762_v41 = vld [vmem:[#allocation11 + $0x7f0] sm:$0xff] }
 0x248   :  { %2292 = vmatpush1.bf16.msra.mxu0 %v5534_v42  ;;  %2323 = vmatprep.mubr.bf16.mxu0 %v6968_v22  ;;  %v5350_v42 = vcombine.low %v510_v30, %v514_v31  ;;  %v5599_v45 = vcombine.high %v758_v40, %v762_v41  ;;  %v582_v31 = vld [vmem:[#allocation11 + $0x250] sm:$0xff] }
 0x249   :  { %2252 = vmatprep.subr.bf16.mxu1 %v5399_v43  ;;  %2293 = vmatprep.subr.bf16.mxu0 %v5527_v44  ;;  %v5478_v43 = vcombine.low %v638_v32, %v642_v33  ;;  %v5471_v44 = vcombine.high %v630_v38, %v634_v39  ;;  %v586_v32 = vld [vmem:[#allocation11 + $0x270] sm:$0xff] }
 0x24a   :  { %v710_v33 = vld [vmem:[#allocation11 + $0x650] sm:$0xff] }
 0x24b   :  { %2253 = vmatpush1.bf16.msra.mxu1 %v5398_v49  ;;  %v754_v49 = vld [vmem:[#allocation11 + $0x7b0] sm:$0xff] }
 0x24c   :  { %2294 = vmatpush1.bf16.msra.mxu0 %v5526_v50  ;;  %2254 = vmatprep.subr.bf16.mxu1 %v5391_v51  ;;  %v5470_v50 = vcombine.low %v630_v38, %v634_v39  ;;  %v5598_v51 = vcombine.low %v758_v40, %v762_v41  ;;  %v5591_v53 = vcombine.high %v750_v48, %v754_v49  ;;  %v574_v39 = vld [vmem:[#allocation11 + $0x210] sm:$0xff] }
 0x24d   :  { %2295 = vmatprep.subr.bf16.mxu0 %v5519_v52  ;;  %v5463_v52 = vcombine.high %v622_v46, %v626_v47  ;;  %v578_v40 = vld [vmem:[#allocation11 + $0x230] sm:$0xff] }
 0x24e   :  { %v702_v41 = vld [vmem:[#allocation11 + $0x610] sm:$0xff] }
 0x24f   :  { %2255 = vmatpush1.bf16.msra.mxu1 %v5390_v62  ;;  %v746_v62 = vld [vmem:[#allocation11 + $0x770] sm:$0xff] }
 0x250   :  { %2296 = vmatpush1.bf16.msra.mxu0 %v5518_v63  ;;  %2256 = vmatprep.subr.bf16.mxu1 %v5383_v0  ;;  %v5462_v63 = vcombine.low %v622_v46, %v626_v47  ;;  %v5590_v0 = vcombine.low %v750_v48, %v754_v49  ;;  %v5583_v2 = vcombine.high %v742_v61, %v746_v62  ;;  %v567_v47 = vld [vmem:[#allocation11 + $0x1d8] sm:$0xff] }
 0x251   :  { %2297 = vmatprep.subr.bf16.mxu0 %v5511_v1  ;;  %v5455_v1 = vcombine.high %v614_v54, %v618_v58  ;;  %v571_v48 = vld [vmem:[#allocation11 + $0x1f8] sm:$0xff] }
 0x252   :  { %v695_v49 = vld [vmem:[#allocation11 + $0x5d8] sm:$0xff] }
 0x253   :  { %2257 = vmatpush1.bf16.msra.mxu1 %v5382_v6  ;;  %v738_v6 = vld [vmem:[#allocation11 + $0x730] sm:$0xff] }
 0x254   :  { %2298 = vmatpush1.bf16.msra.mxu0 %v5510_v7  ;;  %2258 = vmatprep.subr.bf16.mxu1 %v5375_v8  ;;  %v5454_v7 = vcombine.low %v614_v54, %v618_v58  ;;  %v5582_v8 = vcombine.low %v742_v61, %v746_v62  ;;  %v5575_v10 = vcombine.high %v734_v5, %v738_v6  ;;  %v559_v58 = vld [vmem:[#allocation11 + $0x198] sm:$0xff] }
 0x255   :  { %2299 = vmatprep.subr.bf16.mxu0 %v5503_v9  ;;  %v5447_v9 = vcombine.high %v606_v3, %v610_v4  ;;  %v563_v61 = vld [vmem:[#allocation11 + $0x1b8] sm:$0xff]  ;;  %v5408_v62 = vcombine.low %v567_v47, %v571_v48 }
 0x257   :  { %2259 = vmatpush1.bf16.msra.mxu1 %v5374_v14  ;;  %v730_v14 = vld [vmem:[#allocation11 + $0x6f0] sm:$0xff] }
 0x258   :  { %2300 = vmatpush1.bf16.msra.mxu0 %v5502_v15  ;;  %2260 = vmatprep.subr.bf16.mxu1 %v5367_v16  ;;  %v5446_v15 = vcombine.low %v606_v3, %v610_v4  ;;  %v5574_v16 = vcombine.low %v734_v5, %v738_v6  ;;  %v5567_v18 = vcombine.high %v726_v13, %v730_v14  ;;  %v551_v3 = vld [vmem:[#allocation11 + $0x158] sm:$0xff] }
 0x259   :  { %2301 = vmatprep.subr.bf16.mxu0 %v5495_v17  ;;  %v5439_v17 = vcombine.high %v598_v11, %v602_v12  ;;  %v555_v4 = vld [vmem:[#allocation11 + $0x178] sm:$0xff] }
 0x25a   :  { %v679_v6 = vld [vmem:[#allocation11 + $0x558] sm:$0xff] }
 0x25b   :  { %2261 = vmatpush1.bf16.msra.mxu1 %v5366_v26  ;;  %v722_v26 = vld [vmem:[#allocation11 + $0x6b0] sm:$0xff] }
 0x25c   :  { %2302 = vmatpush1.bf16.msra.mxu0 %v5494_v27  ;;  %2262 = vmatprep.subr.bf16.mxu1 %v5359_v28  ;;  %v5438_v27 = vcombine.low %v598_v11, %v602_v12  ;;  %v5566_v28 = vcombine.low %v726_v13, %v730_v14  ;;  %v5559_v30 = vcombine.high %v718_v25, %v722_v26  ;;  %v543_v12 = vld [vmem:[#allocation11 + $0x118] sm:$0xff] }
 0x25d   :  { %2303 = vmatprep.subr.bf16.mxu0 %v5487_v29  ;;  %v5431_v29 = vcombine.high %v590_v19, %v594_v20  ;;  %v547_v13 = vld [vmem:[#allocation11 + $0x138] sm:$0xff] }
 0x25e   :  { %v671_v14 = vld [vmem:[#allocation11 + $0x518] sm:$0xff] }
 0x25f   :  { %2263 = vmatpush1.bf16.msra.mxu1 %v5358_v34  ;;  %v714_v34 = vld [vmem:[#allocation11 + $0x670] sm:$0xff] }
 0x260   :  { %2304 = vmatpush1.bf16.msra.mxu0 %v5486_v35  ;;  %2264 = vmatprep.subr.bf16.mxu1 %v5351_v36  ;;  %v5430_v35 = vcombine.low %v590_v19, %v594_v20  ;;  %v5558_v36 = vcombine.low %v718_v25, %v722_v26  ;;  %v5551_v38 = vcombine.high %v710_v33, %v714_v34  ;;  %v535_v19 = vld [vmem:[#allocation11 + $0xd8] sm:$0xff] }
 0x261   :  { %2305 = vmatprep.subr.bf16.mxu0 %v5479_v37  ;;  %v5423_v37 = vcombine.high %v582_v31, %v586_v32  ;;  %v539_v20 = vld [vmem:[#allocation11 + $0xf8] sm:$0xff] }
 0x262   :  { %v663_v25 = vld [vmem:[#allocation11 + $0x4d8] sm:$0xff] }
 0x263   :  { %2265 = vmatpush1.bf16.msra.mxu1 %v5350_v42  ;;  %v706_v42 = vld [vmem:[#allocation11 + $0x630] sm:$0xff]  ;;  %v667_v26 = vld [vmem:[#allocation11 + $0x4f8] sm:$0xff] }
 0x264   :  { %2306 = vmatpush1.bf16.msra.mxu0 %v5478_v43  ;;  %2266 = vmatprep.subr.bf16.mxu1 %v5471_v44  ;;  %v5422_v43 = vcombine.low %v582_v31, %v586_v32  ;;  %v5550_v44 = vcombine.low %v710_v33, %v714_v34  ;;  %v5543_v46 = vcombine.high %v702_v41, %v706_v42  ;;  %v531_v31 = vld [vmem:[#allocation11 + $0xb8] sm:$0xff] }
 0x265   :  { %2307 = vmatprep.subr.bf16.mxu0 %v5599_v45  ;;  %v5415_v45 = vcombine.high %v574_v39, %v578_v40  ;;  %v655_v32 = vld [vmem:[#allocation11 + $0x498] sm:$0xff]  ;;  %v5376_v34 = vcombine.low %v535_v19, %v539_v20 }
 0x266   :  { %v659_v33 = vld [vmem:[#allocation11 + $0x4b8] sm:$0xff] }
 0x267   :  { %2267 = vmatpush2.bf16.msra.mxu1 %v5470_v50  ;;  %v699_v50 = vld [vmem:[#allocation11 + $0x5f8] sm:$0xff] }
 0x268   :  { %2308 = vmatpush2.bf16.msra.mxu0 %v5598_v51  ;;  %2268 = vmatprep.subr.bf16.mxu1 %v5463_v52  ;;  %v5414_v51 = vcombine.low %v574_v39, %v578_v40  ;;  %v5542_v52 = vcombine.low %v702_v41, %v706_v42  ;;  %v5537_v54 = vcombine.high %v695_v49, %v699_v50  ;;  %v523_v39 = vld [vmem:[#allocation11 + $0x78] sm:$0xff] }
 0x269   :  { %2309 = vmatprep.subr.bf16.mxu0 %v5591_v53  ;;  %v5409_v53 = vcombine.high %v567_v47, %v571_v48  ;;  %v647_v40 = vld [vmem:[#allocation11 + $0x458] sm:$0xff] }
 0x26a   :  { %v651_v41 = vld [vmem:[#allocation11 + $0x478] sm:$0xff] }
 0x26b   :  { %2269 = vmatpush2.bf16.msra.mxu1 %v5462_v63  ;;  %v687_v63 = vld [vmem:[#allocation11 + $0x598] sm:$0xff] }
 0x26c   :  { %2310 = vmatpush2.bf16.msra.mxu0 %v5590_v0  ;;  %2270 = vmatprep.subr.bf16.mxu1 %v5455_v1  ;;  %v691_v0 = vld [vmem:[#allocation11 + $0x5b8] sm:$0xff]  ;;  %v5536_v1 = vcombine.low %v695_v49, %v699_v50 }
 0x26d   :  { %2311 = vmatprep.subr.bf16.mxu0 %v5583_v2  ;;  %v5401_v2 = vcombine.high %v559_v58, %v563_v61  ;;  %v5529_v5 = vcombine.high %v687_v63, %v691_v0  ;;  %v515_v47 = vld [vmem:[#allocation11 + $0x38] sm:$0xff] }
 0x26e   :  { %v639_v48 = vld [vmem:[#allocation11 + $0x418] sm:$0xff] }
 0x26f   :  { %2271 = vmatpush2.bf16.msra.mxu1 %v5454_v7  ;;  %v683_v7 = vld [vmem:[#allocation11 + $0x578] sm:$0xff] }
 0x270   :  { %2312 = vmatpush2.bf16.msra.mxu0 %v5582_v8  ;;  %2272 = vmatprep.subr.bf16.mxu1 %v5447_v9  ;;  %v5400_v8 = vcombine.low %v559_v58, %v563_v61  ;;  %v5528_v9 = vcombine.low %v687_v63, %v691_v0  ;;  %v5521_v11 = vcombine.high %v679_v6, %v683_v7  ;;  %v643_v49 = vld [vmem:[#allocation11 + $0x438] sm:$0xff] }
 0x271   :  { %2313 = vmatprep.subr.bf16.mxu0 %v5575_v10  ;;  %v5393_v10 = vcombine.high %v551_v3, %v555_v4  ;;  %v635_v58 = vld [vmem:[#allocation11 + $0x3f8] sm:$0xff]  ;;  %v5480_v0 = vcombine.low %v639_v48, %v643_v49 }
 0x272   :  { %v759_v61 = vld [vmem:[#allocation11 + $0x7d8] sm:$0xff] }
 0x273   :  { %2273 = vmatpush2.bf16.msra.mxu1 %v5446_v15  ;;  %v675_v15 = vld [vmem:[#allocation11 + $0x538] sm:$0xff] }
 0x274   :  { %2314 = vmatpush2.bf16.msra.mxu0 %v5574_v16  ;;  %2274 = vmatprep.subr.bf16.mxu1 %v5439_v17  ;;  %v5392_v16 = vcombine.low %v551_v3, %v555_v4  ;;  %v5520_v17 = vcombine.low %v679_v6, %v683_v7  ;;  %v623_v3 = vld [vmem:[#allocation11 + $0x398] sm:$0xff] }
 0x275   :  { %2315 = vmatprep.subr.bf16.mxu0 %v5567_v18  ;;  %v5385_v18 = vcombine.high %v543_v12, %v547_v13  ;;  %v627_v4 = vld [vmem:[#allocation11 + $0x3b8] sm:$0xff] }
 0x276   :  { %v755_v6 = vld [vmem:[#allocation11 + $0x7b8] sm:$0xff] }
 0x277   :  { %2275 = vmatpush2.bf16.msra.mxu1 %v5438_v27  ;;  %v5512_v27 = vcombine.low %v671_v14, %v675_v15 }
 0x278   :  { %2316 = vmatpush2.bf16.msra.mxu0 %v5566_v28  ;;  %2276 = vmatprep.subr.bf16.mxu1 %v5431_v29  ;;  %v5377_v28 = vcombine.high %v535_v19, %v539_v20  ;;  %v5505_v29 = vcombine.high %v663_v25, %v667_v26  ;;  %v611_v19 = vld [vmem:[#allocation11 + $0x338] sm:$0xff] }
 0x279   :  { %2317 = vmatprep.subr.bf16.mxu0 %v5559_v30  ;;  %v527_v30 = vld [vmem:[#allocation11 + $0x98] sm:$0xff] }
 0x27a   :  { %v5368_v42 = vcombine.low %v527_v30, %v531_v31  ;;  %v735_v20 = vld [vmem:[#allocation11 + $0x718] sm:$0xff] }
 0x27b   :  { %2277 = vmatpush2.bf16.msra.mxu1 %v5430_v35  ;;  %v5504_v35 = vcombine.low %v663_v25, %v667_v26  ;;  %v739_v25 = vld [vmem:[#allocation11 + $0x738] sm:$0xff] }
 0x27c   :  { %2318 = vmatpush2.bf16.msra.mxu0 %v5558_v36  ;;  %2278 = vmatprep.subr.bf16.mxu1 %v5423_v37  ;;  %v5369_v36 = vcombine.high %v527_v30, %v531_v31  ;;  %v5497_v37 = vcombine.high %v655_v32, %v659_v33  ;;  %v603_v30 = vld [vmem:[#allocation11 + $0x2f8] sm:$0xff] }
 0x27d   :  { %2319 = vmatprep.subr.bf16.mxu0 %v5551_v38  ;;  %v519_v38 = vld [vmem:[#allocation11 + $0x58] sm:$0xff] }
 0x27e   :  { %v5360_v50 = vcombine.low %v519_v38, %v523_v39  ;;  %v727_v31 = vld [vmem:[#allocation11 + $0x6d8] sm:$0xff] }
 0x27f   :  { %2279 = vmatpush2.bf16.msra.mxu1 %v5422_v43  ;;  %v5496_v43 = vcombine.low %v655_v32, %v659_v33  ;;  %v731_v32 = vld [vmem:[#allocation11 + $0x6f8] sm:$0xff] }
 0x280   :  { %2320 = vmatpush2.bf16.msra.mxu0 %v5550_v44  ;;  %2280 = vmatprep.subr.bf16.mxu1 %v5415_v45  ;;  %v5361_v44 = vcombine.high %v519_v38, %v523_v39  ;;  %v5489_v45 = vcombine.high %v647_v40, %v651_v41  ;;  %v595_v38 = vld [vmem:[#allocation11 + $0x2b8] sm:$0xff] }
 0x281   :  { %2321 = vmatprep.subr.bf16.mxu0 %v5543_v46  ;;  %v511_v46 = vld [vmem:[#allocation11 + $0x18] sm:$0xff] }
 0x282   :  { %v5352_v63 = vcombine.low %v511_v46, %v515_v47  ;;  %v719_v39 = vld [vmem:[#allocation11 + $0x698] sm:$0xff] }
 0x283   :  { %2281 = vmatpush2.bf16.msra.mxu1 %v5414_v51  ;;  %v5488_v51 = vcombine.low %v647_v40, %v651_v41  ;;  %v723_v40 = vld [vmem:[#allocation11 + $0x6b8] sm:$0xff] }
 0x284   :  { %2322 = vmatpush2.bf16.msra.mxu0 %v5542_v52  ;;  %2332 = vmatprep.subr.bf16.mxu1 %v5409_v53  ;;  %v5353_v52 = vcombine.high %v511_v46, %v515_v47  ;;  %v5481_v53 = vcombine.high %v639_v48, %v643_v49  ;;  %v587_v46 = vld [vmem:[#allocation11 + $0x278] sm:$0xff] }
 0x285   :  { %2373 = vmatprep.subr.bf16.mxu0 %v5537_v54  ;;  %v631_v54 = vld [vmem:[#allocation11 + $0x3d8] sm:$0xff] }
 0x286   :  { %2283 = vmatmul.mubr.bf16.vlgmr.msra.gmra.mxu1 %v6970_v23  ;;  %v5472_v7 = vcombine.low %v631_v54, %v635_v58  ;;  %v711_v47 = vld [vmem:[#allocation11 + $0x658] sm:$0xff] }
 0x287   :  { %2324 = vmatmul.mubr.bf16.vlgmr.msra.gmra.mxu0 %v6972_v24  ;;  %2333 = vmatpush1.bf16.msra.mxu1 %v5408_v62  ;;  %v763_v62 = vld [vmem:[#allocation11 + $0x7f8] sm:$0xff] }
 0x288   :  { %2364 = vmatprep.mubr.bf16.mxu1 %v6966_v21  ;;  %2374 = vmatpush1.bf16.msra.mxu0 %v5536_v1  ;;  %v5513_v21 = vcombine.high %v671_v14, %v675_v15  ;;  %v5473_v1 = vcombine.high %v631_v54, %v635_v58  ;;  %v747_v14 = vld [vmem:[#allocation11 + $0x778] sm:$0xff]  ;;  %v5464_v15 = vcombine.low %v623_v3, %v627_v4 }
 0x289   :  { %2405 = vmatprep.mubr.bf16.mxu0 %v6968_v22  ;;  %2334 = vmatprep.subr.bf16.mxu1 %v5401_v2  ;;  %v5384_v22 = vcombine.low %v543_v12, %v547_v13  ;;  %v5601_v2 = vcombine.high %v759_v61, %v763_v62  ;;  %v619_v12 = vld [vmem:[#allocation11 + $0x378] sm:$0xff] }
 0x28a   :  { %2375 = vmatprep.subr.bf16.mxu0 %v5529_v5  ;;  %v751_v5 = vld [vmem:[#allocation11 + $0x798] sm:$0xff] }
 0x28b   :  { %2335 = vmatpush1.bf16.msra.mxu1 %v5400_v8  ;;  %v5600_v8 = vcombine.low %v759_v61, %v763_v62  ;;  %v743_v13 = vld [vmem:[#allocation11 + $0x758] sm:$0xff] }
 0x28c   :  { %2376 = vmatpush1.bf16.msra.mxu0 %v5528_v9  ;;  %2336 = vmatprep.subr.bf16.mxu1 %v5393_v10  ;;  %v5465_v9 = vcombine.high %v623_v3, %v627_v4  ;;  %v5593_v10 = vcombine.high %v751_v5, %v755_v6  ;;  %v715_v48 = vld [vmem:[#allocation11 + $0x678] sm:$0xff] }
 0x28d   :  { %2377 = vmatprep.subr.bf16.mxu0 %v5521_v11  ;;  %v615_v11 = vld [vmem:[#allocation11 + $0x358] sm:$0xff] }
 0x28e   :  { %v5456_v26 = vcombine.low %v615_v11, %v619_v12  ;;  %v579_v54 = vld [vmem:[#allocation11 + $0x238] sm:$0xff] }
 0x28f   :  { %2337 = vmatpush1.bf16.msra.mxu1 %v5392_v16  ;;  %v5592_v16 = vcombine.low %v751_v5, %v755_v6  ;;  %v703_v58 = vld [vmem:[#allocation11 + $0x618] sm:$0xff] }
 0x290   :  { %2378 = vmatpush1.bf16.msra.mxu0 %v5520_v17  ;;  %2338 = vmatprep.subr.bf16.mxu1 %v5385_v18  ;;  %v5457_v17 = vcombine.high %v615_v11, %v619_v12  ;;  %v5585_v18 = vcombine.high %v743_v13, %v747_v14  ;;  %v707_v61 = vld [vmem:[#allocation11 + $0x638] sm:$0xff]  ;;  %v6083_v11 = vld [vmem:[#allocation14 + $0x424] ss:$24 sps:$4 sm:$0xff]  }
 0x291   :  { %2379 = vmatprep.subr.bf16.mxu0 %v5513_v21  ;;  %v607_v21 = vld [vmem:[#allocation11 + $0x318] sm:$0xff]  ;;  %v5544_v3 = vcombine.low %v703_v58, %v707_v61 }
 0x292   :  { %v5448_v33 = vcombine.low %v607_v21, %v611_v19  ;;  %v6065_v4 = vld [vmem:[#allocation14 + $0x154] ss:$24 sps:$4 sm:$0xff]   ;;  %v6063_v6 = vld [vmem:[#allocation14 + $0x150] ss:$24 sps:$4 sm:$0xff]  }
 0x293   :  { %2339 = vmatpush1.bf16.msra.mxu1 %v5384_v22  ;;  %v5584_v22 = vcombine.low %v743_v13, %v747_v14  ;;  %v6077_v5 = vld [vmem:[#allocation14 + $0x454] ss:$24 sps:$4 sm:$0xff]   ;;  %v6066_v14 = vld [vmem:[#allocation14 + $0x120] ss:$24 sps:$4 sm:$0xff]  }
 0x294   :  { %2380 = vmatpush1.bf16.msra.mxu0 %v5512_v27  ;;  %2340 = vmatprep.subr.bf16.mxu1 %v5377_v28  ;;  %v5449_v27 = vcombine.high %v607_v21, %v611_v19  ;;  %v5577_v28 = vcombine.high %v735_v20, %v739_v25  ;;  %v6089_v19 = vld [vmem:[#allocation14 + $0x3f4] ss:$24 sps:$4 sm:$0xff]  }
 0x295   :  { %2381 = vmatprep.subr.bf16.mxu0 %v5505_v29  ;;  %v599_v29 = vld [vmem:[#allocation11 + $0x2d8] sm:$0xff] }
 0x296   :  { %v5440_v41 = vcombine.low %v599_v29, %v603_v30 }
 0x297   :  { %2341 = vmatpush1.bf16.msra.mxu1 %v5376_v34  ;;  %v5576_v34 = vcombine.low %v735_v20, %v739_v25 }
 0x298   :  { %2382 = vmatpush1.bf16.msra.mxu0 %v5504_v35  ;;  %2342 = vmatprep.subr.bf16.mxu1 %v5369_v36  ;;  %v5441_v35 = vcombine.high %v599_v29, %v603_v30  ;;  %v5569_v36 = vcombine.high %v727_v31, %v731_v32  ;;  %v6095_v30 = vld [vmem:[#allocation14 + $0x3c4] ss:$24 sps:$4 sm:$0xff]  }
 0x299   :  { %2383 = vmatprep.subr.bf16.mxu0 %v5497_v37  ;;  %v591_v37 = vld [vmem:[#allocation11 + $0x298] sm:$0xff] }
 0x29a   :  { %v5432_v49 = vcombine.low %v591_v37, %v595_v38 }
 0x29b   :  { %2343 = vmatpush1.bf16.msra.mxu1 %v5368_v42  ;;  %v5568_v42 = vcombine.low %v727_v31, %v731_v32  ;;  %v6072_v32 = vld [vmem:[#allocation14 + $0xc0] ss:$24 sps:$4 sm:$0xff]  }
 0x29c   :  { %2384 = vmatpush1.bf16.msra.mxu0 %v5496_v43  ;;  %2344 = vmatprep.subr.bf16.mxu1 %v5361_v44  ;;  %v5433_v43 = vcombine.high %v591_v37, %v595_v38  ;;  %v5561_v44 = vcombine.high %v719_v39, %v723_v40  ;;  %v6086_v37 = vld [vmem:[#allocation14 + $0x64] ss:$24 sps:$4 sm:$0xff]   ;;  %v6099_v38 = vld [vmem:[#allocation14 + $0x390] ss:$24 sps:$4 sm:$0xff]  }
 0x29d   :  { %2385 = vmatprep.subr.bf16.mxu0 %v5489_v45  ;;  %v583_v45 = vld [vmem:[#allocation11 + $0x258] sm:$0xff] }
 0x29e   :  { %v5424_v62 = vcombine.low %v583_v45, %v587_v46 }
 0x29f   :  { %2345 = vmatpush1.bf16.msra.mxu1 %v5360_v50  ;;  %v5560_v50 = vcombine.low %v719_v39, %v723_v40  ;;  %v6107_v39 = vld [vmem:[#allocation14 + $0x364] ss:$24 sps:$4 sm:$0xff]   ;;  %v6084_v40 = vld [vmem:[#allocation14 + $0x60] ss:$24 sps:$4 sm:$0xff]  }
 0x2a0   :  { %2386 = vmatpush1.bf16.msra.mxu0 %v5488_v51  ;;  %2346 = vmatprep.subr.bf16.mxu1 %v5353_v52  ;;  %v5425_v51 = vcombine.high %v583_v45, %v587_v46  ;;  %v5553_v52 = vcombine.high %v711_v47, %v715_v48  ;;  %v6098_v45 = vld [vmem:[#allocation14 + $0x4] ss:$24 sps:$4 sm:$0xff]   ;;  %v6111_v46 = vld [vmem:[#allocation14 + $0x330] ss:$24 sps:$4 sm:$0xff]  }
 0x2a1   :  { %2387 = vmatprep.subr.bf16.mxu0 %v5481_v53  ;;  %v575_v53 = vld [vmem:[#allocation11 + $0x218] sm:$0xff] }
 0x2a3   :  { %2347 = vmatpush1.bf16.msra.mxu1 %v5352_v63  ;;  %v5552_v63 = vcombine.low %v711_v47, %v715_v48  ;;  %v6119_v47 = vld [vmem:[#allocation14 + $0x304] ss:$24 sps:$4 sm:$0xff]   ;;  %v6096_v48 = vld [vmem:[#allocation14] ss:$24 sps:$4 sm:$0xff]  }
 0x2a4   :  { %2388 = vmatpush1.bf16.msra.mxu0 %v5480_v0  ;;  %2348 = vmatprep.subr.bf16.mxu1 %v5473_v1  ;;  %v5417_v0 = vcombine.high %v575_v53, %v579_v54  ;;  %v5545_v1 = vcombine.high %v703_v58, %v707_v61  ;;  %v6131_v58 = vld [vmem:[#allocation14 + $0x5a4] ss:$24 sps:$4 sm:$0xff]   ;;  %v6108_v61 = vld [vmem:[#allocation14 + $0x2a0] ss:$24 sps:$4 sm:$0xff]  }
 0x2a5   :  { %2389 = vmatprep.subr.bf16.mxu0 %v5601_v2  ;;  %v5416_v2 = vcombine.low %v575_v53, %v579_v54  ;;  %v6110_v53 = vld [vmem:[#allocation14 + $0x2a4] ss:$24 sps:$4 sm:$0xff]   ;;  %v6123_v54 = vld [vmem:[#allocation14 + $0x5d0] ss:$24 sps:$4 sm:$0xff]  }
 0x2a7   :  { %2349 = vmatpush2.bf16.msra.mxu1 %v5472_v7  ;;  %v6988_v7 = vld [vmem:[#allocation13] sm:$0xff] }
 0x2a8   :  { %2390 = vmatpush2.bf16.msra.mxu0 %v5600_v8  ;;  %2350 = vmatprep.subr.bf16.mxu1 %v5465_v9  ;;  %v6068_v8 = vld [vmem:[#allocation14 + $0x124] ss:$24 sps:$4 sm:$0xff]   ;;  %v6075_v9 = vld [vmem:[#allocation14 + $0x450] ss:$24 sps:$4 sm:$0xff]  }
 0x2a9   :  { %2391 = vmatprep.subr.bf16.mxu0 %v5593_v10  ;;  %v773_v10 = vrot.slane %v6988_v7, %v6957_v59 }
 0x2ab   :  { %2351 = vmatpush2.bf16.msra.mxu1 %v5464_v15 }
 0x2ac   :  { %2392 = vmatpush2.bf16.msra.mxu0 %v5592_v16  ;;  %2352 = vmatprep.subr.bf16.mxu1 %v5457_v17  ;;  %v6071_v17 = vld [vmem:[#allocation14 + $0xf4] ss:$24 sps:$4 sm:$0xff]  }
 0x2ad   :  { %2393 = vmatprep.subr.bf16.mxu0 %v5585_v18  ;;  %v6081_v18 = vld [vmem:[#allocation14 + $0x420] ss:$24 sps:$4 sm:$0xff]  }
 0x2af   :  { %2353 = vmatpush2.bf16.msra.mxu1 %v5456_v26  ;;  %v6069_v26 = vld [vmem:[#allocation14 + $0xf0] ss:$24 sps:$4 sm:$0xff]  }
 0x2b0   :  { %2394 = vmatpush2.bf16.msra.mxu0 %v5584_v22  ;;  %2354 = vmatprep.subr.bf16.mxu1 %v5449_v27 }
 0x2b1   :  { %2395 = vmatprep.subr.bf16.mxu0 %v5577_v28  ;;  %v6087_v28 = vld [vmem:[#allocation14 + $0x3f0] ss:$24 sps:$4 sm:$0xff]  }
 0x2b3   :  { %2355 = vmatpush2.bf16.msra.mxu1 %v5448_v33  ;;  %v6080_v33 = vld [vmem:[#allocation14 + $0x94] ss:$24 sps:$4 sm:$0xff]  }
 0x2b4   :  { %2396 = vmatpush2.bf16.msra.mxu0 %v5576_v34  ;;  %2356 = vmatprep.subr.bf16.mxu1 %v5441_v35  ;;  %v6093_v34 = vld [vmem:[#allocation14 + $0x3c0] ss:$24 sps:$4 sm:$0xff]   ;;  %v6101_v35 = vld [vmem:[#allocation14 + $0x394] ss:$24 sps:$4 sm:$0xff]  }
 0x2b5   :  { %2397 = vmatprep.subr.bf16.mxu0 %v5569_v36  ;;  %v6078_v36 = vld [vmem:[#allocation14 + $0x90] ss:$24 sps:$4 sm:$0xff]  }
 0x2b7   :  { %2357 = vmatpush2.bf16.msra.mxu1 %v5440_v41  ;;  %v6092_v41 = vld [vmem:[#allocation14 + $0x34] ss:$24 sps:$4 sm:$0xff]  }
 0x2b8   :  { %2398 = vmatpush2.bf16.msra.mxu0 %v5568_v42  ;;  %2358 = vmatprep.subr.bf16.mxu1 %v5433_v43  ;;  %v6105_v42 = vld [vmem:[#allocation14 + $0x360] ss:$24 sps:$4 sm:$0xff]   ;;  %v6113_v43 = vld [vmem:[#allocation14 + $0x334] ss:$24 sps:$4 sm:$0xff]  }
 0x2b9   :  { %2399 = vmatprep.subr.bf16.mxu0 %v5561_v44  ;;  %v6090_v44 = vld [vmem:[#allocation14 + $0x30] ss:$24 sps:$4 sm:$0xff]  }
 0x2bb   :  { %2359 = vmatpush2.bf16.msra.mxu1 %v5432_v49  ;;  %v6104_v49 = vld [vmem:[#allocation14 + $0x2d4] ss:$24 sps:$4 sm:$0xff]  }
 0x2bc   :  { %2400 = vmatpush2.bf16.msra.mxu0 %v5560_v50  ;;  %2360 = vmatprep.subr.bf16.mxu1 %v5425_v51  ;;  %v6117_v50 = vld [vmem:[#allocation14 + $0x300] ss:$24 sps:$4 sm:$0xff]   ;;  %v6125_v51 = vld [vmem:[#allocation14 + $0x5d4] ss:$24 sps:$4 sm:$0xff]  }
 0x2bd   :  { %2401 = vmatprep.subr.bf16.mxu0 %v5553_v52  ;;  %v6102_v52 = vld [vmem:[#allocation14 + $0x2d0] ss:$24 sps:$4 sm:$0xff]  }
 0x2bf   :  { %2361 = vmatpush2.bf16.msra.mxu1 %v5424_v62  ;;  %v6116_v62 = vld [vmem:[#allocation14 + $0x274] ss:$24 sps:$4 sm:$0xff]  }
 0x2c0   :  { %2402 = vmatpush2.bf16.msra.mxu0 %v5552_v63  ;;  %2362 = vmatprep.subr.bf16.mxu1 %v5417_v0  ;;  %v6129_v63 = vld [vmem:[#allocation14 + $0x5a0] ss:$24 sps:$4 sm:$0xff]   ;;  %v6137_v0 = vld [vmem:[#allocation14 + $0x574] ss:$24 sps:$4 sm:$0xff]  }
 0x2c1   :  { %2403 = vmatprep.subr.bf16.mxu0 %v5545_v1  ;;  %v6114_v1 = vld [vmem:[#allocation14 + $0x270] ss:$24 sps:$4 sm:$0xff]  }
 0x2c3   :  { %2363 = vmatpush2.bf16.msra.mxu1 %v5416_v2  ;;  %v6122_v2 = vld [vmem:[#allocation14 + $0x244] ss:$24 sps:$4 sm:$0xff]  }
 0x2c4   :  { %2404 = vmatpush2.bf16.msra.mxu0 %v5544_v3  ;;  %4766 = vmatprep.subr.bf16.mxu1 %v6065_v4  ;;  %v6135_v3 = vld [vmem:[#allocation14 + $0x570] ss:$24 sps:$4 sm:$0xff]   ;;  %v6143_v4 = vld [vmem:[#allocation14 + $0x544] ss:$24 sps:$4 sm:$0xff]  }
 0x2c5   :  { %4807 = vmatprep.subr.bf16.mxu0 %v6077_v5  ;;  %v6120_v5 = vld [vmem:[#allocation14 + $0x240] ss:$24 sps:$4 sm:$0xff]  }
 0x2c6   :  { %2365 = vmatmul.mubr.bf16.vlgmr.msra.gmra.mxu1 %v6970_v23  ;;  %v6993_v12 = vpop.f32.mrf.mxu1  ;;  %v6995_v13 = vpop.f32.mrf.mxu0 }
 0x2c7   :  { %2406 = vmatmul.mubr.bf16.vlgmr.msra.gmra.mxu0 %v6972_v24  ;;  %4767 = vmatpush1.bf16.msra.mxu1 %v6063_v6  ;;  %v6074_v24 = vld [vmem:[#allocation14 + $0xc4] ss:$24 sps:$4 sm:$0xff]   ;;  %v6128_v6 = vld [vmem:[#allocation14 + $0x214] ss:$24 sps:$4 sm:$0xff]  }
 0x2c8   :  { %v2122_v15 = vpop.f32.mrf.mxu1  ;;  %v2163_v16 = vpop.f32.mrf.mxu0  ;;  %4768 = vmatprep.subr.bf16.mxu1 %v6068_v8  ;;  %4808 = vmatpush1.bf16.msra.mxu0 %v6075_v9  ;;  %v6141_v8 = vld [vmem:[#allocation14 + $0x540] ss:$24 sps:$4 sm:$0xff]   ;;  %v6149_v9 = vld [vmem:[#allocation14 + $0x514] ss:$24 sps:$4 sm:$0xff]  }
 0x2c9   :  { %v2123_v21 = vadd.f32 %v2122_v15, %v773_v10  ;;  %4809 = vmatprep.subr.bf16.mxu0 %v6083_v11  ;;  %v6126_v10 = vld [vmem:[#allocation14 + $0x210] ss:$24 sps:$4 sm:$0xff]   ;;  %v769_v11 = vrot.slane %v6988_v7, %v6951_v56 }
 0x2ca   :  { %v2124_v20 = vpop.f32.mrf.mxu1  ;;  %v2165_v25 = vpop.f32.mrf.mxu0  ;;  %v6147_v15 = vld [vmem:[#allocation14 + $0x510] ss:$24 sps:$4 sm:$0xff]  }
 0x2cb   :  { %v2164_v23 = vadd.f32 %v2163_v16, %v2123_v21  ;;  %4769 = vmatpush1.bf16.msra.mxu1 %v6066_v14  ;;  %v6134_v14 = vld [vmem:[#allocation14 + $0x1e4] ss:$24 sps:$4 sm:$0xff]   ;;  %v6140_v21 = vld [vmem:[#allocation14 + $0x1b4] ss:$24 sps:$4 sm:$0xff]   ;;  %v6138_v25 = vld [vmem:[#allocation14 + $0x1b0] ss:$24 sps:$4 sm:$0xff]  }
 0x2cc   :  { %v2125_v22 = vpop.f32.mrf.mxu1  ;;  %v2166_v27 = vpop.f32.mrf.mxu0  ;;  %4770 = vmatprep.subr.bf16.mxu1 %v6071_v17  ;;  %4810 = vmatpush1.bf16.msra.mxu0 %v6081_v18  ;;  %v6152_v16 = vld [vmem:[#allocation14 + $0x4e4] ss:$24 sps:$4 sm:$0xff]   ;;  %v6132_v17 = vld [vmem:[#allocation14 + $0x1e0] ss:$24 sps:$4 sm:$0xff]   ;;  %v2121_v18 = vadd.f32 %v6993_v12, %v769_v11  ;;  %v6155_v20 = vld [vmem:[#allocation14 + $0x4b4] ss:$24 sps:$4 sm:$0xff]  }
 0x2cd   :  { %v2415_v29 = vmax.f32 %v2164_v23, 0.0  ;;  %4811 = vmatprep.subr.bf16.mxu0 %v6089_v19  ;;  %v6150_v19 = vld [vmem:[#allocation14 + $0x4e0] ss:$24 sps:$4 sm:$0xff]   ;;  %v6153_v22 = vld [vmem:[#allocation14 + $0x4b0] ss:$24 sps:$4 sm:$0xff]  }
 0x2ce   :  { %v2162_v23 = vadd.f32 %v6995_v13, %v2121_v18  ;;  %v6158_v27 = vld [vmem:[#allocation14 + $0x484] ss:$24 sps:$4 sm:$0xff]   ;;  %v6156_v12 = vld [vmem:[#allocation14 + $0x480] ss:$24 sps:$4 sm:$0xff]   ;;  %v6159_v13 = vld [vmem:[#allocation14 + $0x750] ss:$24 sps:$4 sm:$0xff]  }
 0x2cf   :  { %v6998_v31 = vpack.c.bf16 %v2415_v29, %v2415_v29  ;;  %4771 = vmatpush1.bf16.msra.mxu1 %v6069_v26  ;;  %v6146_v26 = vld [vmem:[#allocation14 + $0x184] ss:$24 sps:$4 sm:$0xff]   ;;  %v6161_v29 = vld [vmem:[#allocation14 + $0x754] ss:$24 sps:$4 sm:$0xff]   ;;  %v6225_v11 = vld [vmem:[#allocation14 + $0x9c0] ss:$24 sps:$4 sm:$0xff]  }
 0x2d0   :  { %4772 = vmatprep.subr.bf16.mxu1 %v6074_v24  ;;  %4812 = vmatpush1.bf16.msra.mxu0 %v6087_v28  ;;  %v6144_v24 = vld [vmem:[#allocation14 + $0x180] ss:$24 sps:$4 sm:$0xff]   ;;  %v2414_v28 = vmax.f32 %v2162_v23, 0.0  ;;  %v6185_v18 = vld [vmem:[#allocation14 + $0x8d4] ss:$24 sps:$4 sm:$0xff]  }
 0x2d1   :  { %4798 = vmatprep.mubr.bf16.mxu1 %v6998_v31  ;;  %4813 = vmatprep.subr.bf16.mxu0 %v6095_v30  ;;  %v6209_v30 = vld [vmem:[#allocation14 + $0xa54] ss:$24 sps:$4 sm:$0xff]  }
 0x2d2   :  { %v6245_v23 = vld [vmem:[#allocation14 + $0x934] ss:$24 sps:$4 sm:$0xff]  }
 0x2d3   :  { %4773 = vmatpush1.bf16.msra.mxu1 %v6072_v32  ;;  %v777_v32 = vrot.slane %v6988_v7, %v6954_v57 }
 0x2d4   :  { %4774 = vmatprep.subr.bf16.mxu1 %v6080_v33  ;;  %4814 = vmatpush1.bf16.msra.mxu0 %v6093_v34  ;;  %v7007_v33 = vpack.c.bf16 %v2414_v28, %v2414_v28  ;;  %v6164_v34 = vld [vmem:[#allocation14 + $0x724] ss:$24 sps:$4 sm:$0xff]   ;;  %v6189_v28 = vld [vmem:[#allocation14 + $0x870] ss:$24 sps:$4 sm:$0xff]  }
 0x2d5   :  { %4815 = vmatprep.subr.bf16.mxu0 %v6101_v35  ;;  %v781_v35 = vrot.slane %v6988_v7, %v6960_v60 }
 0x2d7   :  { %4775 = vmatpush1.bf16.msra.mxu1 %v6078_v36 }
 0x2d8   :  { %4776 = vmatprep.subr.bf16.mxu1 %v6086_v37  ;;  %4816 = vmatpush1.bf16.msra.mxu0 %v6099_v38 }
 0x2d9   :  { %4817 = vmatprep.subr.bf16.mxu0 %v6107_v39  ;;  %v6162_v39 = vld [vmem:[#allocation14 + $0x720] ss:$24 sps:$4 sm:$0xff]  }
 0x2db   :  { %4777 = vmatpush1.bf16.msra.mxu1 %v6084_v40 }
 0x2dc   :  { %4778 = vmatprep.subr.bf16.mxu1 %v6092_v41  ;;  %4818 = vmatpush1.bf16.msra.mxu0 %v6105_v42  ;;  %v6167_v42 = vld [vmem:[#allocation14 + $0x6f4] ss:$24 sps:$4 sm:$0xff]  }
 0x2dd   :  { %4819 = vmatprep.subr.bf16.mxu0 %v6113_v43 }
 0x2df   :  { %4779 = vmatpush1.bf16.msra.mxu1 %v6090_v44 }
 0x2e0   :  { %4780 = vmatprep.subr.bf16.mxu1 %v6098_v45  ;;  %4820 = vmatpush1.bf16.msra.mxu0 %v6111_v46 }
 0x2e1   :  { %4821 = vmatprep.subr.bf16.mxu0 %v6119_v47 }
 0x2e3   :  { %4781 = vmatpush1.bf16.msra.mxu1 %v6096_v48  ;;  %v6165_v48 = vld [vmem:[#allocation14 + $0x6f0] ss:$24 sps:$4 sm:$0xff]  }
 0x2e4   :  { %4782 = vmatprep.subr.bf16.mxu1 %v6104_v49  ;;  %4822 = vmatpush1.bf16.msra.mxu0 %v6117_v50 }
 0x2e5   :  { %4823 = vmatprep.subr.bf16.mxu0 %v6125_v51 }
 0x2e7   :  { %4783 = vmatpush2.bf16.msra.mxu1 %v6102_v52  ;;  %v6170_v52 = vld [vmem:[#allocation14 + $0x6c4] ss:$24 sps:$4 sm:$0xff]  }
 0x2e8   :  { %4784 = vmatprep.subr.bf16.mxu1 %v6110_v53  ;;  %4824 = vmatpush2.bf16.msra.mxu0 %v6123_v54 }
 0x2e9   :  { %4825 = vmatprep.subr.bf16.mxu0 %v6131_v58  ;;  %v6168_v58 = vld [vmem:[#allocation14 + $0x6c0] ss:$24 sps:$4 sm:$0xff]  }
 0x2eb   :  { %4785 = vmatpush2.bf16.msra.mxu1 %v6108_v61  ;;  %v6207_v61 = vld [vmem:[#allocation14 + $0xa50] ss:$24 sps:$4 sm:$0xff]  }
 0x2ec   :  { %4786 = vmatprep.subr.bf16.mxu1 %v6116_v62  ;;  %4826 = vmatpush2.bf16.msra.mxu0 %v6129_v63  ;;  %v6173_v63 = vld [vmem:[#allocation14 + $0x694] ss:$24 sps:$4 sm:$0xff]  }
 0x2ed   :  { %4827 = vmatprep.subr.bf16.mxu0 %v6137_v0  ;;  %v6215_v0 = vld [vmem:[#allocation14 + $0xa24] ss:$24 sps:$4 sm:$0xff]  }
 0x2ef   :  { %4787 = vmatpush2.bf16.msra.mxu1 %v6114_v1  ;;  %v6171_v1 = vld [vmem:[#allocation14 + $0x690] ss:$24 sps:$4 sm:$0xff]  }
 0x2f0   :  { %4788 = vmatprep.subr.bf16.mxu1 %v6122_v2  ;;  %4828 = vmatpush2.bf16.msra.mxu0 %v6135_v3  ;;  %v6213_v2 = vld [vmem:[#allocation14 + $0xa20] ss:$24 sps:$4 sm:$0xff]   ;;  %v6176_v3 = vld [vmem:[#allocation14 + $0x664] ss:$24 sps:$4 sm:$0xff]  }
 0x2f1   :  { %4829 = vmatprep.subr.bf16.mxu0 %v6143_v4  ;;  %v6221_v4 = vld [vmem:[#allocation14 + $0x9f4] ss:$24 sps:$4 sm:$0xff]  }
 0x2f3   :  { %4789 = vmatpush2.bf16.msra.mxu1 %v6120_v5  ;;  %v6174_v5 = vld [vmem:[#allocation14 + $0x660] ss:$24 sps:$4 sm:$0xff]  }
 0x2f4   :  { %4790 = vmatprep.subr.bf16.mxu1 %v6128_v6  ;;  %4830 = vmatpush2.bf16.msra.mxu0 %v6141_v8  ;;  %v6219_v6 = vld [vmem:[#allocation14 + $0x9f0] ss:$24 sps:$4 sm:$0xff]   ;;  %v6179_v8 = vld [vmem:[#allocation14 + $0x634] ss:$24 sps:$4 sm:$0xff]  }
 0x2f5   :  { %4831 = vmatprep.subr.bf16.mxu0 %v6149_v9  ;;  %v6227_v9 = vld [vmem:[#allocation14 + $0x9c4] ss:$24 sps:$4 sm:$0xff]  }
 0x2f7   :  { %4791 = vmatpush2.bf16.msra.mxu1 %v6126_v10  ;;  %v6177_v10 = vld [vmem:[#allocation14 + $0x630] ss:$24 sps:$4 sm:$0xff]  }
 0x2f8   :  { %4792 = vmatprep.subr.bf16.mxu1 %v6134_v14  ;;  %4832 = vmatpush2.bf16.msra.mxu0 %v6147_v15  ;;  %v6182_v14 = vld [vmem:[#allocation14 + $0x604] ss:$24 sps:$4 sm:$0xff]   ;;  %v6233_v15 = vld [vmem:[#allocation14 + $0x994] ss:$24 sps:$4 sm:$0xff]  }
 0x2f9   :  { %4833 = vmatprep.subr.bf16.mxu0 %v6152_v16  ;;  %v6180_v16 = vld [vmem:[#allocation14 + $0x600] ss:$24 sps:$4 sm:$0xff]  }
 0x2fb   :  { %4793 = vmatpush2.bf16.msra.mxu1 %v6132_v17  ;;  %v6231_v17 = vld [vmem:[#allocation14 + $0x990] ss:$24 sps:$4 sm:$0xff]  }
 0x2fc   :  { %4794 = vmatprep.subr.bf16.mxu1 %v6140_v21  ;;  %4834 = vmatpush2.bf16.msra.mxu0 %v6150_v19  ;;  %v6239_v21 = vld [vmem:[#allocation14 + $0x964] ss:$24 sps:$4 sm:$0xff]   ;;  %v6183_v19 = vld [vmem:[#allocation14 + $0x8d0] ss:$24 sps:$4 sm:$0xff]  }
 0x2fd   :  { %4835 = vmatprep.subr.bf16.mxu0 %v6155_v20  ;;  %v6237_v20 = vld [vmem:[#allocation14 + $0x960] ss:$24 sps:$4 sm:$0xff]  }
 0x2ff   :  { %4795 = vmatpush2.bf16.msra.mxu1 %v6138_v25  ;;  %v6188_v25 = vld [vmem:[#allocation14 + $0x8a4] ss:$24 sps:$4 sm:$0xff]  }
 0x300   :  { %4796 = vmatprep.subr.bf16.mxu1 %v6146_v26  ;;  %4836 = vmatpush2.bf16.msra.mxu0 %v6153_v22  ;;  %v6186_v26 = vld [vmem:[#allocation14 + $0x8a0] ss:$24 sps:$4 sm:$0xff]   ;;  %v6243_v22 = vld [vmem:[#allocation14 + $0x930] ss:$24 sps:$4 sm:$0xff]  }
 0x301   :  { %4837 = vmatprep.subr.bf16.mxu0 %v6158_v27  ;;  %v6191_v27 = vld [vmem:[#allocation14 + $0x874] ss:$24 sps:$4 sm:$0xff]  }
 0x303   :  { %4797 = vmatpush2.bf16.msra.mxu1 %v6144_v24  ;;  %v6251_v24 = vld [vmem:[#allocation14 + $0x904] ss:$24 sps:$4 sm:$0xff]  }
 0x304   :  { %4838 = vmatpush2.bf16.msra.mxu0 %v6156_v12  ;;  %4848 = vmatprep.subr.bf16.mxu1 %v6161_v29  ;;  %v6249_v12 = vld [vmem:[#allocation14 + $0x900] ss:$24 sps:$4 sm:$0xff]   ;;  %v6194_v29 = vld [vmem:[#allocation14 + $0x844] ss:$24 sps:$4 sm:$0xff]  }
 0x305   :  { %4889 = vmatprep.subr.bf16.mxu0 %v6209_v30  ;;  %v6257_v30 = vld [vmem:[#allocation14 + $0xbd4] ss:$24 sps:$4 sm:$0xff]  }
 0x306   :  { %v2202_v36 = vpop.f32.mrf.mxu1  ;;  %v2243_v37 = vpop.f32.mrf.mxu0  ;;  %4799 = vmatmul.mubr.bf16.vlgmr.msra.gmra.mxu1 %v7007_v33 }
 0x307   :  { %v2203_v38 = vadd.f32 %v2202_v36, %v777_v32  ;;  %4849 = vmatpush1.bf16.msra.mxu1 %v6159_v13  ;;  %v6192_v32 = vld [vmem:[#allocation14 + $0x840] ss:$24 sps:$4 sm:$0xff]   ;;  %v6255_v13 = vld [vmem:[#allocation14 + $0xbd0] ss:$24 sps:$4 sm:$0xff]  }
 0x308   :  { %v2204_v40 = vpop.f32.mrf.mxu1  ;;  %v2245_v41 = vpop.f32.mrf.mxu0  ;;  %4850 = vmatprep.subr.bf16.mxu1 %v6164_v34  ;;  %v6197_v34 = vld [vmem:[#allocation14 + $0x814] ss:$24 sps:$4 sm:$0xff]   ;;  %v6195_v36 = vld [vmem:[#allocation14 + $0x810] ss:$24 sps:$4 sm:$0xff]  }
 0x309   :  { %v2244_v43 = vadd.f32 %v2243_v37, %v2203_v38  ;;  %v2205_v44 = vadd.f32 %v2204_v40, %v781_v35  ;;  %v6263_v35 = vld [vmem:[#allocation14 + $0xba4] ss:$24 sps:$4 sm:$0xff]   ;;  %v6261_v37 = vld [vmem:[#allocation14 + $0xba0] ss:$24 sps:$4 sm:$0xff]  }
 0x30a   :  { %v2206_v45 = vpop.f32.mrf.mxu1  ;;  %v2247_v46 = vpop.f32.mrf.mxu0  ;;  %v6200_v38 = vld [vmem:[#allocation14 + $0x7e4] ss:$24 sps:$4 sm:$0xff]   ;;  %v6198_v40 = vld [vmem:[#allocation14 + $0x7e0] ss:$24 sps:$4 sm:$0xff]  }
 0x30b   :  { %v2246_v47 = vadd.f32 %v2245_v41, %v2205_v44  ;;  %4851 = vmatpush1.bf16.msra.mxu1 %v6162_v39  ;;  %v2416_v49 = vmax.f32 %v2244_v43, 0.0  ;;  %v6269_v39 = vld [vmem:[#allocation14 + $0xb74] ss:$24 sps:$4 sm:$0xff]   ;;  %v6267_v41 = vld [vmem:[#allocation14 + $0xb70] ss:$24 sps:$4 sm:$0xff]  }
 0x30c   :  { %v2207_v50 = vpop.f32.mrf.mxu1  ;;  %v2248_v51 = vpop.f32.mrf.mxu0  ;;  %4852 = vmatprep.subr.bf16.mxu1 %v6167_v42  ;;  %v6203_v42 = vld [vmem:[#allocation14 + $0x7b4] ss:$24 sps:$4 sm:$0xff]   ;;  %v6275_v43 = vld [vmem:[#allocation14 + $0xb44] ss:$24 sps:$4 sm:$0xff]   ;;  %v6201_v44 = vld [vmem:[#allocation14 + $0x7b0] ss:$24 sps:$4 sm:$0xff]  }
 0x30d   :  { %v2417_v53 = vmax.f32 %v2246_v47, 0.0  ;;  %v7014_v62 = vpack.c.bf16 %v2416_v49, %v2416_v49  ;;  %v6273_v45 = vld [vmem:[#allocation14 + $0xb40] ss:$24 sps:$4 sm:$0xff]   ;;  %v6206_v46 = vld [vmem:[#allocation14 + $0x784] ss:$24 sps:$4 sm:$0xff]  }
 0x30e   :  { %v6281_v47 = vld [vmem:[#allocation14 + $0xb14] ss:$24 sps:$4 sm:$0xff]   ;;  %v6204_v49 = vld [vmem:[#allocation14 + $0x780] ss:$24 sps:$4 sm:$0xff]   ;;  %v6279_v50 = vld [vmem:[#allocation14 + $0xb10] ss:$24 sps:$4 sm:$0xff]  }
 0x30f   :  { %v7012_v54 = vpack.c.bf16 %v2417_v53, %v2417_v53  ;;  %4853 = vmatpush1.bf16.msra.mxu1 %v6165_v48  ;;  %v784_v48 = vsub.s32 4, %v6948_v55  ;;  %v6212_v51 = vld [vmem:[#allocation14 + $0x15c] ss:$24 sps:$4 sm:$0xff]   ;;  %v788_v53 = vsub.s32 5, %v6948_v55 }
 0x310   :  { %4854 = vmatprep.subr.bf16.mxu1 %v6170_v52  ;;  %v6287_v52 = vld [vmem:[#allocation14 + $0xae4] ss:$24 sps:$4 sm:$0xff]  }
 0x311   :  { %4839 = vmatprep.mubr.bf16.mxu0 %v7012_v54 }
 0x312   :  { %4840 = vmatmul.mubr.bf16.vlgmr.msra.gmra.mxu0 %v7014_v62 }
 0x313   :  { %4855 = vmatpush1.bf16.msra.mxu1 %v6168_v58  ;;  %4890 = vmatpush1.bf16.msra.mxu0 %v6207_v61  ;;  %v785_v58 = vrot.slane %v6988_v7, %v784_v48  ;;  %v6285_v61 = vld [vmem:[#allocation14 + $0xae0] ss:$24 sps:$4 sm:$0xff]  }
 0x314   :  { %4856 = vmatprep.subr.bf16.mxu1 %v6173_v63  ;;  %4891 = vmatprep.subr.bf16.mxu0 %v6215_v0  ;;  %v6293_v63 = vld [vmem:[#allocation14 + $0xab4] ss:$24 sps:$4 sm:$0xff]   ;;  %v789_v0 = vrot.slane %v6988_v7, %v788_v53 }
 0x317   :  { %4857 = vmatpush1.bf16.msra.mxu1 %v6171_v1  ;;  %4892 = vmatpush1.bf16.msra.mxu0 %v6213_v2 }
 0x318   :  { %4858 = vmatprep.subr.bf16.mxu1 %v6176_v3  ;;  %4893 = vmatprep.subr.bf16.mxu0 %v6221_v4  ;;  %v6291_v4 = vld [vmem:[#allocation14 + $0xab0] ss:$24 sps:$4 sm:$0xff]  }
 0x31b   :  { %4859 = vmatpush1.bf16.msra.mxu1 %v6174_v5  ;;  %4894 = vmatpush1.bf16.msra.mxu0 %v6219_v6  ;;  %v6299_v6 = vld [vmem:[#allocation14 + $0xa84] ss:$24 sps:$4 sm:$0xff]  }
 0x31c   :  { %4860 = vmatprep.subr.bf16.mxu1 %v6179_v8  ;;  %4895 = vmatprep.subr.bf16.mxu0 %v6227_v9 }
 0x31f   :  { %4861 = vmatpush1.bf16.msra.mxu1 %v6177_v10  ;;  %4896 = vmatpush1.bf16.msra.mxu0 %v6225_v11 }
 0x320   :  { %4862 = vmatprep.subr.bf16.mxu1 %v6182_v14  ;;  %4897 = vmatprep.subr.bf16.mxu0 %v6233_v15 }
 0x323   :  { %4863 = vmatpush1.bf16.msra.mxu1 %v6180_v16  ;;  %4898 = vmatpush1.bf16.msra.mxu0 %v6231_v17  ;;  %v6297_v16 = vld [vmem:[#allocation14 + $0xa80] ss:$24 sps:$4 sm:$0xff]  }
 0x324   :  { %4864 = vmatprep.subr.bf16.mxu1 %v6185_v18  ;;  %4899 = vmatprep.subr.bf16.mxu0 %v6239_v21  ;;  %v6305_v21 = vld [vmem:[#allocation14 + $0x45c] ss:$24 sps:$4 sm:$0xff]  }
 0x327   :  { %4865 = vmatpush2.bf16.msra.mxu1 %v6183_v19  ;;  %4900 = vmatpush1.bf16.msra.mxu0 %v6237_v20 }
 0x328   :  { %4866 = vmatprep.subr.bf16.mxu1 %v6188_v25  ;;  %4901 = vmatprep.subr.bf16.mxu0 %v6245_v23  ;;  %v6210_v23 = vld [vmem:[#allocation14 + $0x158] ss:$24 sps:$4 sm:$0xff]  }
 0x32b   :  { %4867 = vmatpush2.bf16.msra.mxu1 %v6186_v26  ;;  %4902 = vmatpush1.bf16.msra.mxu0 %v6243_v22  ;;  %v6218_v22 = vld [vmem:[#allocation14 + $0x12c] ss:$24 sps:$4 sm:$0xff]  }
 0x32c   :  { %4868 = vmatprep.subr.bf16.mxu1 %v6191_v27  ;;  %4903 = vmatprep.subr.bf16.mxu0 %v6251_v24  ;;  %v6216_v27 = vld [vmem:[#allocation14 + $0x128] ss:$24 sps:$4 sm:$0xff]   ;;  %v6224_v24 = vld [vmem:[#allocation14 + $0xfc] ss:$24 sps:$4 sm:$0xff]  }
 0x32f   :  { %4869 = vmatpush2.bf16.msra.mxu1 %v6189_v28  ;;  %4904 = vmatpush1.bf16.msra.mxu0 %v6249_v12  ;;  %v6222_v28 = vld [vmem:[#allocation14 + $0xf8] ss:$24 sps:$4 sm:$0xff]   ;;  %v6230_v12 = vld [vmem:[#allocation14 + $0xcc] ss:$24 sps:$4 sm:$0xff]  }
 0x330   :  { %4870 = vmatprep.subr.bf16.mxu1 %v6194_v29  ;;  %4905 = vmatprep.subr.bf16.mxu0 %v6257_v30  ;;  %v6228_v29 = vld [vmem:[#allocation14 + $0xc8] ss:$24 sps:$4 sm:$0xff]   ;;  %v6236_v30 = vld [vmem:[#allocation14 + $0x9c] ss:$24 sps:$4 sm:$0xff]  }
 0x333   :  { %4871 = vmatpush2.bf16.msra.mxu1 %v6192_v32  ;;  %4906 = vmatpush2.bf16.msra.mxu0 %v6255_v13  ;;  %v6234_v32 = vld [vmem:[#allocation14 + $0x98] ss:$24 sps:$4 sm:$0xff]   ;;  %v6242_v13 = vld [vmem:[#allocation14 + $0x6c] ss:$24 sps:$4 sm:$0xff]  }
 0x334   :  { %4872 = vmatprep.subr.bf16.mxu1 %v6197_v34  ;;  %4907 = vmatprep.subr.bf16.mxu0 %v6263_v35  ;;  %v6240_v34 = vld [vmem:[#allocation14 + $0x68] ss:$24 sps:$4 sm:$0xff]   ;;  %v6248_v35 = vld [vmem:[#allocation14 + $0x3c] ss:$24 sps:$4 sm:$0xff]  }
 0x337   :  { %4873 = vmatpush2.bf16.msra.mxu1 %v6195_v36  ;;  %4908 = vmatpush2.bf16.msra.mxu0 %v6261_v37  ;;  %v6246_v36 = vld [vmem:[#allocation14 + $0x38] ss:$24 sps:$4 sm:$0xff]   ;;  %v6254_v37 = vld [vmem:[#allocation14 + $0xc] ss:$24 sps:$4 sm:$0xff]  }
 0x338   :  { %4874 = vmatprep.subr.bf16.mxu1 %v6200_v38  ;;  %4909 = vmatprep.subr.bf16.mxu0 %v6269_v39  ;;  %v6252_v38 = vld [vmem:[#allocation14 + $0x8] ss:$24 sps:$4 sm:$0xff]   ;;  %v6260_v39 = vld [vmem:[#allocation14 + $0x2dc] ss:$24 sps:$4 sm:$0xff]  }
 0x33b   :  { %4875 = vmatpush2.bf16.msra.mxu1 %v6198_v40  ;;  %4910 = vmatpush2.bf16.msra.mxu0 %v6267_v41  ;;  %v6258_v40 = vld [vmem:[#allocation14 + $0x2d8] ss:$24 sps:$4 sm:$0xff]   ;;  %v6266_v41 = vld [vmem:[#allocation14 + $0x2ac] ss:$24 sps:$4 sm:$0xff]  }
 0x33c   :  { %4876 = vmatprep.subr.bf16.mxu1 %v6203_v42  ;;  %4911 = vmatprep.subr.bf16.mxu0 %v6275_v43  ;;  %v6264_v42 = vld [vmem:[#allocation14 + $0x2a8] ss:$24 sps:$4 sm:$0xff]   ;;  %v6272_v43 = vld [vmem:[#allocation14 + $0x27c] ss:$24 sps:$4 sm:$0xff]  }
 0x33f   :  { %4877 = vmatpush2.bf16.msra.mxu1 %v6201_v44  ;;  %4912 = vmatpush2.bf16.msra.mxu0 %v6273_v45  ;;  %v6270_v44 = vld [vmem:[#allocation14 + $0x278] ss:$24 sps:$4 sm:$0xff]   ;;  %v6278_v45 = vld [vmem:[#allocation14 + $0x24c] ss:$24 sps:$4 sm:$0xff]  }
 0x340   :  { %4878 = vmatprep.subr.bf16.mxu1 %v6206_v46  ;;  %4913 = vmatprep.subr.bf16.mxu0 %v6281_v47  ;;  %v6276_v46 = vld [vmem:[#allocation14 + $0x248] ss:$24 sps:$4 sm:$0xff]   ;;  %v6284_v47 = vld [vmem:[#allocation14 + $0x21c] ss:$24 sps:$4 sm:$0xff]  }
 0x343   :  { %4879 = vmatpush2.bf16.msra.mxu1 %v6204_v49  ;;  %4914 = vmatpush2.bf16.msra.mxu0 %v6279_v50  ;;  %v6282_v49 = vld [vmem:[#allocation14 + $0x218] ss:$24 sps:$4 sm:$0xff]   ;;  %v792_v50 = vsub.s32 6, %v6948_v55 }
 0x344   :  { %4930 = vmatprep.subr.bf16.mxu1 %v6212_v51  ;;  %4915 = vmatprep.subr.bf16.mxu0 %v6287_v52  ;;  %v6290_v51 = vld [vmem:[#allocation14 + $0x1ec] ss:$24 sps:$4 sm:$0xff]   ;;  %v796_v52 = vsub.s32 7, %v6948_v55 }
 0x346   :  { %v2284_v1 = vpop.f32.mrf.mxu1 }
 0x347   :  { %v2285_v2 = vadd.f32 %v2284_v1, %v785_v58  ;;  %v2325_v3 = vpop.f32.mrf.mxu0  ;;  %4916 = vmatpush2.bf16.msra.mxu0 %v6285_v61  ;;  %v6288_v58 = vld [vmem:[#allocation14 + $0x1e8] ss:$24 sps:$4 sm:$0xff]   ;;  %v793_v61 = vrot.slane %v6988_v7, %v792_v50  ;;  %v6339_v50 = vld [vmem:[#allocation14 + $0x338] ss:$24 sps:$4 sm:$0xff]  }
 0x348   :  { %v2286_v5 = vpop.f32.mrf.mxu1  ;;  %4917 = vmatprep.subr.bf16.mxu0 %v6293_v63  ;;  %v6296_v63 = vld [vmem:[#allocation14 + $0x1bc] ss:$24 sps:$4 sm:$0xff]  }
 0x349   :  { %v2326_v8 = vadd.f32 %v2325_v3, %v2285_v2  ;;  %v2287_v9 = vadd.f32 %v2286_v5, %v789_v0  ;;  %v2327_v10 = vpop.f32.mrf.mxu0  ;;  %v797_v0 = vrot.slane %v6988_v7, %v796_v52  ;;  %v6308_v7 = vld [vmem:[#allocation14 + $0x75c] ss:$24 sps:$4 sm:$0xff]   ;;  %v6347_v52 = vld [vmem:[#allocation14 + $0x30c] ss:$24 sps:$4 sm:$0xff]  }
 0x34a   :  { %v2288_v11 = vpop.f32.mrf.mxu1 }
 0x34b   :  { %v2328_v14 = vadd.f32 %v2327_v10, %v2287_v9  ;;  %v2329_v15 = vpop.f32.mrf.mxu0  ;;  %4918 = vmatpush2.bf16.msra.mxu0 %v6291_v4  ;;  %v2418_v17 = vmax.f32 %v2326_v8, 0.0  ;;  %v6294_v4 = vld [vmem:[#allocation14 + $0x1b8] ss:$24 sps:$4 sm:$0xff]  }
 0x34c   :  { %v2289_v18 = vpop.f32.mrf.mxu1  ;;  %4919 = vmatprep.subr.bf16.mxu0 %v6299_v6  ;;  %v6302_v6 = vld [vmem:[#allocation14 + $0x18c] ss:$24 sps:$4 sm:$0xff]  }
 0x34d   :  { %v2419_v19 = vmax.f32 %v2328_v14, 0.0  ;;  %v2330_v20 = vpop.f32.mrf.mxu0  ;;  %v7028_v26 = vpack.c.bf16 %v2418_v17, %v2418_v17 }
 0x34f   :  { %v7026_v25 = vpack.c.bf16 %v2419_v19, %v2419_v19  ;;  %4920 = vmatpush2.bf16.msra.mxu0 %v6297_v16  ;;  %v6300_v16 = vld [vmem:[#allocation14 + $0x188] ss:$24 sps:$4 sm:$0xff]  }
 0x350   :  { %4971 = vmatprep.subr.bf16.mxu0 %v6305_v21 }
 0x351   :  { %4880 = vmatprep.mubr.bf16.mxu1 %v7026_v25 }
 0x352   :  { %4881 = vmatmul.mubr.bf16.vlgmr.msra.gmra.mxu1 %v7028_v26 }
 0x353   :  { %4931 = vmatpush1.bf16.msra.mxu1 %v6210_v23  ;;  %4962 = vmatprep.mubr.bf16.mxu1 %v6998_v31  ;;  %v6303_v23 = vld [vmem:[#allocation14 + $0x458] ss:$24 sps:$4 sm:$0xff]  }
 0x354   :  { %4932 = vmatprep.subr.bf16.mxu1 %v6218_v22  ;;  %v6306_v22 = vld [vmem:[#allocation14 + $0x758] ss:$24 sps:$4 sm:$0xff]  }
 0x357   :  { %4933 = vmatpush1.bf16.msra.mxu1 %v6216_v27 }
 0x358   :  { %4934 = vmatprep.subr.bf16.mxu1 %v6224_v24  ;;  %v6311_v24 = vld [vmem:[#allocation14 + $0x42c] ss:$24 sps:$4 sm:$0xff]  }
 0x35b   :  { %4935 = vmatpush1.bf16.msra.mxu1 %v6222_v28  ;;  %v6314_v28 = vld [vmem:[#allocation14 + $0x72c] ss:$24 sps:$4 sm:$0xff]  }
 0x35c   :  { %4936 = vmatprep.subr.bf16.mxu1 %v6230_v12  ;;  %v6309_v12 = vld [vmem:[#allocation14 + $0x428] ss:$24 sps:$4 sm:$0xff]  }
 0x35f   :  { %4937 = vmatpush1.bf16.msra.mxu1 %v6228_v29  ;;  %v6312_v29 = vld [vmem:[#allocation14 + $0x728] ss:$24 sps:$4 sm:$0xff]  }
 0x360   :  { %4938 = vmatprep.subr.bf16.mxu1 %v6236_v30  ;;  %v6317_v30 = vld [vmem:[#allocation14 + $0x3fc] ss:$24 sps:$4 sm:$0xff]  }
 0x363   :  { %4939 = vmatpush1.bf16.msra.mxu1 %v6234_v32  ;;  %v6320_v32 = vld [vmem:[#allocation14 + $0x6fc] ss:$24 sps:$4 sm:$0xff]  }
 0x364   :  { %4940 = vmatprep.subr.bf16.mxu1 %v6242_v13  ;;  %v6315_v13 = vld [vmem:[#allocation14 + $0x3f8] ss:$24 sps:$4 sm:$0xff]  }
 0x367   :  { %4941 = vmatpush1.bf16.msra.mxu1 %v6240_v34  ;;  %v6318_v34 = vld [vmem:[#allocation14 + $0x6f8] ss:$24 sps:$4 sm:$0xff]  }
 0x368   :  { %4942 = vmatprep.subr.bf16.mxu1 %v6248_v35  ;;  %v6323_v35 = vld [vmem:[#allocation14 + $0x3cc] ss:$24 sps:$4 sm:$0xff]  }
 0x36b   :  { %4943 = vmatpush1.bf16.msra.mxu1 %v6246_v36  ;;  %v6326_v36 = vld [vmem:[#allocation14 + $0x6cc] ss:$24 sps:$4 sm:$0xff]  }
 0x36c   :  { %4944 = vmatprep.subr.bf16.mxu1 %v6254_v37  ;;  %v6321_v37 = vld [vmem:[#allocation14 + $0x3c8] ss:$24 sps:$4 sm:$0xff]  }
 0x36f   :  { %4945 = vmatpush1.bf16.msra.mxu1 %v6252_v38  ;;  %v6324_v38 = vld [vmem:[#allocation14 + $0x6c8] ss:$24 sps:$4 sm:$0xff]  }
 0x370   :  { %4946 = vmatprep.subr.bf16.mxu1 %v6260_v39  ;;  %v6329_v39 = vld [vmem:[#allocation14 + $0x39c] ss:$24 sps:$4 sm:$0xff]  }
 0x373   :  { %4947 = vmatpush2.bf16.msra.mxu1 %v6258_v40  ;;  %v6332_v40 = vld [vmem:[#allocation14 + $0x69c] ss:$24 sps:$4 sm:$0xff]  }
 0x374   :  { %4948 = vmatprep.subr.bf16.mxu1 %v6266_v41  ;;  %v6327_v41 = vld [vmem:[#allocation14 + $0x398] ss:$24 sps:$4 sm:$0xff]  }
 0x377   :  { %4949 = vmatpush2.bf16.msra.mxu1 %v6264_v42  ;;  %v6330_v42 = vld [vmem:[#allocation14 + $0x698] ss:$24 sps:$4 sm:$0xff]  }
 0x378   :  { %4950 = vmatprep.subr.bf16.mxu1 %v6272_v43  ;;  %v6335_v43 = vld [vmem:[#allocation14 + $0x36c] ss:$24 sps:$4 sm:$0xff]  }
 0x37b   :  { %4951 = vmatpush2.bf16.msra.mxu1 %v6270_v44  ;;  %v6338_v44 = vld [vmem:[#allocation14 + $0x66c] ss:$24 sps:$4 sm:$0xff]  }
 0x37c   :  { %4952 = vmatprep.subr.bf16.mxu1 %v6278_v45  ;;  %v6333_v45 = vld [vmem:[#allocation14 + $0x368] ss:$24 sps:$4 sm:$0xff]  }
 0x37f   :  { %4953 = vmatpush2.bf16.msra.mxu1 %v6276_v46  ;;  %v6336_v46 = vld [vmem:[#allocation14 + $0x668] ss:$24 sps:$4 sm:$0xff]  }
 0x380   :  { %4954 = vmatprep.subr.bf16.mxu1 %v6284_v47  ;;  %v6341_v47 = vld [vmem:[#allocation14 + $0x33c] ss:$24 sps:$4 sm:$0xff]  }
 0x383   :  { %4955 = vmatpush2.bf16.msra.mxu1 %v6282_v49  ;;  %v6344_v49 = vld [vmem:[#allocation14 + $0x63c] ss:$24 sps:$4 sm:$0xff]  }
 0x384   :  { %4956 = vmatprep.subr.bf16.mxu1 %v6290_v51  ;;  %v6342_v51 = vld [vmem:[#allocation14 + $0x638] ss:$24 sps:$4 sm:$0xff]  }
 0x386   :  { %v2366_v1 = vpop.f32.mrf.mxu1 }
 0x387   :  { %v2367_v2 = vadd.f32 %v2366_v1, %v793_v61  ;;  %v2407_v3 = vpop.f32.mrf.mxu0  ;;  %4957 = vmatpush2.bf16.msra.mxu1 %v6288_v58  ;;  %v6350_v58 = vld [vmem:[#allocation14 + $0x60c] ss:$24 sps:$4 sm:$0xff]   ;;  %v6345_v61 = vld [vmem:[#allocation14 + $0x308] ss:$24 sps:$4 sm:$0xff]   ;;  %v6356_v1 = vld [vmem:[#allocation14 + $0x8dc] ss:$24 sps:$4 sm:$0xff]  }
 0x388   :  { %v2368_v5 = vpop.f32.mrf.mxu1  ;;  %4958 = vmatprep.subr.bf16.mxu1 %v6296_v63  ;;  %v6348_v63 = vld [vmem:[#allocation14 + $0x608] ss:$24 sps:$4 sm:$0xff]  }
 0x389   :  { %v2408_v8 = vadd.f32 %v2407_v3, %v2367_v2  ;;  %v2369_v9 = vadd.f32 %v2368_v5, %v797_v0  ;;  %v2409_v10 = vpop.f32.mrf.mxu0  ;;  %v6353_v0 = vld [vmem:[#allocation14 + $0x5dc] ss:$24 sps:$4 sm:$0xff]   ;;  %v6351_v2 = vld [vmem:[#allocation14 + $0x5d8] ss:$24 sps:$4 sm:$0xff]   ;;  %v6362_v5 = vld [vmem:[#allocation14 + $0x8ac] ss:$24 sps:$4 sm:$0xff]  }
 0x38a   :  { %v2370_v11 = vpop.f32.mrf.mxu1  ;;  %v6354_v3 = vld [vmem:[#allocation14 + $0x8d8] ss:$24 sps:$4 sm:$0xff]  }
 0x38b   :  { %v2410_v14 = vadd.f32 %v2409_v10, %v2369_v9  ;;  %v2411_v15 = vpop.f32.mrf.mxu0  ;;  %4959 = vmatpush2.bf16.msra.mxu1 %v6294_v4  ;;  %v2420_v17 = vmax.f32 %v2408_v8, 0.0  ;;  %v6359_v4 = vld [vmem:[#allocation14 + $0x5ac] ss:$24 sps:$4 sm:$0xff]   ;;  %v6360_v8 = vld [vmem:[#allocation14 + $0x8a8] ss:$24 sps:$4 sm:$0xff]  }
 0x38c   :  { %v2371_v18 = vpop.f32.mrf.mxu1  ;;  %4960 = vmatprep.subr.bf16.mxu1 %v6302_v6  ;;  %v6357_v6 = vld [vmem:[#allocation14 + $0x5a8] ss:$24 sps:$4 sm:$0xff]   ;;  %v6365_v9 = vld [vmem:[#allocation14 + $0x57c] ss:$24 sps:$4 sm:$0xff]   ;;  %v6363_v11 = vld [vmem:[#allocation14 + $0x578] ss:$24 sps:$4 sm:$0xff]  }
 0x38d   :  { %v2421_v21 = vmax.f32 %v2410_v14, 0.0  ;;  %v2412_v19 = vpop.f32.mrf.mxu0  ;;  %v7039_v27 = vpack.c.bf16 %v2420_v17, %v2420_v17  ;;  %v6368_v10 = vld [vmem:[#allocation14 + $0x87c] ss:$24 sps:$4 sm:$0xff]   ;;  %v6366_v14 = vld [vmem:[#allocation14 + $0x878] ss:$24 sps:$4 sm:$0xff]  }
 0x38e   :  { %v6371_v15 = vld [vmem:[#allocation14 + $0x54c] ss:$24 sps:$4 sm:$0xff]   ;;  %v6369_v17 = vld [vmem:[#allocation14 + $0x548] ss:$24 sps:$4 sm:$0xff]   ;;  %v6375_v19 = vld [vmem:[#allocation14 + $0x518] ss:$24 sps:$4 sm:$0xff]  }
 0x38f   :  { %v7037_v20 = vpack.c.bf16 %v2421_v21, %v2421_v21  ;;  %4961 = vmatpush2.bf16.msra.mxu1 %v6300_v16  ;;  %v6374_v16 = vld [vmem:[#allocation14 + $0x84c] ss:$24 sps:$4 sm:$0xff]   ;;  %v6372_v18 = vld [vmem:[#allocation14 + $0x848] ss:$24 sps:$4 sm:$0xff]   ;;  %v6380_v21 = vld [vmem:[#allocation14 + $0x81c] ss:$24 sps:$4 sm:$0xff]  }
 0x390   :  { %5012 = vmatprep.subr.bf16.mxu1 %v6308_v7  ;;  %v6377_v7 = vld [vmem:[#allocation14 + $0x51c] ss:$24 sps:$4 sm:$0xff]  }
 0x391   :  { %4921 = vmatprep.mubr.bf16.mxu0 %v7037_v20 }
 0x392   :  { %4963 = vmatmul.mubr.bf16.vlgmr.msra.gmra.mxu1 %v7007_v33  ;;  %4922 = vmatmul.mubr.bf16.vlgmr.msra.gmra.mxu0 %v7039_v27 }
 0x393   :  { %4972 = vmatpush1.bf16.msra.mxu0 %v6303_v23  ;;  %5013 = vmatpush1.bf16.msra.mxu1 %v6306_v22  ;;  %v6378_v23 = vld [vmem:[#allocation14 + $0x818] ss:$24 sps:$4 sm:$0xff]   ;;  %v6383_v22 = vld [vmem:[#allocation14 + $0x4ec] ss:$24 sps:$4 sm:$0xff]  }
 0x394   :  { %5044 = vmatprep.mubr.bf16.mxu1 %v7026_v25  ;;  %5003 = vmatprep.mubr.bf16.mxu0 %v7012_v54 }
 0x395   :  { %4973 = vmatprep.subr.bf16.mxu0 %v6311_v24  ;;  %5014 = vmatprep.subr.bf16.mxu1 %v6314_v28  ;;  %v6386_v24 = vld [vmem:[#allocation14 + $0x7ec] ss:$24 sps:$4 sm:$0xff]   ;;  %v6381_v28 = vld [vmem:[#allocation14 + $0x4e8] ss:$24 sps:$4 sm:$0xff]  }
 0x397   :  { %4974 = vmatpush1.bf16.msra.mxu0 %v6309_v12  ;;  %5015 = vmatpush1.bf16.msra.mxu1 %v6312_v29  ;;  %v6384_v12 = vld [vmem:[#allocation14 + $0x7e8] ss:$24 sps:$4 sm:$0xff]   ;;  %v6389_v29 = vld [vmem:[#allocation14 + $0x4bc] ss:$24 sps:$4 sm:$0xff]  }
 0x398   :  { %4975 = vmatprep.subr.bf16.mxu0 %v6317_v30  ;;  %5016 = vmatprep.subr.bf16.mxu1 %v6320_v32  ;;  %v6392_v30 = vld [vmem:[#allocation14 + $0x7bc] ss:$24 sps:$4 sm:$0xff]  }
 0x39b   :  { %4976 = vmatpush1.bf16.msra.mxu0 %v6315_v13  ;;  %5017 = vmatpush1.bf16.msra.mxu1 %v6318_v34  ;;  %v6387_v13 = vld [vmem:[#allocation14 + $0x4b8] ss:$24 sps:$4 sm:$0xff]  }
 0x39c   :  { %4977 = vmatprep.subr.bf16.mxu0 %v6323_v35  ;;  %5018 = vmatprep.subr.bf16.mxu1 %v6326_v36  ;;  %v6390_v34 = vld [vmem:[#allocation14 + $0x7b8] ss:$24 sps:$4 sm:$0xff]   ;;  %v6395_v36 = vld [vmem:[#allocation14 + $0x48c] ss:$24 sps:$4 sm:$0xff]  }
 0x39f   :  { %4978 = vmatpush1.bf16.msra.mxu0 %v6321_v37  ;;  %5019 = vmatpush1.bf16.msra.mxu1 %v6324_v38  ;;  %v6398_v37 = vld [vmem:[#allocation14 + $0x78c] ss:$24 sps:$4 sm:$0xff]  }
 0x3a0   :  { %4979 = vmatprep.subr.bf16.mxu0 %v6329_v39  ;;  %5020 = vmatprep.subr.bf16.mxu1 %v6332_v40  ;;  %v7046_v38 = vld [vmem:[#allocation16] sm:$0x3f] }
 0x3a1   :  { %v6393_v40 = vld [vmem:[#allocation14 + $0x488] ss:$24 sps:$4 sm:$0xff]  }
 0x3a3   :  { %4980 = vmatpush1.bf16.msra.mxu0 %v6327_v41  ;;  %5021 = vmatpush1.bf16.msra.mxu1 %v6330_v42  ;;  %v6396_v41 = vld [vmem:[#allocation14 + $0x788] ss:$24 sps:$4 sm:$0xff]  }
 0x3a4   :  { %4981 = vmatprep.subr.bf16.mxu0 %v6335_v43  ;;  %5022 = vmatprep.subr.bf16.mxu1 %v6338_v44  ;;  %v6401_v43 = vld [vmem:[#allocation14 + $0xa5c] ss:$24 sps:$4 sm:$0xff]  }
 0x3a5   :  { %v6404_v44 = vld [vmem:[#allocation14 + $0x164] ss:$24 sps:$4 sm:$0xff]  }
 0x3a7   :  { %4982 = vmatpush1.bf16.msra.mxu0 %v6333_v45  ;;  %5023 = vmatpush1.bf16.msra.mxu1 %v6336_v46  ;;  %v2819_v45 = vrot.slane %v7046_v38, %v6951_v56  ;;  %v2823_v46 = vrot.slane %v7046_v38, %v6957_v59  ;;  %v6405_v56 = vld [vmem:[#allocation14 + $0xa28] ss:$24 sps:$4 sm:$0xff]  }
 0x3a8   :  { %4983 = vmatprep.subr.bf16.mxu0 %v6341_v47  ;;  %5024 = vmatprep.subr.bf16.mxu1 %v6344_v49  ;;  %v6399_v47 = vld [vmem:[#allocation14 + $0xa58] ss:$24 sps:$4 sm:$0xff]  }
 0x3a9   :  { %v6402_v49 = vld [vmem:[#allocation14 + $0x160] ss:$24 sps:$4 sm:$0xff]  }
 0x3ab   :  { %4984 = vmatpush1.bf16.msra.mxu0 %v6339_v50  ;;  %5025 = vmatpush1.bf16.msra.mxu1 %v6342_v51  ;;  %v6407_v51 = vld [vmem:[#allocation14 + $0xa2c] ss:$24 sps:$4 sm:$0xff]  }
 0x3ac   :  { %4985 = vmatprep.subr.bf16.mxu0 %v6347_v52  ;;  %5026 = vmatprep.subr.bf16.mxu1 %v6350_v58  ;;  %v6410_v52 = vld [vmem:[#allocation14 + $0x134] ss:$24 sps:$4 sm:$0xff]  }
 0x3af   :  { %4986 = vmatpush1.bf16.msra.mxu0 %v6345_v61  ;;  %5027 = vmatpush1.bf16.msra.mxu1 %v6348_v63 }
 0x3b0   :  { %4987 = vmatprep.subr.bf16.mxu0 %v6353_v0  ;;  %5028 = vmatprep.subr.bf16.mxu1 %v6356_v1  ;;  %v6408_v0 = vld [vmem:[#allocation14 + $0x130] ss:$24 sps:$4 sm:$0xff]   ;;  %v6413_v1 = vld [vmem:[#allocation14 + $0x9fc] ss:$24 sps:$4 sm:$0xff]  }
 0x3b3   :  { %4988 = vmatpush2.bf16.msra.mxu0 %v6351_v2  ;;  %5029 = vmatpush2.bf16.msra.mxu1 %v6354_v3  ;;  %v6416_v3 = vld [vmem:[#allocation14 + $0x104] ss:$24 sps:$4 sm:$0xff]  }
 0x3b4   :  { %4989 = vmatprep.subr.bf16.mxu0 %v6359_v4  ;;  %5030 = vmatprep.subr.bf16.mxu1 %v6362_v5  ;;  %v6411_v5 = vld [vmem:[#allocation14 + $0x9f8] ss:$24 sps:$4 sm:$0xff]  }
 0x3b7   :  { %4990 = vmatpush2.bf16.msra.mxu0 %v6357_v6  ;;  %5031 = vmatpush2.bf16.msra.mxu1 %v6360_v8  ;;  %v6414_v8 = vld [vmem:[#allocation14 + $0x100] ss:$24 sps:$4 sm:$0xff]  }
 0x3b8   :  { %4991 = vmatprep.subr.bf16.mxu0 %v6365_v9  ;;  %5032 = vmatprep.subr.bf16.mxu1 %v6368_v10  ;;  %v6419_v9 = vld [vmem:[#allocation14 + $0x9cc] ss:$24 sps:$4 sm:$0xff]  }
 0x3b9   :  { %v6422_v10 = vld [vmem:[#allocation14 + $0xd4] ss:$24 sps:$4 sm:$0xff]  }
 0x3bb   :  { %4992 = vmatpush2.bf16.msra.mxu0 %v6363_v11  ;;  %5033 = vmatpush2.bf16.msra.mxu1 %v6366_v14  ;;  %v6420_v11 = vld [vmem:[#allocation14 + $0xd0] ss:$24 sps:$4 sm:$0xff]   ;;  %v6425_v14 = vld [vmem:[#allocation14 + $0x99c] ss:$24 sps:$4 sm:$0xff]  }
 0x3bc   :  { %4993 = vmatprep.subr.bf16.mxu0 %v6371_v15  ;;  %5034 = vmatprep.subr.bf16.mxu1 %v6374_v16  ;;  %v6428_v15 = vld [vmem:[#allocation14 + $0xa4] ss:$24 sps:$4 sm:$0xff]   ;;  %v6423_v16 = vld [vmem:[#allocation14 + $0x998] ss:$24 sps:$4 sm:$0xff]  }
 0x3bf   :  { %4994 = vmatpush2.bf16.msra.mxu0 %v6369_v17  ;;  %5035 = vmatpush2.bf16.msra.mxu1 %v6372_v18  ;;  %v6426_v17 = vld [vmem:[#allocation14 + $0xa0] ss:$24 sps:$4 sm:$0xff]   ;;  %v6431_v18 = vld [vmem:[#allocation14 + $0x96c] ss:$24 sps:$4 sm:$0xff]  }
 0x3c0   :  { %4995 = vmatprep.subr.bf16.mxu0 %v6377_v7  ;;  %5036 = vmatprep.subr.bf16.mxu1 %v6380_v21  ;;  %v6434_v7 = vld [vmem:[#allocation14 + $0x74] ss:$24 sps:$4 sm:$0xff]   ;;  %v6429_v21 = vld [vmem:[#allocation14 + $0x968] ss:$24 sps:$4 sm:$0xff]  }
 0x3c3   :  { %4996 = vmatpush2.bf16.msra.mxu0 %v6375_v19  ;;  %5037 = vmatpush2.bf16.msra.mxu1 %v6378_v23  ;;  %v6432_v19 = vld [vmem:[#allocation14 + $0x70] ss:$24 sps:$4 sm:$0xff]   ;;  %v6437_v23 = vld [vmem:[#allocation14 + $0x93c] ss:$24 sps:$4 sm:$0xff]  }
 0x3c4   :  { %4997 = vmatprep.subr.bf16.mxu0 %v6383_v22  ;;  %5038 = vmatprep.subr.bf16.mxu1 %v6386_v24  ;;  %v6440_v22 = vld [vmem:[#allocation14 + $0x44] ss:$24 sps:$4 sm:$0xff]   ;;  %v6435_v24 = vld [vmem:[#allocation14 + $0x938] ss:$24 sps:$4 sm:$0xff]  }
 0x3c6   :  { %v4800_v32 = vpop.f32.mrf.mxu1 }
 0x3c7   :  { %4998 = vmatpush2.bf16.msra.mxu0 %v6381_v28  ;;  %5039 = vmatpush2.bf16.msra.mxu1 %v6384_v12  ;;  %v4801_v50 = vadd.f32 %v4800_v32, %v2819_v45  ;;  %v6438_v28 = vld [vmem:[#allocation14 + $0x40] ss:$24 sps:$4 sm:$0xff]   ;;  %v6443_v12 = vld [vmem:[#allocation14 + $0x90c] ss:$24 sps:$4 sm:$0xff]   ;;  %v6444_v32 = vld [vmem:[#allocation14 + $0x10] ss:$24 sps:$4 sm:$0xff]  }
 0x3c8   :  { %v4802_v35 = vpop.f32.mrf.mxu1  ;;  %4999 = vmatprep.subr.bf16.mxu0 %v6389_v29  ;;  %5040 = vmatprep.subr.bf16.mxu1 %v6392_v30  ;;  %v6446_v29 = vld [vmem:[#allocation14 + $0x14] ss:$24 sps:$4 sm:$0xff]   ;;  %v6441_v30 = vld [vmem:[#allocation14 + $0x908] ss:$24 sps:$4 sm:$0xff]  }
 0x3c9   :  { %v4803_v61 = vadd.f32 %v4802_v35, %v2823_v46  ;;  %v6447_v35 = vld [vmem:[#allocation14 + $0xbd8] ss:$24 sps:$4 sm:$0xff]   ;;  %v6467_v46 = vld [vmem:[#allocation14 + $0xb4c] ss:$24 sps:$4 sm:$0xff]  }
 0x3ca   :  { %v4804_v39 = vpop.f32.mrf.mxu1  ;;  %v6462_v45 = vld [vmem:[#allocation14 + $0x280] ss:$24 sps:$4 sm:$0xff]  }
 0x3cb   :  { %5000 = vmatpush2.bf16.msra.mxu0 %v6387_v13  ;;  %5041 = vmatpush2.bf16.msra.mxu1 %v6390_v34  ;;  %v6449_v13 = vld [vmem:[#allocation14 + $0xbdc] ss:$24 sps:$4 sm:$0xff]  }
 0x3cc   :  { %v4805_v42 = vpop.f32.mrf.mxu1  ;;  %5001 = vmatprep.subr.bf16.mxu0 %v6395_v36  ;;  %5042 = vmatprep.subr.bf16.mxu1 %v6398_v37  ;;  %v6452_v34 = vld [vmem:[#allocation14 + $0x2e4] ss:$24 sps:$4 sm:$0xff]   ;;  %v6450_v36 = vld [vmem:[#allocation14 + $0x2e0] ss:$24 sps:$4 sm:$0xff]   ;;  %v6458_v39 = vld [vmem:[#allocation14 + $0x2b4] ss:$24 sps:$4 sm:$0xff]  }
 0x3cd   :  { %v6455_v37 = vld [vmem:[#allocation14 + $0xbac] ss:$24 sps:$4 sm:$0xff]   ;;  %v6461_v42 = vld [vmem:[#allocation14 + $0xb7c] ss:$24 sps:$4 sm:$0xff]  }
 0x3cf   :  { %5002 = vmatpush2.bf16.msra.mxu0 %v6393_v40  ;;  %5043 = vmatpush2.bf16.msra.mxu1 %v6396_v41  ;;  %v6453_v40 = vld [vmem:[#allocation14 + $0xba8] ss:$24 sps:$4 sm:$0xff]  }
 0x3d0   :  { %5053 = vmatprep.subr.bf16.mxu0 %v6401_v43  ;;  %5094 = vmatprep.subr.bf16.mxu1 %v6404_v44  ;;  %v6456_v41 = vld [vmem:[#allocation14 + $0x2b0] ss:$24 sps:$4 sm:$0xff]   ;;  %v6464_v43 = vld [vmem:[#allocation14 + $0x284] ss:$24 sps:$4 sm:$0xff]  }
 0x3d1   :  { %v6459_v44 = vld [vmem:[#allocation14 + $0xb78] ss:$24 sps:$4 sm:$0xff]  }
 0x3d2   :  { %5004 = vmatmul.mubr.bf16.vlgmr.msra.gmra.mxu0 %v7014_v62  ;;  %5045 = vmatmul.mubr.bf16.vlgmr.msra.gmra.mxu1 %v7028_v26  ;;  %v4841_v58 = vpop.f32.mrf.mxu0 }
 0x3d3   :  { %v7054_v63 = vadd.f32 %v4841_v58, %v4801_v50  ;;  %5054 = vmatpush1.bf16.msra.mxu0 %v6399_v47  ;;  %5085 = vmatprep.mubr.bf16.mxu0 %v7037_v20  ;;  %v6470_v47 = vld [vmem:[#allocation14 + $0x254] ss:$24 sps:$4 sm:$0xff]   ;;  %v6468_v50 = vld [vmem:[#allocation14 + $0x250] ss:$24 sps:$4 sm:$0xff]  }
 0x3d4   :  { %5095 = vmatpush1.bf16.msra.mxu1 %v6402_v49  ;;  %5126 = vmatprep.mubr.bf16.mxu1 %v6998_v31  ;;  %v4843_v59 = vpop.f32.mrf.mxu0  ;;  %v6417_v31 = vld [vmem:[#allocation14 + $0x9c8] ss:$24 sps:$4 sm:$0xff]   ;;  %v6471_v58 = vld [vmem:[#allocation14 + $0xb18] ss:$24 sps:$4 sm:$0xff]  }
 0x3d5   :  { %v7058_v2 = vadd.f32 %v4843_v59, %v4803_v61  ;;  %5055 = vmatprep.subr.bf16.mxu0 %v6407_v51  ;;  %5096 = vmatprep.subr.bf16.mxu1 %v6410_v52  ;;  %v6465_v49 = vld [vmem:[#allocation14 + $0xb48] ss:$24 sps:$4 sm:$0xff]   ;;  %v6473_v51 = vld [vmem:[#allocation14 + $0xb1c] ss:$24 sps:$4 sm:$0xff]  }
 0x3d6   :  { %v4845_v4 = vpop.f32.mrf.mxu0  ;;  %v6476_v52 = vld [vmem:[#allocation14 + $0x224] ss:$24 sps:$4 sm:$0xff]   ;;  %v6474_v61 = vld [vmem:[#allocation14 + $0x220] ss:$24 sps:$4 sm:$0xff]   ;;  %v6482_v59 = vld [vmem:[#allocation14 + $0x1f4] ss:$24 sps:$4 sm:$0xff]  }
 0x3d7   :  { %5056 = vmatpush1.bf16.msra.mxu0 %v6405_v56  ;;  %v6479_v56 = vld [vmem:[#allocation14 + $0xaec] ss:$24 sps:$4 sm:$0xff]  }
 0x3d8   :  { %5097 = vmatpush1.bf16.msra.mxu1 %v6408_v0  ;;  %v4846_v6 = vpop.f32.mrf.mxu0  ;;  %5057 = vmatprep.subr.bf16.mxu0 %v6413_v1  ;;  %v6477_v0 = vld [vmem:[#allocation14 + $0xae8] ss:$24 sps:$4 sm:$0xff]   ;;  %v6488_v4 = vld [vmem:[#allocation14 + $0x1c4] ss:$24 sps:$4 sm:$0xff]  }
 0x3d9   :  { %5098 = vmatprep.subr.bf16.mxu1 %v6416_v3  ;;  %v6480_v1 = vld [vmem:[#allocation14 + $0x1f0] ss:$24 sps:$4 sm:$0xff]   ;;  %v6485_v3 = vld [vmem:[#allocation14 + $0xabc] ss:$24 sps:$4 sm:$0xff]   ;;  %v6486_v6 = vld [vmem:[#allocation14 + $0x1c0] ss:$24 sps:$4 sm:$0xff]  }
 0x3db   :  { %5058 = vmatpush1.bf16.msra.mxu0 %v6411_v5  ;;  %v6483_v5 = vld [vmem:[#allocation14 + $0xab8] ss:$24 sps:$4 sm:$0xff]  }
 0x3dc   :  { %5099 = vmatpush1.bf16.msra.mxu1 %v6414_v8  ;;  %5059 = vmatprep.subr.bf16.mxu0 %v6419_v9  ;;  %v6491_v8 = vld [vmem:[#allocation14 + $0xa8c] ss:$24 sps:$4 sm:$0xff]  }
 0x3dd   :  { %5100 = vmatprep.subr.bf16.mxu1 %v6422_v10  ;;  %v6494_v9 = vld [vmem:[#allocation14 + $0x194] ss:$24 sps:$4 sm:$0xff]   ;;  %v6489_v10 = vld [vmem:[#allocation14 + $0xa88] ss:$24 sps:$4 sm:$0xff]  }
 0x3df   :  { %5060 = vmatpush1.bf16.msra.mxu0 %v6417_v31  ;;  %v6492_v31 = vld [vmem:[#allocation14 + $0x190] ss:$24 sps:$4 sm:$0xff]  }
 0x3e0   :  { %5101 = vmatpush1.bf16.msra.mxu1 %v6420_v11  ;;  %5061 = vmatprep.subr.bf16.mxu0 %v6425_v14  ;;  %v6497_v11 = vld [vmem:[#allocation14 + $0x464] ss:$24 sps:$4 sm:$0xff]  }
 0x3e1   :  { %5102 = vmatprep.subr.bf16.mxu1 %v6428_v15  ;;  %v6500_v14 = vld [vmem:[#allocation14 + $0x764] ss:$24 sps:$4 sm:$0xff]   ;;  %v6495_v15 = vld [vmem:[#allocation14 + $0x460] ss:$24 sps:$4 sm:$0xff]  }
 0x3e3   :  { %5062 = vmatpush1.bf16.msra.mxu0 %v6423_v16  ;;  %v6498_v16 = vld [vmem:[#allocation14 + $0x760] ss:$24 sps:$4 sm:$0xff]  }
 0x3e4   :  { %5103 = vmatpush1.bf16.msra.mxu1 %v6426_v17  ;;  %5063 = vmatprep.subr.bf16.mxu0 %v6431_v18  ;;  %v6503_v17 = vld [vmem:[#allocation14 + $0x434] ss:$24 sps:$4 sm:$0xff]  }
 0x3e5   :  { %5104 = vmatprep.subr.bf16.mxu1 %v6434_v7  ;;  %v6506_v7 = vld [vmem:[#allocation14 + $0x734] ss:$24 sps:$4 sm:$0xff]  }
 0x3e7   :  { %5064 = vmatpush1.bf16.msra.mxu0 %v6429_v21 }
 0x3e8   :  { %5105 = vmatpush1.bf16.msra.mxu1 %v6432_v19  ;;  %5065 = vmatprep.subr.bf16.mxu0 %v6437_v23  ;;  %v6501_v19 = vld [vmem:[#allocation14 + $0x430] ss:$24 sps:$4 sm:$0xff]  }
 0x3e9   :  { %5106 = vmatprep.subr.bf16.mxu1 %v6440_v22  ;;  %v6504_v22 = vld [vmem:[#allocation14 + $0x730] ss:$24 sps:$4 sm:$0xff]  }
 0x3eb   :  { %5066 = vmatpush1.bf16.msra.mxu0 %v6435_v24  ;;  %v6509_v24 = vld [vmem:[#allocation14 + $0x404] ss:$24 sps:$4 sm:$0xff]  }
 0x3ec   :  { %5107 = vmatpush1.bf16.msra.mxu1 %v6438_v28  ;;  %5067 = vmatprep.subr.bf16.mxu0 %v6443_v12  ;;  %v6512_v12 = vld [vmem:[#allocation14 + $0x704] ss:$24 sps:$4 sm:$0xff]  }
 0x3ed   :  { %5108 = vmatprep.subr.bf16.mxu1 %v6446_v29 }
 0x3ef   :  { %5068 = vmatpush1.bf16.msra.mxu0 %v6441_v30  ;;  %v6510_v30 = vld [vmem:[#allocation14 + $0x700] ss:$24 sps:$4 sm:$0xff]  }
 0x3f0   :  { %5109 = vmatpush1.bf16.msra.mxu1 %v6444_v32  ;;  %5069 = vmatprep.subr.bf16.mxu0 %v6449_v13  ;;  %v6518_v32 = vld [vmem:[#allocation14 + $0x6d4] ss:$24 sps:$4 sm:$0xff]   ;;  %v6513_v13 = vld [vmem:[#allocation14 + $0x3d0] ss:$24 sps:$4 sm:$0xff]  }
 0x3f1   :  { %5110 = vmatprep.subr.bf16.mxu1 %v6452_v34  ;;  %v6524_v34 = vld [vmem:[#allocation14 + $0x6a4] ss:$24 sps:$4 sm:$0xff]  }
 0x3f3   :  { %5070 = vmatpush2.bf16.msra.mxu0 %v6447_v35  ;;  %v6519_v35 = vld [vmem:[#allocation14 + $0x3a0] ss:$24 sps:$4 sm:$0xff]  }
 0x3f4   :  { %5111 = vmatpush2.bf16.msra.mxu1 %v6450_v36  ;;  %5071 = vmatprep.subr.bf16.mxu0 %v6455_v37  ;;  %v6522_v36 = vld [vmem:[#allocation14 + $0x6a0] ss:$24 sps:$4 sm:$0xff]   ;;  %v6527_v37 = vld [vmem:[#allocation14 + $0x374] ss:$24 sps:$4 sm:$0xff]  }
 0x3f5   :  { %5112 = vmatprep.subr.bf16.mxu1 %v6458_v39  ;;  %v6530_v39 = vld [vmem:[#allocation14 + $0x674] ss:$24 sps:$4 sm:$0xff]  }
 0x3f7   :  { %5072 = vmatpush2.bf16.msra.mxu0 %v6453_v40  ;;  %v6525_v40 = vld [vmem:[#allocation14 + $0x370] ss:$24 sps:$4 sm:$0xff]  }
 0x3f8   :  { %5113 = vmatpush2.bf16.msra.mxu1 %v6456_v41  ;;  %5073 = vmatprep.subr.bf16.mxu0 %v6461_v42  ;;  %v6528_v41 = vld [vmem:[#allocation14 + $0x670] ss:$24 sps:$4 sm:$0xff]   ;;  %v6533_v42 = vld [vmem:[#allocation14 + $0x344] ss:$24 sps:$4 sm:$0xff]  }
 0x3f9   :  { %5114 = vmatprep.subr.bf16.mxu1 %v6464_v43  ;;  %v6536_v43 = vld [vmem:[#allocation14 + $0x644] ss:$24 sps:$4 sm:$0xff]  }
 0x3fb   :  { %5074 = vmatpush2.bf16.msra.mxu0 %v6459_v44  ;;  %v6531_v44 = vld [vmem:[#allocation14 + $0x340] ss:$24 sps:$4 sm:$0xff]  }
 0x3fc   :  { %5115 = vmatpush2.bf16.msra.mxu1 %v6462_v45  ;;  %5075 = vmatprep.subr.bf16.mxu0 %v6467_v46  ;;  %v6534_v45 = vld [vmem:[#allocation14 + $0x640] ss:$24 sps:$4 sm:$0xff]   ;;  %v6539_v46 = vld [vmem:[#allocation14 + $0x314] ss:$24 sps:$4 sm:$0xff]  }
 0x3fd   :  { %5116 = vmatprep.subr.bf16.mxu1 %v6470_v47  ;;  %v6542_v47 = vld [vmem:[#allocation14 + $0x614] ss:$24 sps:$4 sm:$0xff]  }
 0x3ff   :  { %5076 = vmatpush2.bf16.msra.mxu0 %v6465_v49  ;;  %v6537_v49 = vld [vmem:[#allocation14 + $0x310] ss:$24 sps:$4 sm:$0xff]  }
 0x400   :  { %5117 = vmatpush2.bf16.msra.mxu1 %v6468_v50  ;;  %5077 = vmatprep.subr.bf16.mxu0 %v6473_v51  ;;  %v6540_v50 = vld [vmem:[#allocation14 + $0x610] ss:$24 sps:$4 sm:$0xff]   ;;  %v6545_v51 = vld [vmem:[#allocation14 + $0x5e4] ss:$24 sps:$4 sm:$0xff]  }
 0x401   :  { %5118 = vmatprep.subr.bf16.mxu1 %v6476_v52  ;;  %v6548_v52 = vld [vmem:[#allocation14 + $0x8e4] ss:$24 sps:$4 sm:$0xff]  }
 0x403   :  { %5078 = vmatpush2.bf16.msra.mxu0 %v6471_v58  ;;  %v6543_v58 = vld [vmem:[#allocation14 + $0x5e0] ss:$24 sps:$4 sm:$0xff]  }
 0x404   :  { %5119 = vmatpush2.bf16.msra.mxu1 %v6474_v61  ;;  %5079 = vmatprep.subr.bf16.mxu0 %v6479_v56  ;;  %v6546_v61 = vld [vmem:[#allocation14 + $0x8e0] ss:$24 sps:$4 sm:$0xff]   ;;  %v6551_v56 = vld [vmem:[#allocation14 + $0x5b4] ss:$24 sps:$4 sm:$0xff]  }
 0x405   :  { %5120 = vmatprep.subr.bf16.mxu1 %v6482_v59  ;;  %v6554_v59 = vld [vmem:[#allocation14 + $0x8b4] ss:$24 sps:$4 sm:$0xff]  }
 0x407   :  { %5080 = vmatpush2.bf16.msra.mxu0 %v6477_v0  ;;  %v6549_v0 = vld [vmem:[#allocation14 + $0x5b0] ss:$24 sps:$4 sm:$0xff]  }
 0x408   :  { %5121 = vmatpush2.bf16.msra.mxu1 %v6480_v1  ;;  %5081 = vmatprep.subr.bf16.mxu0 %v6485_v3  ;;  %v6552_v1 = vld [vmem:[#allocation14 + $0x8b0] ss:$24 sps:$4 sm:$0xff]   ;;  %v6557_v3 = vld [vmem:[#allocation14 + $0x584] ss:$24 sps:$4 sm:$0xff]  }
 0x409   :  { %5122 = vmatprep.subr.bf16.mxu1 %v6488_v4  ;;  %v6560_v4 = vld [vmem:[#allocation14 + $0x884] ss:$24 sps:$4 sm:$0xff]  }
 0x40b   :  { %5082 = vmatpush2.bf16.msra.mxu0 %v6483_v5  ;;  %v6555_v5 = vld [vmem:[#allocation14 + $0x580] ss:$24 sps:$4 sm:$0xff]  }
 0x40c   :  { %5123 = vmatpush2.bf16.msra.mxu1 %v6486_v6  ;;  %5083 = vmatprep.subr.bf16.mxu0 %v6491_v8  ;;  %v6558_v6 = vld [vmem:[#allocation14 + $0x880] ss:$24 sps:$4 sm:$0xff]   ;;  %v6563_v8 = vld [vmem:[#allocation14 + $0x554] ss:$24 sps:$4 sm:$0xff]  }
 0x40d   :  { %5124 = vmatprep.subr.bf16.mxu1 %v6494_v9  ;;  %v6566_v9 = vld [vmem:[#allocation14 + $0x854] ss:$24 sps:$4 sm:$0xff]  }
 0x40f   :  { %5084 = vmatpush2.bf16.msra.mxu0 %v6489_v10  ;;  %v6561_v10 = vld [vmem:[#allocation14 + $0x550] ss:$24 sps:$4 sm:$0xff]  }
 0x410   :  { %5125 = vmatpush2.bf16.msra.mxu1 %v6492_v31  ;;  %5135 = vmatprep.subr.bf16.mxu0 %v6497_v11  ;;  %v6564_v31 = vld [vmem:[#allocation14 + $0x850] ss:$24 sps:$4 sm:$0xff]   ;;  %v6569_v11 = vld [vmem:[#allocation14 + $0x524] ss:$24 sps:$4 sm:$0xff]  }
 0x411   :  { %5176 = vmatprep.subr.bf16.mxu1 %v6500_v14  ;;  %v6572_v14 = vld [vmem:[#allocation14 + $0x824] ss:$24 sps:$4 sm:$0xff]  }
 0x412   :  { %5086 = vmatmul.mubr.bf16.vlgmr.msra.gmra.mxu0 %v7039_v27  ;;  %v4882_v18 = vpop.f32.mrf.mxu1 }
 0x413   :  { %5127 = vmatmul.mubr.bf16.vlgmr.msra.gmra.mxu1 %v7007_v33  ;;  %v7063_v21 = vadd.f32 %v4882_v18, %v7054_v63  ;;  %5136 = vmatpush1.bf16.msra.mxu0 %v6495_v15  ;;  %v6507_v63 = vld [vmem:[#allocation14 + $0x400] ss:$24 sps:$4 sm:$0xff]   ;;  %v6578_v18 = vld [vmem:[#allocation14 + $0x7f4] ss:$24 sps:$4 sm:$0xff]  }
 0x414   :  { %5167 = vmatprep.mubr.bf16.mxu0 %v7012_v54  ;;  %5177 = vmatpush1.bf16.msra.mxu1 %v6498_v16  ;;  %v4884_v23 = vpop.f32.mrf.mxu1  ;;  %v6515_v54 = vld [vmem:[#allocation14 + $0x3d4] ss:$24 sps:$4 sm:$0xff]   ;;  %v6567_v15 = vld [vmem:[#allocation14 + $0x520] ss:$24 sps:$4 sm:$0xff]  }
 0x415   :  { %5208 = vmatprep.mubr.bf16.mxu1 %v7026_v25  ;;  %v7068_v28 = vadd.f32 %v4884_v23, %v7058_v2  ;;  %5137 = vmatprep.subr.bf16.mxu0 %v6503_v17  ;;  %v6516_v25 = vld [vmem:[#allocation14 + $0x6d0] ss:$24 sps:$4 sm:$0xff]   ;;  %v6521_v2 = vld [vmem:[#allocation14 + $0x3a4] ss:$24 sps:$4 sm:$0xff]   ;;  %v6570_v16 = vld [vmem:[#allocation14 + $0x820] ss:$24 sps:$4 sm:$0xff]  }
 0x416   :  { %5178 = vmatprep.subr.bf16.mxu1 %v6506_v7  ;;  %v4886_v33 = vpop.f32.mrf.mxu1  ;;  %v6575_v17 = vld [vmem:[#allocation14 + $0x4f4] ss:$24 sps:$4 sm:$0xff]   ;;  %v6573_v7 = vld [vmem:[#allocation14 + $0x4f0] ss:$24 sps:$4 sm:$0xff]   ;;  %v6581_v23 = vld [vmem:[#allocation14 + $0x4c4] ss:$24 sps:$4 sm:$0xff]  }
 0x417   :  { %5138 = vmatpush1.bf16.msra.mxu0 %v6501_v19  ;;  %v6576_v19 = vld [vmem:[#allocation14 + $0x7f0] ss:$24 sps:$4 sm:$0xff]   ;;  %v6587_v33 = vld [vmem:[#allocation14 + $0x494] ss:$24 sps:$4 sm:$0xff]  }
 0x418   :  { %5179 = vmatpush1.bf16.msra.mxu1 %v6504_v22  ;;  %v4887_v29 = vpop.f32.mrf.mxu1  ;;  %5139 = vmatprep.subr.bf16.mxu0 %v6509_v24  ;;  %v6584_v22 = vld [vmem:[#allocation14 + $0x7c4] ss:$24 sps:$4 sm:$0xff]   ;;  %v6579_v24 = vld [vmem:[#allocation14 + $0x4c0] ss:$24 sps:$4 sm:$0xff]  }
 0x419   :  { %5180 = vmatprep.subr.bf16.mxu1 %v6512_v12  ;;  %v6582_v12 = vld [vmem:[#allocation14 + $0x7c0] ss:$24 sps:$4 sm:$0xff]   ;;  %v6585_v29 = vld [vmem:[#allocation14 + $0x490] ss:$24 sps:$4 sm:$0xff]  }
 0x41b   :  { %5140 = vmatpush1.bf16.msra.mxu0 %v6507_v63  ;;  %v6590_v63 = vld [vmem:[#allocation14 + $0x794] ss:$24 sps:$4 sm:$0xff]  }
 0x41c   :  { %5181 = vmatpush1.bf16.msra.mxu1 %v6510_v30  ;;  %5141 = vmatprep.subr.bf16.mxu0 %v6515_v54  ;;  %v6588_v30 = vld [vmem:[#allocation14 + $0x790] ss:$24 sps:$4 sm:$0xff]   ;;  %v6593_v54 = vld [vmem:[#allocation14 + $0xa64] ss:$24 sps:$4 sm:$0xff]  }
 0x41d   :  { %5182 = vmatprep.subr.bf16.mxu1 %v6518_v32  ;;  %v6591_v32 = vld [vmem:[#allocation14 + $0xa60] ss:$24 sps:$4 sm:$0xff]  }
 0x41f   :  { %5142 = vmatpush1.bf16.msra.mxu0 %v6513_v13  ;;  %v6596_v13 = vld [vmem:[#allocation14 + $0xa34] ss:$24 sps:$4 sm:$0xff]  }
 0x420   :  { %5183 = vmatpush1.bf16.msra.mxu1 %v6516_v25  ;;  %5143 = vmatprep.subr.bf16.mxu0 %v6521_v2 }
 0x421   :  { %5184 = vmatprep.subr.bf16.mxu1 %v6524_v34 }
 0x423   :  { %5144 = vmatpush1.bf16.msra.mxu0 %v6519_v35  ;;  %v6594_v35 = vld [vmem:[#allocation14 + $0xa30] ss:$24 sps:$4 sm:$0xff]  }
 0x424   :  { %5185 = vmatpush1.bf16.msra.mxu1 %v6522_v36  ;;  %5145 = vmatprep.subr.bf16.mxu0 %v6527_v37 }
 0x425   :  { %5186 = vmatprep.subr.bf16.mxu1 %v6530_v39  ;;  %v6599_v39 = vld [vmem:[#allocation14 + $0xa04] ss:$24 sps:$4 sm:$0xff]  }
 0x427   :  { %5146 = vmatpush1.bf16.msra.mxu0 %v6525_v40 }
 0x428   :  { %5187 = vmatpush1.bf16.msra.mxu1 %v6528_v41  ;;  %5147 = vmatprep.subr.bf16.mxu0 %v6533_v42 }
 0x429   :  { %5188 = vmatprep.subr.bf16.mxu1 %v6536_v43 }
 0x42b   :  { %5148 = vmatpush1.bf16.msra.mxu0 %v6531_v44  ;;  %v6602_v44 = vld [vmem:[#allocation14 + $0x9d4] ss:$24 sps:$4 sm:$0xff]  }
 0x42c   :  { %5189 = vmatpush1.bf16.msra.mxu1 %v6534_v45  ;;  %5149 = vmatprep.subr.bf16.mxu0 %v6539_v46  ;;  %v6605_v45 = vld [vmem:[#allocation14 + $0x9a4] ss:$24 sps:$4 sm:$0xff]   ;;  %v6603_v46 = vld [vmem:[#allocation14 + $0x9a0] ss:$24 sps:$4 sm:$0xff]  }
 0x42d   :  { %5190 = vmatprep.subr.bf16.mxu1 %v6542_v47  ;;  %v6606_v47 = vld [vmem:[#allocation14 + $0x970] ss:$24 sps:$4 sm:$0xff]  }
 0x42f   :  { %5150 = vmatpush1.bf16.msra.mxu0 %v6537_v49  ;;  %v6611_v49 = vld [vmem:[#allocation14 + $0x944] ss:$24 sps:$4 sm:$0xff]  }
 0x430   :  { %5191 = vmatpush1.bf16.msra.mxu1 %v6540_v50  ;;  %5151 = vmatprep.subr.bf16.mxu0 %v6545_v51  ;;  %v6609_v50 = vld [vmem:[#allocation14 + $0x940] ss:$24 sps:$4 sm:$0xff]   ;;  %v6614_v51 = vld [vmem:[#allocation14 + $0x914] ss:$24 sps:$4 sm:$0xff]  }
 0x431   :  { %5192 = vmatprep.subr.bf16.mxu1 %v6548_v52  ;;  %v6612_v52 = vld [vmem:[#allocation14 + $0x910] ss:$24 sps:$4 sm:$0xff]  }
 0x433   :  { %5152 = vmatpush2.bf16.msra.mxu0 %v6543_v58  ;;  %v6617_v58 = vld [vmem:[#allocation14 + $0xbe4] ss:$24 sps:$4 sm:$0xff]  }
 0x434   :  { %5193 = vmatpush2.bf16.msra.mxu1 %v6546_v61  ;;  %5153 = vmatprep.subr.bf16.mxu0 %v6551_v56  ;;  %v6615_v61 = vld [vmem:[#allocation14 + $0xbe0] ss:$24 sps:$4 sm:$0xff]   ;;  %v6620_v56 = vld [vmem:[#allocation14 + $0xbb4] ss:$24 sps:$4 sm:$0xff]  }
 0x435   :  { %5194 = vmatprep.subr.bf16.mxu1 %v6554_v59  ;;  %v6618_v59 = vld [vmem:[#allocation14 + $0xbb0] ss:$24 sps:$4 sm:$0xff]  }
 0x437   :  { %5154 = vmatpush2.bf16.msra.mxu0 %v6549_v0  ;;  %v6623_v0 = vld [vmem:[#allocation14 + $0xb84] ss:$24 sps:$4 sm:$0xff]  }
 0x438   :  { %5195 = vmatpush2.bf16.msra.mxu1 %v6552_v1  ;;  %5155 = vmatprep.subr.bf16.mxu0 %v6557_v3  ;;  %v6621_v1 = vld [vmem:[#allocation14 + $0xb80] ss:$24 sps:$4 sm:$0xff]   ;;  %v6626_v3 = vld [vmem:[#allocation14 + $0xb54] ss:$24 sps:$4 sm:$0xff]  }
 0x439   :  { %5196 = vmatprep.subr.bf16.mxu1 %v6560_v4  ;;  %v6624_v4 = vld [vmem:[#allocation14 + $0xb50] ss:$24 sps:$4 sm:$0xff]  }
 0x43b   :  { %5156 = vmatpush2.bf16.msra.mxu0 %v6555_v5  ;;  %v6629_v5 = vld [vmem:[#allocation14 + $0xb24] ss:$24 sps:$4 sm:$0xff]  }
 0x43c   :  { %5197 = vmatpush2.bf16.msra.mxu1 %v6558_v6  ;;  %5157 = vmatprep.subr.bf16.mxu0 %v6563_v8  ;;  %v6627_v6 = vld [vmem:[#allocation14 + $0xb20] ss:$24 sps:$4 sm:$0xff]   ;;  %v6632_v8 = vld [vmem:[#allocation14 + $0xaf4] ss:$24 sps:$4 sm:$0xff]  }
 0x43d   :  { %5198 = vmatprep.subr.bf16.mxu1 %v6566_v9  ;;  %v6630_v9 = vld [vmem:[#allocation14 + $0xaf0] ss:$24 sps:$4 sm:$0xff]  }
 0x43f   :  { %5158 = vmatpush2.bf16.msra.mxu0 %v6561_v10  ;;  %v6635_v10 = vld [vmem:[#allocation14 + $0xac4] ss:$24 sps:$4 sm:$0xff]  }
 0x440   :  { %5199 = vmatpush2.bf16.msra.mxu1 %v6564_v31  ;;  %5159 = vmatprep.subr.bf16.mxu0 %v6569_v11  ;;  %v6633_v31 = vld [vmem:[#allocation14 + $0xac0] ss:$24 sps:$4 sm:$0xff]   ;;  %v6638_v11 = vld [vmem:[#allocation14 + $0xa94] ss:$24 sps:$4 sm:$0xff]  }
 0x441   :  { %5200 = vmatprep.subr.bf16.mxu1 %v6572_v14  ;;  %v6636_v14 = vld [vmem:[#allocation14 + $0xa90] ss:$24 sps:$4 sm:$0xff]  }
 0x443   :  { %5160 = vmatpush2.bf16.msra.mxu0 %v6567_v15  ;;  %v2827_v15 = vrot.slane %v7046_v38, %v6954_v57 }
 0x444   :  { %5201 = vmatpush2.bf16.msra.mxu1 %v6570_v16  ;;  %5161 = vmatprep.subr.bf16.mxu0 %v6575_v17 }
 0x445   :  { %5202 = vmatprep.subr.bf16.mxu1 %v6578_v18 }
 0x447   :  { %5162 = vmatpush2.bf16.msra.mxu0 %v6573_v7 }
 0x448   :  { %5203 = vmatpush2.bf16.msra.mxu1 %v6576_v19  ;;  %5163 = vmatprep.subr.bf16.mxu0 %v6581_v23 }
 0x449   :  { %5204 = vmatprep.subr.bf16.mxu1 %v6584_v22 }
 0x44b   :  { %5164 = vmatpush2.bf16.msra.mxu0 %v6579_v24 }
 0x44c   :  { %5205 = vmatpush2.bf16.msra.mxu1 %v6582_v12  ;;  %5165 = vmatprep.subr.bf16.mxu0 %v6587_v33 }
 0x44d   :  { %5206 = vmatprep.subr.bf16.mxu1 %v6590_v63 }
 0x44f   :  { %5166 = vmatpush2.bf16.msra.mxu0 %v6585_v29  ;;  %v2831_v29 = vrot.slane %v7046_v38, %v6960_v60 }
 0x450   :  { %5207 = vmatpush2.bf16.msra.mxu1 %v6588_v30  ;;  %5217 = vmatprep.subr.bf16.mxu0 %v6593_v54  ;;  %v6869_v30 = vmov 1983009808  }
 0x451   :  { %v5267_v54 = vunpack.c.l.s4 %v6869_v30 }
 0x452   :  { %v7070_v25 = vpop.f32.mrf.mxu1  ;;  %5168 = vmatmul.mubr.bf16.vlgmr.msra.gmra.mxu0 %v7014_v62  ;;  %v4923_v2 = vpop.f32.mrf.mxu0 }
 0x453   :  { %5209 = vmatmul.mubr.bf16.vlgmr.msra.gmra.mxu1 %v7028_v26  ;;  %v7075_v34 = vadd.f32 %v4923_v2, %v7063_v21  ;;  %5218 = vmatpush1.bf16.msra.mxu0 %v6591_v32  ;;  %v6597_v21 = vld [vmem:[#allocation14 + $0xa00] ss:$24 sps:$4 sm:$0xff]   ;;  %v4965_v16 = vadd.f32 %v7070_v25, %v2827_v15 }
 0x454   :  { %5249 = vmatprep.mubr.bf16.mxu0 %v7037_v20  ;;  %v7078_v36 = vpop.f32.mrf.mxu1  ;;  %v4925_v37 = vpop.f32.mrf.mxu0  ;;  %5219 = vmatprep.subr.bf16.mxu0 %v6596_v13  ;;  %v6600_v20 = vld [vmem:[#allocation14 + $0x9d0] ss:$24 sps:$4 sm:$0xff]   ;;  %v5268_v13 = vunpack.c.0.s8 %v5267_v54 }
 0x455   :  { %v7081_v40 = vadd.f32 %v4925_v37, %v7068_v28  ;;  %v6608_v28 = vld [vmem:[#allocation14 + $0x974] ss:$24 sps:$4 sm:$0xff]   ;;  %v4967_v57 = vadd.f32 %v7078_v36, %v2831_v29 }
 0x456   :  { %v4968_v41 = vpop.f32.mrf.mxu1  ;;  %v4927_v62 = vpop.f32.mrf.mxu0  ;;  %v5271_v37 = vsub.s32 %v5268_v13, %v6948_v55 }
 0x457   :  { %v5264_v26 = vcombine.low %v7075_v34, %v7081_v40  ;;  %5220 = vmatpush1.bf16.msra.mxu0 %v6594_v35  ;;  %v2839_v34 = vrot.slane %v7046_v38, %v788_v53 }
 0x458   :  { %v4969_v42 = vpop.f32.mrf.mxu1  ;;  %v4928_v43 = vpop.f32.mrf.mxu0  ;;  %5221 = vmatprep.subr.bf16.mxu0 %v6599_v39 }
 0x459   :  { %v5272_v60 = vrot.slane %v5264_v26, %v5271_v37 }
 0x45b   :  { %5222 = vmatpush1.bf16.msra.mxu0 %v6597_v21 }
 0x45c   :  { %5223 = vmatprep.subr.bf16.mxu0 %v6602_v44 }
 0x45f   :  { %5224 = vmatpush1.bf16.msra.mxu0 %v6600_v20 }
 0x460   :  { %5225 = vmatprep.subr.bf16.mxu0 %v6605_v45 }
 0x463   :  { %5226 = vmatpush1.bf16.msra.mxu0 %v6603_v46 }
 0x464   :  { %5227 = vmatprep.subr.bf16.mxu0 %v6608_v28 }
 0x467   :  { %5228 = vmatpush1.bf16.msra.mxu0 %v6606_v47 }
 0x468   :  { %5229 = vmatprep.subr.bf16.mxu0 %v6611_v49 }
 0x46b   :  { %5230 = vmatpush1.bf16.msra.mxu0 %v6609_v50 }
 0x46c   :  { %5231 = vmatprep.subr.bf16.mxu0 %v6614_v51 }
 0x46f   :  { %5232 = vmatpush1.bf16.msra.mxu0 %v6612_v52 }
 0x470   :  { %5233 = vmatprep.subr.bf16.mxu0 %v6617_v58 }
 0x473   :  { %5234 = vmatpush2.bf16.msra.mxu0 %v6615_v61  ;;  %v2835_v61 = vrot.slane %v7046_v38, %v784_v48 }
 0x474   :  { %5235 = vmatprep.subr.bf16.mxu0 %v6620_v56 }
 0x477   :  { %5236 = vmatpush2.bf16.msra.mxu0 %v6618_v59 }
 0x478   :  { %5237 = vmatprep.subr.bf16.mxu0 %v6623_v0 }
 0x47b   :  { %5238 = vmatpush2.bf16.msra.mxu0 %v6621_v1 }
 0x47c   :  { %5239 = vmatprep.subr.bf16.mxu0 %v6626_v3 }
 0x47f   :  { %5240 = vmatpush2.bf16.msra.mxu0 %v6624_v4 }
 0x480   :  { %5241 = vmatprep.subr.bf16.mxu0 %v6629_v5 }
 0x483   :  { %5242 = vmatpush2.bf16.msra.mxu0 %v6627_v6 }
 0x484   :  { %5243 = vmatprep.subr.bf16.mxu0 %v6632_v8 }
 0x487   :  { %5244 = vmatpush2.bf16.msra.mxu0 %v6630_v9 }
 0x488   :  { %5245 = vmatprep.subr.bf16.mxu0 %v6635_v10 }
 0x48b   :  { %5246 = vmatpush2.bf16.msra.mxu0 %v6633_v31 }
 0x48c   :  { %5247 = vmatprep.subr.bf16.mxu0 %v6638_v11 }
 0x48f   :  { %5248 = vmatpush2.bf16.msra.mxu0 %v6636_v14 }
 0x492   :  { %v5005_v17 = vpop.f32.mrf.mxu0  ;;  %v5046_v18 = vpop.f32.mrf.mxu1  ;;  %5250 = vmatmul.mubr.bf16.vlgmr.msra.gmra.mxu0 %v7039_v27 }
 0x493   :  { %v5006_v7 = vadd.f32 %v5005_v17, %v4965_v16 }
 0x494   :  { %v5007_v19 = vpop.f32.mrf.mxu0  ;;  %v5048_v23 = vpop.f32.mrf.mxu1 }
 0x495   :  { %v5047_v22 = vadd.f32 %v5046_v18, %v5006_v7  ;;  %v5008_v32 = vadd.f32 %v5007_v19, %v4967_v57 }
 0x496   :  { %v5009_v24 = vpop.f32.mrf.mxu0  ;;  %v5050_v12 = vpop.f32.mrf.mxu1 }
 0x497   :  { %v5049_v2 = vadd.f32 %v5048_v23, %v5008_v32 }
 0x498   :  { %v5010_v33 = vpop.f32.mrf.mxu0  ;;  %v5051_v63 = vpop.f32.mrf.mxu1 }
 0x4d2   :  { %v5087_v25 = vpop.f32.mrf.mxu0 }
 0x4d3   :  { %v5128_v27 = vpop.f32.mrf.mxu1  ;;  %v5088_v39 = vadd.f32 %v5087_v25, %v5047_v22 }
 0x4d4   :  { %v5089_v35 = vpop.f32.mrf.mxu0  ;;  %v5129_v40 = vadd.f32 %v5128_v27, %v2835_v61 }
 0x4d5   :  { %v5090_v41 = vadd.f32 %v5089_v35, %v5049_v2  ;;  %v5130_v62 = vpop.f32.mrf.mxu1 }
 0x4d6   :  { %v5091_v21 = vpop.f32.mrf.mxu0  ;;  %v5131_v26 = vadd.f32 %v5130_v62, %v2839_v34 }
 0x4d7   :  { %v5265_v42 = vcombine.low %v5088_v39, %v5090_v41  ;;  %v5132_v43 = vpop.f32.mrf.mxu1 }
 0x4d8   :  { %v5092_v44 = vpop.f32.mrf.mxu0 }
 0x4d9   :  { %v5279_v36 = vrot.slane %v5265_v42, %v5271_v37  ;;  %v5133_v20 = vpop.f32.mrf.mxu1 }
 0x4db   :  { %v5280_v45 = vcombine.low %v5272_v60, %v5279_v36 }
 0x4dd   :  { %5291 = vst [vmem:[#allocation17] sm:$0xff] %v5280_v45 }
 0x512   :  { %v5169_v46 = vpop.f32.mrf.mxu0 }
 0x513   :  { %v5210_v28 = vpop.f32.mrf.mxu1  ;;  %v5170_v56 = vadd.f32 %v5169_v46, %v5129_v40 }
 0x514   :  { %v5171_v47 = vpop.f32.mrf.mxu0 }
 0x515   :  { %v5212_v49 = vpop.f32.mrf.mxu1  ;;  %v5172_v59 = vadd.f32 %v5171_v47, %v5131_v26  ;;  %v5211_v1 = vadd.f32 %v5210_v28, %v5170_v56 }
 0x516   :  { %v5173_v50 = vpop.f32.mrf.mxu0 }
 0x517   :  { %v5214_v51 = vpop.f32.mrf.mxu1  ;;  %v5213_v3 = vadd.f32 %v5212_v49, %v5172_v59 }
 0x518   :  { %v5174_v52 = vpop.f32.mrf.mxu0 }
 0x519   :  { %v5215_v58 = vpop.f32.mrf.mxu1 }
 0x552   :  { %v5251_v0 = vpop.f32.mrf.mxu0 }
 0x553   :  { %v5252_v5 = vadd.f32 %v5251_v0, %v5211_v1 }
 0x554   :  { %v5253_v4 = vpop.f32.mrf.mxu0 }
 0x555   :  { %v5254_v6 = vadd.f32 %v5253_v4, %v5213_v3 }
 0x556   :  { %v5255_v8 = vpop.f32.mrf.mxu0 }
 0x557   :  { %v5281_v9 = vcombine.low %v5252_v5, %v5254_v6 }
 0x558   :  { %v5256_v48 = vpop.f32.mrf.mxu0 }
 0x559   :  { %5986 = vst.sshfl [vmem:[#allocation17 + $0x8] sm:$0x33 pattern:$0x76325410] %v5281_v9 }
 0x55a   :  { %6830 = shalt.err (!%p6827_p7)
}
 0x55b   :  { %5302 = dma.vmem_to_hbm [thread:$0]  %s5300_s8, 192, %s7114_s9, [#allocation4]  }
 0x55c   :  { %6849 = dma.done.wait [#allocation4], 192  }
 0x55d   :  { %6850 = vsyncadd [#allocation4], 4294967104 }
 0x55e   :  { %5306 = vsyncpa [#allocation3], 1 }
 0x55f   :  { %5307 = vsyncpa [#allocation6], 1 }
 0x560   :  { %5308 = vsyncpa [#allocation9], 1 }
 0x561   :  { %5309 = vsyncpa [#allocation12], 1 }
 0x562   :  { %5310 = vsyncpa [#allocation15], 1 }
 0x563   :  { %5311 = vsyncpa [#allocation4], 1 }

</bundles_post_ra>
